<compile_context>
chip_gen: v7x
topology: tpu7x:2x2x1
jax: 0.10.0
libtpu: 0.0.40
codegen_flags: <defaults>
</compile_context>

<pallas_src>
import numpy as np
import jax
import jax.numpy as jnp
from jax.experimental import pallas as pl
from jax.experimental.pallas import tpu as pltpu

NEG_SLOPE = 0.01                 # LeakyReLU negative_slope
CONV_KERNELS = (7, 3, 5, 3)      # fixed in DnsCnn.__init__
KMAX = max(CONV_KERNELS)
LANE = 128


def _round_up(x, m):
    return (x + m - 1) // m * m


def build_schedule(dim):
    """Static per-layer (K, pad, lane_stride, logical_len); final (stride, len)."""
    layers = []
    L, sigma = dim, 1
    for K in CONV_KERNELS:
        layers.append((K, K // 2, sigma, L))
        L = L // 2 + 1           # AvgPool1d(k=2, s=2, p=1) output length
        sigma *= 2               # pooled samples live at doubled lane stride
    return tuple(layers), sigma, L


def _geometry(dim):
    layers, sigma_f, Lf = build_schedule(dim)
    needed = max([dim, sigma_f * (Lf - 1) + 1]
                 + [s * (l - 1) + 1 for _, _, s, l in layers])
    # W >= needed + 16 guarantees the last >= 8 lanes of every per-sample slot
    # stay exactly zero, so the +-8-lane shifted conv reads of one sample can
    # never see a neighbouring sample's data (per-sample 'same' padding stays
    # exact when Bt samples are packed side by side along lanes).
    W = _round_up(needed + 16, LANE)
    return layers, sigma_f, Lf, W


def _pick_bt(B, C, W):
    """Samples packed per grid step (feedback: widen the MXU RHS)."""
    if B >= 16:
        bt = 8
    elif B >= 4:
        bt = B // 2              # keep >= 2 grid steps for megacore sharding
    else:
        bt = 1
    # Keep the tap-staging scratch + activation slabs VMEM-friendly (v7x: 64 MiB).
    while bt > 1 and (KMAX + 4) * C * bt * W * 2 > (20 << 20):
        bt //= 2
    return max(bt, 1)


def _vmem_limit_bytes(C, W, Bt, NPAD, Lf):
    """Size the VMEM limit from the actual footprint instead of a constant."""
    BW = Bt * W
    resident = sum(C * K * C * 2 for K in CONV_KERNELS)       # bf16 conv weights
    resident += C * 8 * 4 + 8 * BW * 4                        # affine + keep masks
    resident += NPAD * (Lf * C) * 2 + NPAD * 4                # bf16 wlin + bias
    blocks = C * BW * 2 + NPAD * Bt * 4                       # x block + out block
    scratch = C * (BW + 2 * LANE) * 2 + KMAX * C * BW * 2     # xb_scr + xw_scr
    est = 2 * (resident + blocks) + scratch                   # double-buffered blocks
    try:
        phys = int(pltpu.get_tpu_info().vmem_capacity_bytes)
    except Exception:
        phys = 64 << 20
    limit = max(2 * est + (8 << 20), 32 << 20)
    return int(min(limit, 100 << 20, int(phys * 0.85)))


def make_dnscnn_kernel(dim, num_classes, Bt):
    C = dim
    layers, sigma_f, Lf, W = _geometry(dim)
    BW = Bt * W
    OFF = LANE                       # left zero-halo width inside xb_scr
    NPAD = _round_up(num_classes, LANE)

    def kernel(x_ref,
               w0_ref, w1_ref, w2_ref, w3_ref,
               aff_ref, keep_ref, wlin_ref, blin_ref,
               out_ref,
               xb_scr, xw_scr):
        # Zero ONLY the two halo strips (no full-scratch re-zeroing).  The data
        # region [OFF, OFF+BW) is fully overwritten every layer and the halos
        # are never written anywhere else.  Re-zeroed every step (cheap:
        # 2*(C,128) bf16 stores) instead of under pl.when(program_id == 0) so
        # the kernel stays correct when the "parallel" grid axis is sharded
        # across TensorCores (a second core never sees program_id == 0).
        xb_scr[:, pl.ds(0, OFF)] = jnp.zeros((C, OFF), jnp.bfloat16)
        xb_scr[:, pl.ds(OFF + BW, LANE)] = jnp.zeros((C, LANE), jnp.bfloat16)

        scale = aff_ref[:, 0:1]                                   # (C, 1) f32
        w_refs = (w0_ref, w1_ref, w2_ref, w3_ref)

        x_bf = x_ref[0]                                           # (C, BW) bf16
        for i, (K, pad, sigma, L) in enumerate(layers):
            # ---- Conv1d(stride=1, 'same') as ONE deep MXU contraction -------
            # Stage the K shifted bf16 windows (zero halo == zero 'same' pad)
            # stacked along sublanes, then a single (C, K*C) x (K*C, BW) dot
            # with f32 accumulation (tap fusion: no K-1 f32 VPU adds).
            xb_scr[:, pl.ds(OFF, BW)] = x_bf
            for k in range(K):
                xw_scr[k * C:(k + 1) * C, :] = (
                    xb_scr[:, pl.ds(OFF + sigma * (k - pad), BW)])
            acc = jnp.dot(w_refs[i][...], xw_scr[0:K * C, :],
                          preferred_element_type=jnp.float32)     # (C, BW) f32

            # ---- conv bias + BatchNorm1d (eval) folded, then LeakyReLU ------
            y = acc * scale + aff_ref[:, 1 + i:2 + i]
            y = jnp.where(y > 0, y, NEG_SLOPE * y)
            # Length-only mask (stride half dropped: every read feeding a valid
            # output lands on the sigma grid).  Zeroing beyond the last valid
            # sample keeps AvgPool's right 'same' pad exact and the packed
            # samples isolated from each other.
            y = y * keep_ref[i:i + 1, :]

            # ---- AvgPool1d(k=2,s=2,p=1): out[m] = 0.5*(y[2m-1] + y[2m]) -----
            # Shift operand is re-read from the bf16 activation scratch (the
            # f32 shift scratch is gone); pooled samples land at stride 2*sigma.
            y_bf = y.astype(jnp.bfloat16)
            xb_scr[:, pl.ds(OFF, BW)] = y_bf
            y_sh = xb_scr[:, pl.ds(OFF - sigma, BW)].astype(jnp.float32)
            x_bf = (0.5 * (y + y_sh)).astype(jnp.bfloat16)

        # ---- Linear (torch flatten order c*Lf + l) as ONE MXU matmul --------
        # Batch Bt is the matmul N dim; gather the Lf stride-sigma_f columns of
        # every sample from the scratch and contract against the bf16 weight.
        xb_scr[:, pl.ds(OFF, BW)] = x_bf
        blocks = []
        for l in range(Lf):
            cols = [xb_scr[:, pl.ds(OFF + b * W + sigma_f * l, 1)]
                    for b in range(Bt)]                           # Bt x (C, 1)
            blocks.append(jnp.concatenate(cols, axis=1) if Bt > 1 else cols[0])
        xg = jnp.concatenate(blocks, axis=0) if Lf > 1 else blocks[0]   # (Lf*C, Bt)
        logits = jnp.dot(wlin_ref[...], xg,
                         preferred_element_type=jnp.float32)     # (NPAD, Bt)
        logits = logits + blin_ref[...]
        # Dropout == identity (inference); LeakyReLU; Sigmoid.
        logits = jnp.where(logits > 0, logits, NEG_SLOPE * logits)
        out_ref[0] = jax.nn.sigmoid(logits)

    return kernel


def dnscnn_forward(x_ids, params):
    emb = params['emb']
    dim = emb.shape[1]
    C = dim
    num_classes = params['blin_t'].shape[0]
    B = x_ids.shape[0]

    layers, sigma_f, Lf, W = _geometry(dim)
    NPAD = _round_up(num_classes, LANE)
    Bt = _pick_bt(B, C, W)
    B_pad = _round_up(B, Bt)
    nsteps = B_pad // Bt
    BW = Bt * W
    kernel = make_dnscnn_kernel(dim, num_classes, Bt)

    # Embedding gather (XLA glue), bf16 cast (halves the per-step DMA), zero
    # padding, and lane-packing of Bt samples per grid step.
    xe = jnp.take(emb, x_ids, axis=0).astype(jnp.bfloat16)        # (B, C, dim)
    xe = jnp.pad(xe, ((0, B_pad - B), (0, 0), (0, W - dim)))
    x = (xe.reshape(nsteps, Bt, C, W)
           .transpose(0, 2, 1, 3)
           .reshape(nsteps, C, BW))

    # Conv weights pre-concatenated for the tap-fused dot:
    #   wcat[cout, k*C + cin] = conv_w[k, cout, cin]
    wcat = [jnp.transpose(w, (1, 0, 2)).reshape(C, w.shape[0] * C)
              .astype(jnp.bfloat16) for w in params['conv_w']]

    # conv bias + BN folded into per-channel scale/shift, all packed in a
    # single (C, 8) block (one small resident input instead of five).
    shifts = [b * params['bn_scale'] + params['bn_shift'] for b in params['conv_b']]
    affine = jnp.stack([params['bn_scale']] + shifts
                       + [jnp.zeros((C,), jnp.float32)] * 3, axis=1)   # (C, 8)

    # Per-layer length masks (1 inside the valid strided extent, else 0),
    # tiled across the Bt lane-packed samples; padded to 8 rows.
    col = np.arange(W)
    keep_np = np.zeros((8, BW), np.float32)
    for i, (_, _, s, l) in enumerate(layers):
        keep_np[i] = np.tile((col <= s * (l - 1)).astype(np.float32), Bt)
    keep = jnp.asarray(keep_np)

    # Linear weight in kernel layout: wlin[n, l*C + c] = Wt[n, c*Lf + l]; bf16.
    wlin = (params['wlin_t'].reshape(num_classes, C, Lf)
            .transpose(0, 2, 1).reshape(num_classes, Lf * C))
    wlin = jnp.pad(wlin, ((0, NPAD - num_classes), (0, 0))).astype(jnp.bfloat16)
    blin = jnp.pad(params['blin_t'], (0, NPAD - num_classes)).reshape(NPAD, 1)

    def resident(a):
        # full-array block with a constant index map -> stays resident in VMEM
        shp = tuple(a.shape)
        return pl.BlockSpec(shp, lambda g, n=len(shp): (0,) * n)

    consts = wcat + [affine, keep, wlin, blin]
    in_specs = ([pl.BlockSpec((1, C, BW), lambda g: (g, 0, 0))]
                + [resident(a) for a in consts])

    out = pl.pallas_call(
        kernel,
        out_shape=jax.ShapeDtypeStruct((nsteps, NPAD, Bt), jnp.float32),
        grid=(nsteps,),
        in_specs=in_specs,
        out_specs=pl.BlockSpec((1, NPAD, Bt), lambda g: (g, 0, 0)),
        scratch_shapes=[pltpu.VMEM((C, LANE + BW + LANE), jnp.bfloat16),
                        pltpu.VMEM((KMAX * C, BW), jnp.bfloat16)],
        compiler_params=pltpu.CompilerParams(
            dimension_semantics=("parallel",),      # megacore / v7x 2-TC sharding
            vmem_limit_bytes=_vmem_limit_bytes(C, W, Bt, NPAD, Lf)),
    )(x, *consts)

    out = out.transpose(0, 2, 1).reshape(B_pad, NPAD)
    return out[:B, :num_classes]                              # (B, num_classes)


def make_params(key, dim, alpha_size, num_classes):
    _, _, connsize = build_schedule(dim)
    keys = jax.random.split(key, 8)
    emb = 0.1 * jax.random.normal(keys[0], (alpha_size + 1, dim), jnp.float32)

    conv_w, conv_b = [], []
    for i, K in enumerate(CONV_KERNELS):
        w = (1.0 / np.sqrt(dim * K)) * jax.random.normal(
            keys[1 + i], (K, dim, dim), jnp.float32)          # (K, Cout, Cin)
        conv_w.append(w)
        conv_b.append(0.01 * jnp.arange(dim, dtype=jnp.float32))

    # BatchNorm1d eval-mode, PyTorch default init (gamma=1, beta=0, mean=0, var=1)
    gamma = jnp.ones((dim,), jnp.float32)
    beta = jnp.zeros((dim,), jnp.float32)
    rmean = jnp.zeros((dim,), jnp.float32)
    rvar = jnp.ones((dim,), jnp.float32)
    inv = gamma / jnp.sqrt(rvar + 1e-5)
    bn_scale = inv
    bn_shift = beta - rmean * inv

    wlin_t = (1.0 / np.sqrt(dim * connsize)) * jax.random.normal(
        keys[5], (num_classes, dim * connsize), jnp.float32)  # torch (n, C*Lf)
    blin_t = 0.05 * jnp.arange(num_classes, dtype=jnp.float32)

    return dict(emb=emb, conv_w=conv_w, conv_b=conv_b,
                bn_scale=bn_scale, bn_shift=bn_shift,
                wlin_t=wlin_t, blin_t=blin_t, connsize=connsize)


def reference_forward(x_ids, params):
    """Plain-JAX f32 reference mirroring the PyTorch forward (eval mode)."""
    x = params['emb'][x_ids]                                  # (B, C, L)
    bs = params['bn_scale'].reshape(1, -1, 1)
    bh = params['bn_shift'].reshape(1, -1, 1)
    for w, b, K in zip(params['conv_w'], params['conv_b'], CONV_KERNELS):
        pad = K // 2
        L = x.shape[-1]
        xp = jnp.pad(x, ((0, 0), (0, 0), (pad, pad)))
        y = jnp.zeros_like(x)
        for k in range(K):
            y = y + jnp.einsum('oc,bcl->bol', w[k], xp[:, :, k:k + L])
        y = y + b.reshape(1, -1, 1)
        y = y * bs + bh
        y = jnp.where(y > 0, y, NEG_SLOPE * y)
        yp = jnp.pad(y, ((0, 0), (0, 0), (1, 1)))
        Lout = L // 2 + 1
        x = 0.5 * (yp[:, :, 0:2 * Lout:2] + yp[:, :, 1:2 * Lout:2])
    flat = x.reshape(x.shape[0], -1)
    logits = flat @ params['wlin_t'].T + params['blin_t']
    logits = jnp.where(logits > 0, logits, NEG_SLOPE * logits)
    return jax.nn.sigmoid(logits)


if __name__ == "__main__":
    dim, alpha_size, num_classes, B = 16, 10, 2, 16
    key = jax.random.PRNGKey(0)
    pkey, xkey = jax.random.split(key)
    params = make_params(pkey, dim, alpha_size, num_classes)
    # Module input: integer token ids of shape (B, dim) (seq len must equal dim).
    x_ids = jax.random.randint(xkey, (B, dim), 0, alpha_size + 1)

    out = jax.block_until_ready(dnscnn_forward(x_ids, params))
    ref = jax.block_until_ready(reference_forward(x_ids, params))
    # bf16 MXU inputs / bf16 activation scratch with f32 accumulation ->
    # slightly relaxed tolerance vs the pure-f32 reference.
    np.testing.assert_allclose(np.asarray(out), np.asarray(ref),
                               rtol=2e-2, atol=2e-2)
    print("KERNEL_OK")
</pallas_src>

<mosaic_0001>
module attributes {stable_mosaic.version = 11 : i64} {
  func.func @kernel(%arg0: i32, %arg1: memref<1x16x1024xbf16, #tpu.memory_space<vmem>>, %arg2: memref<16x112xbf16, #tpu.memory_space<vmem>>, %arg3: memref<16x48xbf16, #tpu.memory_space<vmem>>, %arg4: memref<16x80xbf16, #tpu.memory_space<vmem>>, %arg5: memref<16x48xbf16, #tpu.memory_space<vmem>>, %arg6: memref<16x8xf32, #tpu.memory_space<vmem>>, %arg7: memref<8x1024xf32, #tpu.memory_space<vmem>>, %arg8: memref<128x32xbf16, #tpu.memory_space<vmem>>, %arg9: memref<128x1xf32, #tpu.memory_space<vmem>>, %arg10: memref<1x128x8xf32, #tpu.memory_space<vmem>>, %arg11: memref<16x1280xbf16, #tpu.memory_space<vmem>>, %arg12: memref<112x1024xbf16, #tpu.memory_space<vmem>>) attributes {dimension_semantics = [#tpu.dimension_semantics<parallel>], iteration_bounds = array<i64: 2>, scalar_prefetch = 0 : i64, scratch_operands = 2 : i64, tpu.core_type = #tpu.core_type<tc>, window_params = [{transform_indices = @transform_0, window_bounds = array<i64: 1, 16, 1024>}, {pipeline_mode = #tpu.pipeline_mode<synchronous>, transform_indices = @transform_1, window_bounds = array<i64: 16, 112>}, {pipeline_mode = #tpu.pipeline_mode<synchronous>, transform_indices = @transform_2, window_bounds = array<i64: 16, 48>}, {pipeline_mode = #tpu.pipeline_mode<synchronous>, transform_indices = @transform_3, window_bounds = array<i64: 16, 80>}, {pipeline_mode = #tpu.pipeline_mode<synchronous>, transform_indices = @transform_4, window_bounds = array<i64: 16, 48>}, {pipeline_mode = #tpu.pipeline_mode<synchronous>, transform_indices = @transform_5, window_bounds = array<i64: 16, 8>}, {pipeline_mode = #tpu.pipeline_mode<synchronous>, transform_indices = @transform_6, window_bounds = array<i64: 8, 1024>}, {pipeline_mode = #tpu.pipeline_mode<synchronous>, transform_indices = @transform_7, window_bounds = array<i64: 128, 32>}, {pipeline_mode = #tpu.pipeline_mode<synchronous>, transform_indices = @transform_8, window_bounds = array<i64: 128, 1>}, {transform_indices = @transform_9, window_bounds = array<i64: 1, 128, 8>}]} {
    %cst = arith.constant 0.000000e+00 : bf16
    %0 = vector.broadcast %cst : bf16 to vector<16x128xbf16>
    %c0 = arith.constant 0 : index
    %c0_0 = arith.constant 0 : index
    %1 = vector.load %arg11[%c0, %c0_0] : memref<16x1280xbf16, #tpu.memory_space<vmem>>, vector<16x128xbf16>
    tpu.vector_store %arg11[%c0, %c0_0], %0 {strides = array<i32>} : memref<16x1280xbf16, #tpu.memory_space<vmem>>, vector<16x128xbf16>,
    %cst_1 = arith.constant 0.000000e+00 : bf16
    %2 = vector.broadcast %cst_1 : bf16 to vector<16x128xbf16>
    %c0_2 = arith.constant 0 : index
    %c1152 = arith.constant 1152 : index
    %3 = vector.load %arg11[%c0_2, %c1152] : memref<16x1280xbf16, #tpu.memory_space<vmem>>, vector<16x128xbf16>
    tpu.vector_store %arg11[%c0_2, %c1152], %2 {strides = array<i32>} : memref<16x1280xbf16, #tpu.memory_space<vmem>>, vector<16x128xbf16>,
    %c0_3 = arith.constant 0 : index
    %c0_4 = arith.constant 0 : index
    %4 = vector.load %arg6[%c0_3, %c0_4] : memref<16x8xf32, #tpu.memory_space<vmem>>, vector<16x1xf32>
    %c0_5 = arith.constant 0 : index
    %c0_6 = arith.constant 0 : index
    %c0_7 = arith.constant 0 : index
    %5 = vector.load %arg1[%c0_5, %c0_6, %c0_7] : memref<1x16x1024xbf16, #tpu.memory_space<vmem>>, vector<1x16x1024xbf16>
    %6 = vector.shape_cast %5 : vector<1x16x1024xbf16> to vector<16x1024xbf16>
    %c0_8 = arith.constant 0 : index
    %c128 = arith.constant 128 : index
    %7 = vector.load %arg11[%c0_8, %c128] : memref<16x1280xbf16, #tpu.memory_space<vmem>>, vector<16x1024xbf16>
    tpu.vector_store %arg11[%c0_8, %c128], %6 {strides = array<i32>} : memref<16x1280xbf16, #tpu.memory_space<vmem>>, vector<16x1024xbf16>,
    %c0_9 = arith.constant 0 : index
    %c125 = arith.constant 125 : index
    %8 = vector.load %arg11[%c0_9, %c125] : memref<16x1280xbf16, #tpu.memory_space<vmem>>, vector<16x1024xbf16>
    %c0_10 = arith.constant 0 : index
    %c0_11 = arith.constant 0 : index
    %9 = vector.load %arg12[%c0_10, %c0_11] : memref<112x1024xbf16, #tpu.memory_space<vmem>>, vector<16x1024xbf16>
    tpu.vector_store %arg12[%c0_10, %c0_11], %8 {strides = array<i32>} : memref<112x1024xbf16, #tpu.memory_space<vmem>>, vector<16x1024xbf16>,
    %c0_12 = arith.constant 0 : index
    %c126 = arith.constant 126 : index
    %10 = vector.load %arg11[%c0_12, %c126] : memref<16x1280xbf16, #tpu.memory_space<vmem>>, vector<16x1024xbf16>
    %c16 = arith.constant 16 : index
    %c0_13 = arith.constant 0 : index
    %11 = vector.load %arg12[%c16, %c0_13] : memref<112x1024xbf16, #tpu.memory_space<vmem>>, vector<16x1024xbf16>
    tpu.vector_store %arg12[%c16, %c0_13], %10 {strides = array<i32>} : memref<112x1024xbf16, #tpu.memory_space<vmem>>, vector<16x1024xbf16>,
    %c0_14 = arith.constant 0 : index
    %c127 = arith.constant 127 : index
    %12 = vector.load %arg11[%c0_14, %c127] : memref<16x1280xbf16, #tpu.memory_space<vmem>>, vector<16x1024xbf16>
    %c32 = arith.constant 32 : index
    %c0_15 = arith.constant 0 : index
    %13 = vector.load %arg12[%c32, %c0_15] : memref<112x1024xbf16, #tpu.memory_space<vmem>>, vector<16x1024xbf16>
    tpu.vector_store %arg12[%c32, %c0_15], %12 {strides = array<i32>} : memref<112x1024xbf16, #tpu.memory_space<vmem>>, vector<16x1024xbf16>,
    %c0_16 = arith.constant 0 : index
    %c128_17 = arith.constant 128 : index
    %14 = vector.load %arg11[%c0_16, %c128_17] : memref<16x1280xbf16, #tpu.memory_space<vmem>>, vector<16x1024xbf16>
    %c48 = arith.constant 48 : index
    %c0_18 = arith.constant 0 : index
    %15 = vector.load %arg12[%c48, %c0_18] : memref<112x1024xbf16, #tpu.memory_space<vmem>>, vector<16x1024xbf16>
    tpu.vector_store %arg12[%c48, %c0_18], %14 {strides = array<i32>} : memref<112x1024xbf16, #tpu.memory_space<vmem>>, vector<16x1024xbf16>,
    %c0_19 = arith.constant 0 : index
    %c129 = arith.constant 129 : index
    %16 = vector.load %arg11[%c0_19, %c129] : memref<16x1280xbf16, #tpu.memory_space<vmem>>, vector<16x1024xbf16>
    %c64 = arith.constant 64 : index
    %c0_20 = arith.constant 0 : index
    %17 = vector.load %arg12[%c64, %c0_20] : memref<112x1024xbf16, #tpu.memory_space<vmem>>, vector<16x1024xbf16>
    tpu.vector_store %arg12[%c64, %c0_20], %16 {strides = array<i32>} : memref<112x1024xbf16, #tpu.memory_space<vmem>>, vector<16x1024xbf16>,
    %c0_21 = arith.constant 0 : index
    %c130 = arith.constant 130 : index
    %18 = vector.load %arg11[%c0_21, %c130] : memref<16x1280xbf16, #tpu.memory_space<vmem>>, vector<16x1024xbf16>
    %c80 = arith.constant 80 : index
    %c0_22 = arith.constant 0 : index
    %19 = vector.load %arg12[%c80, %c0_22] : memref<112x1024xbf16, #tpu.memory_space<vmem>>, vector<16x1024xbf16>
    tpu.vector_store %arg12[%c80, %c0_22], %18 {strides = array<i32>} : memref<112x1024xbf16, #tpu.memory_space<vmem>>, vector<16x1024xbf16>,
    %c0_23 = arith.constant 0 : index
    %c131 = arith.constant 131 : index
    %20 = vector.load %arg11[%c0_23, %c131] : memref<16x1280xbf16, #tpu.memory_space<vmem>>, vector<16x1024xbf16>
    %c96 = arith.constant 96 : index
    %c0_24 = arith.constant 0 : index
    %21 = vector.load %arg12[%c96, %c0_24] : memref<112x1024xbf16, #tpu.memory_space<vmem>>, vector<16x1024xbf16>
    tpu.vector_store %arg12[%c96, %c0_24], %20 {strides = array<i32>} : memref<112x1024xbf16, #tpu.memory_space<vmem>>, vector<16x1024xbf16>,
    %c0_25 = arith.constant 0 : index
    %c0_26 = arith.constant 0 : index
    %22 = vector.load %arg2[%c0_25, %c0_26] : memref<16x112xbf16, #tpu.memory_space<vmem>>, vector<16x112xbf16>
    %c0_27 = arith.constant 0 : index
    %c0_28 = arith.constant 0 : index
    %23 = vector.load %arg12[%c0_27, %c0_28] : memref<112x1024xbf16, #tpu.memory_space<vmem>>, vector<112x1024xbf16>
    %cst_29 = arith.constant dense<0.000000e+00> : vector<16x1024xf32>
    %24 = tpu.matmul %22, %23, %cst_29 {dimension_numbers = #tpu.dot_dimension_numbers<[1], [0], [0], [1], [0, 0, 1, 1], [], []>} : vector<16x112xbf16>, vector<112x1024xbf16>, vector<16x1024xf32> -> vector<16x1024xf32>
    %25 = vector.broadcast %4 : vector<16x1xf32> to vector<16x1024xf32>
    %26 = arith.mulf %24, %25 : vector<16x1024xf32>
    %c0_30 = arith.constant 0 : index
    %c1 = arith.constant 1 : index
    %27 = vector.load %arg6[%c0_30, %c1] : memref<16x8xf32, #tpu.memory_space<vmem>>, vector<16x1xf32>
    %28 = vector.broadcast %27 : vector<16x1xf32> to vector<16x1024xf32>
    %29 = arith.addf %26, %28 : vector<16x1024xf32>
    %cst_31 = arith.constant 0.000000e+00 : f32
    %30 = vector.broadcast %cst_31 : f32 to vector<16x1024xf32>
    %31 = arith.cmpf ogt, %29, %30 : vector<16x1024xf32>
    %cst_32 = arith.constant 0.00999999977 : f32
    %32 = vector.broadcast %cst_32 : f32 to vector<16x1024xf32>
    %33 = arith.mulf %32, %29 : vector<16x1024xf32>
    %34 = arith.select %31, %29, %33 : vector<16x1024xi1>, vector<16x1024xf32>
    %c0_33 = arith.constant 0 : index
    %c0_34 = arith.constant 0 : index
    %35 = vector.load %arg7[%c0_33, %c0_34] : memref<8x1024xf32, #tpu.memory_space<vmem>>, vector<1x1024xf32>
    %36 = vector.broadcast %35 : vector<1x1024xf32> to vector<16x1024xf32>
    %37 = arith.mulf %34, %36 : vector<16x1024xf32>
    %38 = arith.truncf %37 : vector<16x1024xf32> to vector<16x1024xbf16>
    %c0_35 = arith.constant 0 : index
    %c128_36 = arith.constant 128 : index
    %39 = vector.load %arg11[%c0_35, %c128_36] : memref<16x1280xbf16, #tpu.memory_space<vmem>>, vector<16x1024xbf16>
    tpu.vector_store %arg11[%c0_35, %c128_36], %38 {strides = array<i32>} : memref<16x1280xbf16, #tpu.memory_space<vmem>>, vector<16x1024xbf16>,
    %c0_37 = arith.constant 0 : index
    %c127_38 = arith.constant 127 : index
    %40 = vector.load %arg11[%c0_37, %c127_38] : memref<16x1280xbf16, #tpu.memory_space<vmem>>, vector<16x1024xbf16>
    %41 = arith.extf %40 : vector<16x1024xbf16> to vector<16x1024xf32>
    %42 = arith.addf %37, %41 : vector<16x1024xf32>
    %cst_39 = arith.constant 5.000000e-01 : f32
    %43 = vector.broadcast %cst_39 : f32 to vector<16x1024xf32>
    %44 = arith.mulf %43, %42 : vector<16x1024xf32>
    %45 = arith.truncf %44 : vector<16x1024xf32> to vector<16x1024xbf16>
    %c0_40 = arith.constant 0 : index
    %c128_41 = arith.constant 128 : index
    %46 = vector.load %arg11[%c0_40, %c128_41] : memref<16x1280xbf16, #tpu.memory_space<vmem>>, vector<16x1024xbf16>
    tpu.vector_store %arg11[%c0_40, %c128_41], %45 {strides = array<i32>} : memref<16x1280xbf16, #tpu.memory_space<vmem>>, vector<16x1024xbf16>,
    %c0_42 = arith.constant 0 : index
    %c126_43 = arith.constant 126 : index
    %47 = vector.load %arg11[%c0_42, %c126_43] : memref<16x1280xbf16, #tpu.memory_space<vmem>>, vector<16x1024xbf16>
    %c0_44 = arith.constant 0 : index
    %c0_45 = arith.constant 0 : index
    %48 = vector.load %arg12[%c0_44, %c0_45] : memref<112x1024xbf16, #tpu.memory_space<vmem>>, vector<16x1024xbf16>
    tpu.vector_store %arg12[%c0_44, %c0_45], %47 {strides = array<i32>} : memref<112x1024xbf16, #tpu.memory_space<vmem>>, vector<16x1024xbf16>,
    %c0_46 = arith.constant 0 : index
    %c128_47 = arith.constant 128 : index
    %49 = vector.load %arg11[%c0_46, %c128_47] : memref<16x1280xbf16, #tpu.memory_space<vmem>>, vector<16x1024xbf16>
    %c16_48 = arith.constant 16 : index
    %c0_49 = arith.constant 0 : index
    %50 = vector.load %arg12[%c16_48, %c0_49] : memref<112x1024xbf16, #tpu.memory_space<vmem>>, vector<16x1024xbf16>
    tpu.vector_store %arg12[%c16_48, %c0_49], %49 {strides = array<i32>} : memref<112x1024xbf16, #tpu.memory_space<vmem>>, vector<16x1024xbf16>,
    %c0_50 = arith.constant 0 : index
    %c130_51 = arith.constant 130 : index
    %51 = vector.load %arg11[%c0_50, %c130_51] : memref<16x1280xbf16, #tpu.memory_space<vmem>>, vector<16x1024xbf16>
    %c32_52 = arith.constant 32 : index
    %c0_53 = arith.constant 0 : index
    %52 = vector.load %arg12[%c32_52, %c0_53] : memref<112x1024xbf16, #tpu.memory_space<vmem>>, vector<16x1024xbf16>
    tpu.vector_store %arg12[%c32_52, %c0_53], %51 {strides = array<i32>} : memref<112x1024xbf16, #tpu.memory_space<vmem>>, vector<16x1024xbf16>,
    %c0_54 = arith.constant 0 : index
    %c0_55 = arith.constant 0 : index
    %53 = vector.load %arg3[%c0_54, %c0_55] : memref<16x48xbf16, #tpu.memory_space<vmem>>, vector<16x48xbf16>
    %c0_56 = arith.constant 0 : index
    %c0_57 = arith.constant 0 : index
    %54 = vector.load %arg12[%c0_56, %c0_57] : memref<112x1024xbf16, #tpu.memory_space<vmem>>, vector<48x1024xbf16>
    %cst_58 = arith.constant dense<0.000000e+00> : vector<16x1024xf32>
    %55 = tpu.matmul %53, %54, %cst_58 {dimension_numbers = #tpu.dot_dimension_numbers<[1], [0], [0], [1], [0, 0, 1, 1], [], []>} : vector<16x48xbf16>, vector<48x1024xbf16>, vector<16x1024xf32> -> vector<16x1024xf32>
    %56 = vector.broadcast %4 : vector<16x1xf32> to vector<16x1024xf32>
    %57 = arith.mulf %55, %56 : vector<16x1024xf32>
    %c0_59 = arith.constant 0 : index
    %c2 = arith.constant 2 : index
    %58 = vector.load %arg6[%c0_59, %c2] : memref<16x8xf32, #tpu.memory_space<vmem>>, vector<16x1xf32>
    %59 = vector.broadcast %58 : vector<16x1xf32> to vector<16x1024xf32>
    %60 = arith.addf %57, %59 : vector<16x1024xf32>
    %cst_60 = arith.constant 0.000000e+00 : f32
    %61 = vector.broadcast %cst_60 : f32 to vector<16x1024xf32>
    %62 = arith.cmpf ogt, %60, %61 : vector<16x1024xf32>
    %cst_61 = arith.constant 0.00999999977 : f32
    %63 = vector.broadcast %cst_61 : f32 to vector<16x1024xf32>
    %64 = arith.mulf %63, %60 : vector<16x1024xf32>
    %65 = arith.select %62, %60, %64 : vector<16x1024xi1>, vector<16x1024xf32>
    %c1_62 = arith.constant 1 : index
    %c0_63 = arith.constant 0 : index
    %66 = vector.load %arg7[%c1_62, %c0_63] : memref<8x1024xf32, #tpu.memory_space<vmem>>, vector<1x1024xf32>
    %67 = vector.broadcast %66 : vector<1x1024xf32> to vector<16x1024xf32>
    %68 = arith.mulf %65, %67 : vector<16x1024xf32>
    %69 = arith.truncf %68 : vector<16x1024xf32> to vector<16x1024xbf16>
    %c0_64 = arith.constant 0 : index
    %c128_65 = arith.constant 128 : index
    %70 = vector.load %arg11[%c0_64, %c128_65] : memref<16x1280xbf16, #tpu.memory_space<vmem>>, vector<16x1024xbf16>
    tpu.vector_store %arg11[%c0_64, %c128_65], %69 {strides = array<i32>} : memref<16x1280xbf16, #tpu.memory_space<vmem>>, vector<16x1024xbf16>,
    %c0_66 = arith.constant 0 : index
    %c126_67 = arith.constant 126 : index
    %71 = vector.load %arg11[%c0_66, %c126_67] : memref<16x1280xbf16, #tpu.memory_space<vmem>>, vector<16x1024xbf16>
    %72 = arith.extf %71 : vector<16x1024xbf16> to vector<16x1024xf32>
    %73 = arith.addf %68, %72 : vector<16x1024xf32>
    %cst_68 = arith.constant 5.000000e-01 : f32
    %74 = vector.broadcast %cst_68 : f32 to vector<16x1024xf32>
    %75 = arith.mulf %74, %73 : vector<16x1024xf32>
    %76 = arith.truncf %75 : vector<16x1024xf32> to vector<16x1024xbf16>
    %c0_69 = arith.constant 0 : index
    %c128_70 = arith.constant 128 : index
    %77 = vector.load %arg11[%c0_69, %c128_70] : memref<16x1280xbf16, #tpu.memory_space<vmem>>, vector<16x1024xbf16>
    tpu.vector_store %arg11[%c0_69, %c128_70], %76 {strides = array<i32>} : memref<16x1280xbf16, #tpu.memory_space<vmem>>, vector<16x1024xbf16>,
    %c0_71 = arith.constant 0 : index
    %c120 = arith.constant 120 : index
    %78 = vector.load %arg11[%c0_71, %c120] : memref<16x1280xbf16, #tpu.memory_space<vmem>>, vector<16x1024xbf16>
    %c0_72 = arith.constant 0 : index
    %c0_73 = arith.constant 0 : index
    %79 = vector.load %arg12[%c0_72, %c0_73] : memref<112x1024xbf16, #tpu.memory_space<vmem>>, vector<16x1024xbf16>
    tpu.vector_store %arg12[%c0_72, %c0_73], %78 {strides = array<i32>} : memref<112x1024xbf16, #tpu.memory_space<vmem>>, vector<16x1024xbf16>,
    %c0_74 = arith.constant 0 : index
    %c124 = arith.constant 124 : index
    %80 = vector.load %arg11[%c0_74, %c124] : memref<16x1280xbf16, #tpu.memory_space<vmem>>, vector<16x1024xbf16>
    %c16_75 = arith.constant 16 : index
    %c0_76 = arith.constant 0 : index
    %81 = vector.load %arg12[%c16_75, %c0_76] : memref<112x1024xbf16, #tpu.memory_space<vmem>>, vector<16x1024xbf16>
    tpu.vector_store %arg12[%c16_75, %c0_76], %80 {strides = array<i32>} : memref<112x1024xbf16, #tpu.memory_space<vmem>>, vector<16x1024xbf16>,
    %c0_77 = arith.constant 0 : index
    %c128_78 = arith.constant 128 : index
    %82 = vector.load %arg11[%c0_77, %c128_78] : memref<16x1280xbf16, #tpu.memory_space<vmem>>, vector<16x1024xbf16>
    %c32_79 = arith.constant 32 : index
    %c0_80 = arith.constant 0 : index
    %83 = vector.load %arg12[%c32_79, %c0_80] : memref<112x1024xbf16, #tpu.memory_space<vmem>>, vector<16x1024xbf16>
    tpu.vector_store %arg12[%c32_79, %c0_80], %82 {strides = array<i32>} : memref<112x1024xbf16, #tpu.memory_space<vmem>>, vector<16x1024xbf16>,
    %c0_81 = arith.constant 0 : index
    %c132 = arith.constant 132 : index
    %84 = vector.load %arg11[%c0_81, %c132] : memref<16x1280xbf16, #tpu.memory_space<vmem>>, vector<16x1024xbf16>
    %c48_82 = arith.constant 48 : index
    %c0_83 = arith.constant 0 : index
    %85 = vector.load %arg12[%c48_82, %c0_83] : memref<112x1024xbf16, #tpu.memory_space<vmem>>, vector<16x1024xbf16>
    tpu.vector_store %arg12[%c48_82, %c0_83], %84 {strides = array<i32>} : memref<112x1024xbf16, #tpu.memory_space<vmem>>, vector<16x1024xbf16>,
    %c0_84 = arith.constant 0 : index
    %c136 = arith.constant 136 : index
    %86 = vector.load %arg11[%c0_84, %c136] : memref<16x1280xbf16, #tpu.memory_space<vmem>>, vector<16x1024xbf16>
    %c64_85 = arith.constant 64 : index
    %c0_86 = arith.constant 0 : index
    %87 = vector.load %arg12[%c64_85, %c0_86] : memref<112x1024xbf16, #tpu.memory_space<vmem>>, vector<16x1024xbf16>
    tpu.vector_store %arg12[%c64_85, %c0_86], %86 {strides = array<i32>} : memref<112x1024xbf16, #tpu.memory_space<vmem>>, vector<16x1024xbf16>,
    %c0_87 = arith.constant 0 : index
    %c0_88 = arith.constant 0 : index
    %88 = vector.load %arg4[%c0_87, %c0_88] : memref<16x80xbf16, #tpu.memory_space<vmem>>, vector<16x80xbf16>
    %c0_89 = arith.constant 0 : index
    %c0_90 = arith.constant 0 : index
    %89 = vector.load %arg12[%c0_89, %c0_90] : memref<112x1024xbf16, #tpu.memory_space<vmem>>, vector<80x1024xbf16>
    %cst_91 = arith.constant dense<0.000000e+00> : vector<16x1024xf32>
    %90 = tpu.matmul %88, %89, %cst_91 {dimension_numbers = #tpu.dot_dimension_numbers<[1], [0], [0], [1], [0, 0, 1, 1], [], []>} : vector<16x80xbf16>, vector<80x1024xbf16>, vector<16x1024xf32> -> vector<16x1024xf32>
    %91 = vector.broadcast %4 : vector<16x1xf32> to vector<16x1024xf32>
    %92 = arith.mulf %90, %91 : vector<16x1024xf32>
    %c0_92 = arith.constant 0 : index
    %c3 = arith.constant 3 : index
    %93 = vector.load %arg6[%c0_92, %c3] : memref<16x8xf32, #tpu.memory_space<vmem>>, vector<16x1xf32>
    %94 = vector.broadcast %93 : vector<16x1xf32> to vector<16x1024xf32>
    %95 = arith.addf %92, %94 : vector<16x1024xf32>
    %cst_93 = arith.constant 0.000000e+00 : f32
    %96 = vector.broadcast %cst_93 : f32 to vector<16x1024xf32>
    %97 = arith.cmpf ogt, %95, %96 : vector<16x1024xf32>
    %cst_94 = arith.constant 0.00999999977 : f32
    %98 = vector.broadcast %cst_94 : f32 to vector<16x1024xf32>
    %99 = arith.mulf %98, %95 : vector<16x1024xf32>
    %100 = arith.select %97, %95, %99 : vector<16x1024xi1>, vector<16x1024xf32>
    %c2_95 = arith.constant 2 : index
    %c0_96 = arith.constant 0 : index
    %101 = vector.load %arg7[%c2_95, %c0_96] : memref<8x1024xf32, #tpu.memory_space<vmem>>, vector<1x1024xf32>
    %102 = vector.broadcast %101 : vector<1x1024xf32> to vector<16x1024xf32>
    %103 = arith.mulf %100, %102 : vector<16x1024xf32>
    %104 = arith.truncf %103 : vector<16x1024xf32> to vector<16x1024xbf16>
    %c0_97 = arith.constant 0 : index
    %c128_98 = arith.constant 128 : index
    %105 = vector.load %arg11[%c0_97, %c128_98] : memref<16x1280xbf16, #tpu.memory_space<vmem>>, vector<16x1024xbf16>
    tpu.vector_store %arg11[%c0_97, %c128_98], %104 {strides = array<i32>} : memref<16x1280xbf16, #tpu.memory_space<vmem>>, vector<16x1024xbf16>,
    %c0_99 = arith.constant 0 : index
    %c124_100 = arith.constant 124 : index
    %106 = vector.load %arg11[%c0_99, %c124_100] : memref<16x1280xbf16, #tpu.memory_space<vmem>>, vector<16x1024xbf16>
    %107 = arith.extf %106 : vector<16x1024xbf16> to vector<16x1024xf32>
    %108 = arith.addf %103, %107 : vector<16x1024xf32>
    %cst_101 = arith.constant 5.000000e-01 : f32
    %109 = vector.broadcast %cst_101 : f32 to vector<16x1024xf32>
    %110 = arith.mulf %109, %108 : vector<16x1024xf32>
    %111 = arith.truncf %110 : vector<16x1024xf32> to vector<16x1024xbf16>
    %c0_102 = arith.constant 0 : index
    %c128_103 = arith.constant 128 : index
    %112 = vector.load %arg11[%c0_102, %c128_103] : memref<16x1280xbf16, #tpu.memory_space<vmem>>, vector<16x1024xbf16>
    tpu.vector_store %arg11[%c0_102, %c128_103], %111 {strides = array<i32>} : memref<16x1280xbf16, #tpu.memory_space<vmem>>, vector<16x1024xbf16>,
    %c0_104 = arith.constant 0 : index
    %c120_105 = arith.constant 120 : index
    %113 = vector.load %arg11[%c0_104, %c120_105] : memref<16x1280xbf16, #tpu.memory_space<vmem>>, vector<16x1024xbf16>
    %c0_106 = arith.constant 0 : index
    %c0_107 = arith.constant 0 : index
    %114 = vector.load %arg12[%c0_106, %c0_107] : memref<112x1024xbf16, #tpu.memory_space<vmem>>, vector<16x1024xbf16>
    tpu.vector_store %arg12[%c0_106, %c0_107], %113 {strides = array<i32>} : memref<112x1024xbf16, #tpu.memory_space<vmem>>, vector<16x1024xbf16>,
    %c0_108 = arith.constant 0 : index
    %c128_109 = arith.constant 128 : index
    %115 = vector.load %arg11[%c0_108, %c128_109] : memref<16x1280xbf16, #tpu.memory_space<vmem>>, vector<16x1024xbf16>
    %c16_110 = arith.constant 16 : index
    %c0_111 = arith.constant 0 : index
    %116 = vector.load %arg12[%c16_110, %c0_111] : memref<112x1024xbf16, #tpu.memory_space<vmem>>, vector<16x1024xbf16>
    tpu.vector_store %arg12[%c16_110, %c0_111], %115 {strides = array<i32>} : memref<112x1024xbf16, #tpu.memory_space<vmem>>, vector<16x1024xbf16>,
    %c0_112 = arith.constant 0 : index
    %c136_113 = arith.constant 136 : index
    %117 = vector.load %arg11[%c0_112, %c136_113] : memref<16x1280xbf16, #tpu.memory_space<vmem>>, vector<16x1024xbf16>
    %c32_114 = arith.constant 32 : index
    %c0_115 = arith.constant 0 : index
    %118 = vector.load %arg12[%c32_114, %c0_115] : memref<112x1024xbf16, #tpu.memory_space<vmem>>, vector<16x1024xbf16>
    tpu.vector_store %arg12[%c32_114, %c0_115], %117 {strides = array<i32>} : memref<112x1024xbf16, #tpu.memory_space<vmem>>, vector<16x1024xbf16>,
    %c0_116 = arith.constant 0 : index
    %c0_117 = arith.constant 0 : index
    %119 = vector.load %arg5[%c0_116, %c0_117] : memref<16x48xbf16, #tpu.memory_space<vmem>>, vector<16x48xbf16>
    %c0_118 = arith.constant 0 : index
    %c0_119 = arith.constant 0 : index
    %120 = vector.load %arg12[%c0_118, %c0_119] : memref<112x1024xbf16, #tpu.memory_space<vmem>>, vector<48x1024xbf16>
    %cst_120 = arith.constant dense<0.000000e+00> : vector<16x1024xf32>
    %121 = tpu.matmul %119, %120, %cst_120 {dimension_numbers = #tpu.dot_dimension_numbers<[1], [0], [0], [1], [0, 0, 1, 1], [], []>} : vector<16x48xbf16>, vector<48x1024xbf16>, vector<16x1024xf32> -> vector<16x1024xf32>
    %122 = vector.broadcast %4 : vector<16x1xf32> to vector<16x1024xf32>
    %123 = arith.mulf %121, %122 : vector<16x1024xf32>
    %c0_121 = arith.constant 0 : index
    %c4 = arith.constant 4 : index
    %124 = vector.load %arg6[%c0_121, %c4] : memref<16x8xf32, #tpu.memory_space<vmem>>, vector<16x1xf32>
    %125 = vector.broadcast %124 : vector<16x1xf32> to vector<16x1024xf32>
    %126 = arith.addf %123, %125 : vector<16x1024xf32>
    %cst_122 = arith.constant 0.000000e+00 : f32
    %127 = vector.broadcast %cst_122 : f32 to vector<16x1024xf32>
    %128 = arith.cmpf ogt, %126, %127 : vector<16x1024xf32>
    %cst_123 = arith.constant 0.00999999977 : f32
    %129 = vector.broadcast %cst_123 : f32 to vector<16x1024xf32>
    %130 = arith.mulf %129, %126 : vector<16x1024xf32>
    %131 = arith.select %128, %126, %130 : vector<16x1024xi1>, vector<16x1024xf32>
    %c3_124 = arith.constant 3 : index
    %c0_125 = arith.constant 0 : index
    %132 = vector.load %arg7[%c3_124, %c0_125] : memref<8x1024xf32, #tpu.memory_space<vmem>>, vector<1x1024xf32>
    %133 = vector.broadcast %132 : vector<1x1024xf32> to vector<16x1024xf32>
    %134 = arith.mulf %131, %133 : vector<16x1024xf32>
    %135 = arith.truncf %134 : vector<16x1024xf32> to vector<16x1024xbf16>
    %c0_126 = arith.constant 0 : index
    %c128_127 = arith.constant 128 : index
    %136 = vector.load %arg11[%c0_126, %c128_127] : memref<16x1280xbf16, #tpu.memory_space<vmem>>, vector<16x1024xbf16>
    tpu.vector_store %arg11[%c0_126, %c128_127], %135 {strides = array<i32>} : memref<16x1280xbf16, #tpu.memory_space<vmem>>, vector<16x1024xbf16>,
    %c0_128 = arith.constant 0 : index
    %c120_129 = arith.constant 120 : index
    %137 = vector.load %arg11[%c0_128, %c120_129] : memref<16x1280xbf16, #tpu.memory_space<vmem>>, vector<16x1024xbf16>
    %138 = arith.extf %137 : vector<16x1024xbf16> to vector<16x1024xf32>
    %139 = arith.addf %134, %138 : vector<16x1024xf32>
    %cst_130 = arith.constant 5.000000e-01 : f32
    %140 = vector.broadcast %cst_130 : f32 to vector<16x1024xf32>
    %141 = arith.mulf %140, %139 : vector<16x1024xf32>
    %142 = arith.truncf %141 : vector<16x1024xf32> to vector<16x1024xbf16>
    %c0_131 = arith.constant 0 : index
    %c128_132 = arith.constant 128 : index
    %143 = vector.load %arg11[%c0_131, %c128_132] : memref<16x1280xbf16, #tpu.memory_space<vmem>>, vector<16x1024xbf16>
    tpu.vector_store %arg11[%c0_131, %c128_132], %142 {strides = array<i32>} : memref<16x1280xbf16, #tpu.memory_space<vmem>>, vector<16x1024xbf16>,
    %c0_133 = arith.constant 0 : index
    %c128_134 = arith.constant 128 : index
    %144 = vector.load %arg11[%c0_133, %c128_134] : memref<16x1280xbf16, #tpu.memory_space<vmem>>, vector<16x1xbf16>
    %c0_135 = arith.constant 0 : index
    %c256 = arith.constant 256 : index
    %145 = vector.load %arg11[%c0_135, %c256] : memref<16x1280xbf16, #tpu.memory_space<vmem>>, vector<16x1xbf16>
    %c0_136 = arith.constant 0 : index
    %c384 = arith.constant 384 : index
    %146 = vector.load %arg11[%c0_136, %c384] : memref<16x1280xbf16, #tpu.memory_space<vmem>>, vector<16x1xbf16>
    %c0_137 = arith.constant 0 : index
    %c512 = arith.constant 512 : index
    %147 = vector.load %arg11[%c0_137, %c512] : memref<16x1280xbf16, #tpu.memory_space<vmem>>, vector<16x1xbf16>
    %c0_138 = arith.constant 0 : index
    %c640 = arith.constant 640 : index
    %148 = vector.load %arg11[%c0_138, %c640] : memref<16x1280xbf16, #tpu.memory_space<vmem>>, vector<16x1xbf16>
    %c0_139 = arith.constant 0 : index
    %c768 = arith.constant 768 : index
    %149 = vector.load %arg11[%c0_139, %c768] : memref<16x1280xbf16, #tpu.memory_space<vmem>>, vector<16x1xbf16>
    %c0_140 = arith.constant 0 : index
    %c896 = arith.constant 896 : index
    %150 = vector.load %arg11[%c0_140, %c896] : memref<16x1280xbf16, #tpu.memory_space<vmem>>, vector<16x1xbf16>
    %c0_141 = arith.constant 0 : index
    %c1024 = arith.constant 1024 : index
    %151 = vector.load %arg11[%c0_141, %c1024] : memref<16x1280xbf16, #tpu.memory_space<vmem>>, vector<16x1xbf16>
    %152 = tpu.concatenate %144, %145, %146, %147, %148, %149, %150, %151 in 1 : vector<16x1xbf16>, vector<16x1xbf16>, vector<16x1xbf16>, vector<16x1xbf16>, vector<16x1xbf16>, vector<16x1xbf16>, vector<16x1xbf16>, vector<16x1xbf16> -> vector<16x8xbf16>
    %c0_142 = arith.constant 0 : index
    %c144 = arith.constant 144 : index
    %153 = vector.load %arg11[%c0_142, %c144] : memref<16x1280xbf16, #tpu.memory_space<vmem>>, vector<16x1xbf16>
    %c0_143 = arith.constant 0 : index
    %c272 = arith.constant 272 : index
    %154 = vector.load %arg11[%c0_143, %c272] : memref<16x1280xbf16, #tpu.memory_space<vmem>>, vector<16x1xbf16>
    %c0_144 = arith.constant 0 : index
    %c400 = arith.constant 400 : index
    %155 = vector.load %arg11[%c0_144, %c400] : memref<16x1280xbf16, #tpu.memory_space<vmem>>, vector<16x1xbf16>
    %c0_145 = arith.constant 0 : index
    %c528 = arith.constant 528 : index
    %156 = vector.load %arg11[%c0_145, %c528] : memref<16x1280xbf16, #tpu.memory_space<vmem>>, vector<16x1xbf16>
    %c0_146 = arith.constant 0 : index
    %c656 = arith.constant 656 : index
    %157 = vector.load %arg11[%c0_146, %c656] : memref<16x1280xbf16, #tpu.memory_space<vmem>>, vector<16x1xbf16>
    %c0_147 = arith.constant 0 : index
    %c784 = arith.constant 784 : index
    %158 = vector.load %arg11[%c0_147, %c784] : memref<16x1280xbf16, #tpu.memory_space<vmem>>, vector<16x1xbf16>
    %c0_148 = arith.constant 0 : index
    %c912 = arith.constant 912 : index
    %159 = vector.load %arg11[%c0_148, %c912] : memref<16x1280xbf16, #tpu.memory_space<vmem>>, vector<16x1xbf16>
    %c0_149 = arith.constant 0 : index
    %c1040 = arith.constant 1040 : index
    %160 = vector.load %arg11[%c0_149, %c1040] : memref<16x1280xbf16, #tpu.memory_space<vmem>>, vector<16x1xbf16>
    %161 = tpu.concatenate %153, %154, %155, %156, %157, %158, %159, %160 in 1 : vector<16x1xbf16>, vector<16x1xbf16>, vector<16x1xbf16>, vector<16x1xbf16>, vector<16x1xbf16>, vector<16x1xbf16>, vector<16x1xbf16>, vector<16x1xbf16> -> vector<16x8xbf16>
    %162 = tpu.concatenate %152, %161 in 0 : vector<16x8xbf16>, vector<16x8xbf16> -> vector<32x8xbf16>
    %c0_150 = arith.constant 0 : index
    %c0_151 = arith.constant 0 : index
    %163 = vector.load %arg8[%c0_150, %c0_151] : memref<128x32xbf16, #tpu.memory_space<vmem>>, vector<128x32xbf16>
    %cst_152 = arith.constant dense<0.000000e+00> : vector<128x8xf32>
    %164 = tpu.matmul %163, %162, %cst_152 {dimension_numbers = #tpu.dot_dimension_numbers<[1], [0], [0], [1], [0, 0, 1, 1], [], []>} : vector<128x32xbf16>, vector<32x8xbf16>, vector<128x8xf32> -> vector<128x8xf32>
    %c0_153 = arith.constant 0 : index
    %c0_154 = arith.constant 0 : index
    %165 = vector.load %arg9[%c0_153, %c0_154] : memref<128x1xf32, #tpu.memory_space<vmem>>, vector<128x1xf32>
    %166 = vector.broadcast %165 : vector<128x1xf32> to vector<128x8xf32>
    %167 = arith.addf %164, %166 : vector<128x8xf32>
    %cst_155 = arith.constant 0.000000e+00 : f32
    %168 = vector.broadcast %cst_155 : f32 to vector<128x8xf32>
    %169 = arith.cmpf ogt, %167, %168 : vector<128x8xf32>
    %cst_156 = arith.constant 0.00999999977 : f32
    %170 = vector.broadcast %cst_156 : f32 to vector<128x8xf32>
    %171 = arith.mulf %170, %167 : vector<128x8xf32>
    %172 = arith.select %169, %167, %171 : vector<128x8xi1>, vector<128x8xf32>
    %173 = arith.negf %172 : vector<128x8xf32>
    %174 = math.exp %173 : vector<128x8xf32>
    %cst_157 = arith.constant 1.000000e+00 : f32
    %175 = vector.broadcast %cst_157 : f32 to vector<128x8xf32>
    %176 = arith.addf %175, %174 : vector<128x8xf32>
    %177 = arith.divf %175, %176 : vector<128x8xf32>
    %c0_158 = arith.constant 0 : index
    %c0_159 = arith.constant 0 : index
    %c0_160 = arith.constant 0 : index
    %178 = vector.load %arg10[%c0_158, %c0_159, %c0_160] : memref<1x128x8xf32, #tpu.memory_space<vmem>>, vector<1x128x8xf32>
    %179 = vector.shape_cast %178 : vector<1x128x8xf32> to vector<128x8xf32>
    %180 = vector.shape_cast %177 : vector<128x8xf32> to vector<1x128x8xf32>
    tpu.vector_store %arg10[%c0_158, %c0_159, %c0_160], %180 {strides = array<i32>} : memref<1x128x8xf32, #tpu.memory_space<vmem>>, vector<1x128x8xf32>,
    return
  }
  func.func @transform_0(%arg0: i32) -> (i32, i32, i32) {
    %c0_i32 = arith.constant 0 : i32
    %c0_i32_0 = arith.constant 0 : i32
    %c0_i32_1 = arith.constant 0 : i32
    return %arg0, %c0_i32, %c0_i32_0 : i32, i32, i32
  }
  func.func @transform_1(%arg0: i32) -> (i32, i32) {
    %c0_i32 = arith.constant 0 : i32
    %c0_i32_0 = arith.constant 0 : i32
    %c0_i32_1 = arith.constant 0 : i32
    return %c0_i32, %c0_i32_0 : i32, i32
  }
  func.func @transform_2(%arg0: i32) -> (i32, i32) {
    %c0_i32 = arith.constant 0 : i32
    %c0_i32_0 = arith.constant 0 : i32
    %c0_i32_1 = arith.constant 0 : i32
    return %c0_i32, %c0_i32_0 : i32, i32
  }
  func.func @transform_3(%arg0: i32) -> (i32, i32) {
    %c0_i32 = arith.constant 0 : i32
    %c0_i32_0 = arith.constant 0 : i32
    %c0_i32_1 = arith.constant 0 : i32
    return %c0_i32, %c0_i32_0 : i32, i32
  }
  func.func @transform_4(%arg0: i32) -> (i32, i32) {
    %c0_i32 = arith.constant 0 : i32
    %c0_i32_0 = arith.constant 0 : i32
    %c0_i32_1 = arith.constant 0 : i32
    return %c0_i32, %c0_i32_0 : i32, i32
  }
  func.func @transform_5(%arg0: i32) -> (i32, i32) {
    %c0_i32 = arith.constant 0 : i32
    %c0_i32_0 = arith.constant 0 : i32
    %c0_i32_1 = arith.constant 0 : i32
    return %c0_i32, %c0_i32_0 : i32, i32
  }
  func.func @transform_6(%arg0: i32) -> (i32, i32) {
    %c0_i32 = arith.constant 0 : i32
    %c0_i32_0 = arith.constant 0 : i32
    %c0_i32_1 = arith.constant 0 : i32
    return %c0_i32, %c0_i32_0 : i32, i32
  }
  func.func @transform_7(%arg0: i32) -> (i32, i32) {
    %c0_i32 = arith.constant 0 : i32
    %c0_i32_0 = arith.constant 0 : i32
    %c0_i32_1 = arith.constant 0 : i32
    return %c0_i32, %c0_i32_0 : i32, i32
  }
  func.func @transform_8(%arg0: i32) -> (i32, i32) {
    %c0_i32 = arith.constant 0 : i32
    %c0_i32_0 = arith.constant 0 : i32
    %c0_i32_1 = arith.constant 0 : i32
    return %c0_i32, %c0_i32_0 : i32, i32
  }
  func.func @transform_9(%arg0: i32) -> (i32, i32, i32) {
    %c0_i32 = arith.constant 0 : i32
    %c0_i32_0 = arith.constant 0 : i32
    %c0_i32_1 = arith.constant 0 : i32
    return %arg0, %c0_i32, %c0_i32_0 : i32, i32, i32
  }
}

</mosaic_0001>

<bundles_post_ra>
// kernel: tpu_custom_call.1
= control target key start
LH: loop header
LB: loop body
LE: loop exit
PB: predicated region body
PF: predicated region fallthrough
CT: control target
= control target key end

     0   :  { %s4586_s30 = smov 0   ;;  %s5971_s0 = inlined_call_operand.vmem [shape: bf16[2,16,1024], index: 0, kind: input, shape index: {}]   ;;  %s5972_s1 = inlined_call_operand.vmem [shape: bf16[16,112], index: 1, kind: input, shape index: {}]   ;;  %s5973_s2 = inlined_call_operand.vmem [shape: bf16[16,48], index: 2, kind: input, shape index: {}]   ;;  %s5974_s3 = inlined_call_operand.vmem [shape: bf16[16,80], index: 3, kind: input, shape index: {}]   ;;  %s5975_s4 = inlined_call_operand.vmem [shape: bf16[16,48], index: 4, kind: input, shape index: {}]   ;;  %s5976_s5 = inlined_call_operand.vmem [shape: f32[16,8], index: 5, kind: input, shape index: {}]   ;;  %s5977_s6 = inlined_call_operand.vmem [shape: f32[8,1024], index: 6, kind: input, shape index: {}]   ;;  %s5978_s7 = inlined_call_operand.vmem [shape: bf16[128,32], index: 7, kind: input, shape index: {}]   ;;  %s5979_s8 = inlined_call_operand.vmem [shape: f32[128,1], index: 8, kind: input, shape index: {}]   ;;  %s5980_s9 = inlined_call_operand.vmem [shape: f32[2,128,8], index: 9, kind: output, shape index: {}]  }
   0x1 LB: > { %s4087_s10 = sadd.s32 4294967295, %s4508_s30   ;;  %p4091_p0 = scmp.ge.s32.totalorder %s4508_s30, 1  ;;  %s4508_s30 = sphi %s4586_s30, %s19_s30  }
   0x2   : > { %p287_p1 = scmp.lt.s32.totalorder %s4508_s30, 3 }
   0x4   : > { %p288_p2 = pnand %p4091_p0, %p287_p1 }
   0x5   : > { %v4510_v0 = vmov (!%p288_p2), 0   ;;  %s4511_s11 = smov (!%p288_p2), 3   ;;  %p323_p3 = scmp.lt.s32.totalorder (!%p288_p2), %s4087_s10, 1  ;;  %v4737_v17 = vld [vmem:[%s5976_s5 + $0x8] sm:$0xff] (!%p288_p2)  ;;  %v4747_v18 = vld [vmem:[%s5976_s5] sm:$0xff] (!%p288_p2)  ;;  %v4517_v19 = vmov (!%p288_p2), 1  }
   0x6   : > { %291 = sbr.rel (%p288_p2) target bundleno = 2467 (0x9a3), region = 56  ;;  %412 = vrot.lane.b32.xlu1 (!%p288_p2), %v4510_v0, %s4511_s11  ;;  %875 = vmatprep.mubr.bf16.mxu0 (!%p288_p2), %v4510_v0  ;;  %s4512_s12 = smov (!%p288_p2), 2   ;;  %vm430_vm0 = vcmask (!%p288_p2), 23552   ;;  %vm491_vm1 = vcmask (!%p288_p2), 15360   ;;  %vm552_vm2 = vcmask (!%p288_p2), 7168   ;;  %vm629_vm3 = vcmask (!%p288_p2), 1039360  }
   0x7   : > { %918 = vmatprep.mubr.bf16.mxu1 (!%p288_p2), %v4510_v0  ;;  %4235 = vset.pattern.permute.xlu1 (!%p288_p2), %v4510_v0  ;;  %s4513_s17 = smov (!%p288_p2), 1   ;;  %s4514_s18 = smov (!%p288_p2), 127   ;;  %vm690_vm4 = vcmask (!%p288_p2), 1031168   ;;  %vm751_vm5 = vcmask (!%p288_p2), 1022976   ;;  %vm839_vm6 = vcmask (!%p288_p2), 916480  }
   0x8   : > { %4234 = vset.pattern.permute.xlu0 (!%p288_p2), %v4510_v0  ;;  %s4515_s19 = smov (!%p288_p2), 126   ;;  %s4516_s20 = smov (!%p288_p2), 125  }
   0x9   : > { %s4519_s21 = smov (!%p288_p2), 4   ;;  %s4520_s22 = smov (!%p288_p2), 8  }
   0xa   : > { %473 = vrot.lane.b32.xlu1 (!%p288_p2), %v4510_v0, %s4512_s12  ;;  %s4521_s23 = smov (!%p288_p2), 120   ;;  %s4522_s24 = smov (!%p288_p2), 124  }
   0xb   : > { %s4528_s27 = smov (!%p288_p2), 5   ;;  %s4529_s28 = smov (!%p288_p2), 112  }
   0xc   : > { %s4530_s29 = smov (!%p288_p2), 117   ;;  %s4532_s14 = smov (!%p288_p2), 116  }
   0xd   : > { %s5982_s10 = smov (!%p323_p3, %s4087_s10), 1 }
   0xe   : > { %s4164_s13 = sshll.u32 %s5982_s10, 6 }
   0xf   : > { %s4608_s16 = scalar_lea.vmem %s5971_s0, %s4164_s13  ;;  %s4531_s13 = smov 119  }
  0x10   : > { %v338_v1 = vld [vmem:[%s4608_s16] sm:$0xff]  ;;  %v339_v4 = vld [vmem:[%s4608_s16 + $0x8] sm:$0xff]  ;;  %v340_v9 = vld [vmem:[%s4608_s16 + $0x10] sm:$0xff] }
  0x11   : > { %v342_v2 = vld [vmem:[%s4608_s16 + $0x20] sm:$0xff]  ;;  %v343_v5 = vld [vmem:[%s4608_s16 + $0x28] sm:$0xff]  ;;  %v344_v10 = vld [vmem:[%s4608_s16 + $0x30] sm:$0xff] }
  0x12   : > { %v4612_v3 = vcombine.low %v338_v1, %v342_v2  ;;  %v4620_v6 = vcombine.high %v338_v1, %v342_v2  ;;  %v4626_v7 = vcombine.low %v339_v4, %v343_v5  ;;  %v4640_v8 = vcombine.high %v339_v4, %v343_v5  ;;  %v341_v13 = vld [vmem:[%s4608_s16 + $0x18] sm:$0xff]  ;;  %v4785_v1 = vld [vmem:[%s5972_s1] sm:$0xff]  }
  0x13   : > { %v4664_v11 = vcombine.low %v340_v9, %v344_v10  ;;  %v4670_v12 = vcombine.high %v340_v9, %v344_v10  ;;  %v345_v14 = vld [vmem:[%s4608_s16 + $0x38] sm:$0xff] }
  0x14   : > { %475 = vrot.lane.b32.xlu1 %v4612_v3, %s4512_s12  ;;  %414 = vrot.lane.b32.xlu0 %v4612_v3, %s4511_s11  ;;  %v4694_v15 = vcombine.high %v341_v13, %v345_v14  ;;  %v4702_v16 = vcombine.low %v341_v13, %v345_v14 }
  0x18   : > { %538 = vrot.lane.b32.xlu1 %v4620_v6, %s4513_s17  ;;  %416 = vrot.lane.b32.xlu0 %v4620_v6, %s4511_s11 }
  0x1c   : > { %418 = vrot.lane.b32.xlu1 %v4626_v7, %s4511_s11  ;;  %477 = vrot.lane.b32.xlu0 %v4620_v6, %s4512_s12 }
  0x20   : > { %479 = vrot.lane.b32.xlu1 %v4626_v7, %s4512_s12  ;;  %536 = vrot.lane.b32.xlu0 %v4612_v3, %s4513_s17 }
  0x24   : > { %534 = vrot.lane.b32.xlu0 %v4510_v0, %s4513_s17  ;;  %613 = vrot.lane.b32.xlu1 %v4620_v6, %s4514_s18 }
  0x28   : > { %420 = vrot.lane.b32.xlu0 %v4640_v8, %s4511_s11  ;;  %611 = vrot.lane.b32.xlu1 %v4612_v3, %s4514_s18 }
  0x2c   : > { %481 = vrot.lane.b32.xlu0 %v4640_v8, %s4512_s12  ;;  %542 = vrot.lane.b32.xlu1 %v4640_v8, %s4513_s17 }
  0x30   : > { %615 = vrot.lane.b32.xlu0 %v4626_v7, %s4514_s18  ;;  %676 = vrot.lane.b32.xlu1 %v4626_v7, %s4515_s19 }
  0x34   : > { %540 = vrot.lane.b32.xlu0 %v4626_v7, %s4513_s17  ;;  %735 = vrot.lane.b32.xlu1 %v4620_v6, %s4516_s20 }
  0x38   : > { %674 = vrot.lane.b32.xlu0 %v4620_v6, %s4515_s19  ;;  %733 = vrot.lane.b32.xlu1 %v4612_v3, %s4516_s20 }
  0x3c   : > { %672 = vrot.lane.b32.xlu0 %v4612_v3, %s4515_s19  ;;  %619 = vrot.lane.b32.xlu1 %v4664_v11, %s4514_s18 }
  0x40   : > { %737 = vrot.lane.b32.xlu0 %v4626_v7, %s4516_s20  ;;  %424 = vrot.lane.b32.xlu1 %v4670_v12, %s4511_s11 }
  0x44   : > { %617 = vrot.lane.b32.xlu0 %v4640_v8, %s4514_s18  ;;  %680 = vrot.lane.b32.xlu1 %v4664_v11, %s4515_s19 }
  0x48   : > { %422 = vrot.lane.b32.xlu0 %v4664_v11, %s4511_s11  ;;  %485 = vrot.lane.b32.xlu1 %v4670_v12, %s4512_s12 }
  0x4c   : > { %678 = vrot.lane.b32.xlu0 %v4640_v8, %s4515_s19  ;;  %741 = vrot.lane.b32.xlu1 %v4664_v11, %s4516_s20 }
  0x50   : > { %483 = vrot.lane.b32.xlu0 %v4664_v11, %s4512_s12  ;;  %546 = vrot.lane.b32.xlu1 %v4670_v12, %s4513_s17 }
  0x54   : > { %739 = vrot.lane.b32.xlu0 %v4640_v8, %s4516_s20  ;;  %428 = vrot.lane.b32.xlu1 %v4694_v15, %s4511_s11 }
  0x58   : > { %544 = vrot.lane.b32.xlu0 %v4664_v11, %s4513_s17  ;;  %489 = vrot.lane.b32.xlu1 %v4694_v15, %s4512_s12 }
  0x5c   : > { %426 = vrot.lane.b32.xlu0 %v4702_v16, %s4511_s11  ;;  %623 = vrot.lane.b32.xlu1 %v4702_v16, %s4514_s18 }
  0x60   : > { %487 = vrot.lane.b32.xlu0 %v4702_v16, %s4512_s12  ;;  %550 = vrot.lane.b32.xlu1 %v4694_v15, %s4513_s17 }
  0x64   : > { %621 = vrot.lane.b32.xlu0 %v4670_v12, %s4514_s18  ;;  %684 = vrot.lane.b32.xlu1 %v4702_v16, %s4515_s19 }
  0x68   : > { %548 = vrot.lane.b32.xlu0 %v4702_v16, %s4513_s17  ;;  %745 = vrot.lane.b32.xlu1 %v4702_v16, %s4516_s20 }
  0x6c   : > { %682 = vrot.lane.b32.xlu0 %v4670_v12, %s4515_s19  ;;  %627 = vrot.lane.b32.xlu1 %v4510_v0, %s4514_s18 }
  0x70   : > { %743 = vrot.lane.b32.xlu0 %v4670_v12, %s4516_s20  ;;  %688 = vrot.lane.b32.xlu1 %v4510_v0, %s4515_s19 }
  0x74   : > { %625 = vrot.lane.b32.xlu0 %v4694_v15, %s4514_s18  ;;  %749 = vrot.lane.b32.xlu1 %v4510_v0, %s4516_s20 }
  0x78   : > { %686 = vrot.lane.b32.xlu0 %v4694_v15, %s4515_s19  ;;  %1022 = vperm.xlu1 %4235, %v4737_v17   ;;  %v413_v20 = vpop.permute.xlu1 %412 }
  0x7c   : > { %747 = vrot.lane.b32.xlu0 %v4694_v15, %s4516_s20  ;;  %4236 = vset.pattern.permute.xlu1 %v4517_v19  ;;  %v474_v21 = vpop.permute.xlu1 %473  ;;  %s4535_s20 = smov 118  }
  0x7d   : > { %1045 = vperm.xlu1 %4236, %v4747_v18  }
  0x80   : > { %1017 = vperm.xlu0 %4234, %v4747_v18  }
  0x84   : > { %4237 = vset.pattern.permute.xlu0 %v4517_v19 }
  0x85   : > { %1050 = vperm.xlu0 %4237, %v4737_v17  }
  0x86   : > { %v476_v22 = vpop.permute.xlu1 %475  ;;  %v415_v23 = vpop.permute.xlu0 %414 }
  0x87   : > { %v431_v27 = vsel %vm430_vm0, %v413_v20, %v415_v23  ;;  %v492_v31 = vsel %vm491_vm1, %v474_v21, %v476_v22 }
  0x8a   : > { %v539_v24 = vpop.permute.xlu1 %538  ;;  %v417_v25 = vpop.permute.xlu0 %416 }
  0x8b   : > { %v432_v26 = vsel %vm430_vm0, %v415_v23, %v417_v25 }
  0x8c   : > { %843 = vmatprep.subr.bf16.mxu0 %v432_v26 }
  0x8d   : > { %844 = vmatpush1.bf16.msra.mxu0 %v431_v27 }
  0x8e   : > { %v419_v28 = vpop.permute.xlu1 %418  ;;  %v478_v29 = vpop.permute.xlu0 %477 }
  0x8f   : > { %v493_v30 = vsel %vm491_vm1, %v476_v22, %v478_v29  ;;  %v433_v41 = vsel %vm430_vm0, %v417_v25, %v419_v28 }
  0x90   : > { %845 = vmatprep.subr.bf16.mxu0 %v493_v30 }
  0x91   : > { %846 = vmatpush1.bf16.msra.mxu0 %v492_v31 }
  0x92   : > { %v480_v32 = vpop.permute.xlu1 %479  ;;  %v537_v33 = vpop.permute.xlu0 %536 }
  0x93   : > { %v554_v34 = vsel %vm552_vm2, %v537_v33, %v539_v24  ;;  %v494_v45 = vsel %vm491_vm1, %v478_v29, %v480_v32 }
  0x94   : > { %847 = vmatprep.subr.bf16.mxu0 %v554_v34 }
  0x96   : > { %v535_v35 = vpop.permute.xlu0 %534  ;;  %v614_v36 = vpop.permute.xlu1 %613 }
  0x97   : > { %v553_v37 = vsel %vm552_vm2, %v535_v35, %v537_v33 }
  0x98   : > { %848 = vmatpush1.bf16.msra.mxu0 %v553_v37 }
  0x99   : > { %849 = vmatprep.subr.bf16.mxu0 %v4620_v6 }
  0x9a   : > { %v421_v38 = vpop.permute.xlu0 %420  ;;  %v612_v39 = vpop.permute.xlu1 %611 }
  0x9b   : > { %v434_v40 = vsel %vm430_vm0, %v419_v28, %v421_v38  ;;  %v630_v49 = vsel %vm629_vm3, %v612_v39, %v614_v36 }
  0x9c   : > { %886 = vmatprep.subr.bf16.mxu1 %v434_v40  ;;  %850 = vmatpush1.bf16.msra.mxu0 %v4612_v3 }
  0x9d   : > { %887 = vmatpush1.bf16.msra.mxu1 %v433_v41 }
  0x9e   : > { %v4762_v42 = vpop.permute.xlu0 %481  ;;  %v4764_v43 = vpop.permute.xlu1 %542 }
  0x9f   : > { %v495_v44 = vsel %vm491_vm1, %v480_v32, %v4762_v42 }
  0xa0   : > { %888 = vmatprep.subr.bf16.mxu1 %v495_v44 }
  0xa1   : > { %889 = vmatpush1.bf16.msra.mxu1 %v494_v45 }
  0xa2   : > { %v616_v46 = vpop.permute.xlu0 %615  ;;  %v677_v47 = vpop.permute.xlu1 %676 }
  0xa3   : > { %v631_v48 = vsel %vm629_vm3, %v614_v36, %v616_v46 }
  0xa4   : > { %851 = vmatprep.subr.bf16.mxu0 %v631_v48 }
  0xa5   : > { %852 = vmatpush1.bf16.msra.mxu0 %v630_v49 }
  0xa6   : > { %v541_v50 = vpop.permute.xlu0 %540  ;;  %v736_v51 = vpop.permute.xlu1 %735 }
  0xa7   : > { %v556_v52 = vsel %vm552_vm2, %v541_v50, %v4764_v43  ;;  %v555_v53 = vsel %vm552_vm2, %v539_v24, %v541_v50 }
  0xa8   : > { %890 = vmatprep.subr.bf16.mxu1 %v556_v52 }
  0xa9   : > { %891 = vmatpush1.bf16.msra.mxu1 %v555_v53 }
  0xaa   : > { %v675_v54 = vpop.permute.xlu0 %674  ;;  %v734_v55 = vpop.permute.xlu1 %733  ;;  %892 = vmatprep.subr.bf16.mxu1 %v4640_v8 }
  0xab   : > { %v692_v56 = vsel %vm690_vm4, %v675_v54, %v677_v47  ;;  %v752_v63 = vsel %vm751_vm5, %v734_v55, %v736_v51 }
  0xac   : > { %853 = vmatprep.subr.bf16.mxu0 %v692_v56 }
  0xad   : > { %893 = vmatpush1.bf16.msra.mxu1 %v4626_v7 }
  0xae   : > { %v673_v57 = vpop.permute.xlu0 %672  ;;  %v4777_v58 = vpop.permute.xlu1 %619 }
  0xaf   : > { %v691_v59 = vsel %vm690_vm4, %v673_v57, %v675_v54 }
  0xb0   : > { %854 = vmatpush1.bf16.msra.mxu0 %v691_v59 }
  0xb2   : > { %v738_v60 = vpop.permute.xlu0 %737  ;;  %v425_v61 = vpop.permute.xlu1 %424 }
  0xb3   : > { %v753_v62 = vsel %vm751_vm5, %v736_v51, %v738_v60 }
  0xb4   : > { %855 = vmatprep.subr.bf16.mxu0 %v753_v62  ;;  %v1121_v62 = vlaneseq }
  0xb5   : > { %856 = vmatpush1.bf16.msra.mxu0 %v752_v63 }
  0xb6   : > { %v618_v2 = vpop.permute.xlu0 %617  ;;  %v4787_v3 = vpop.permute.xlu1 %680 }
  0xb7   : > { %v633_v4 = vsel %vm629_vm3, %v618_v2, %v4777_v58  ;;  %v632_v5 = vsel %vm629_vm3, %v616_v46, %v618_v2 }
  0xb8   : > { %4105 = vmatmul.mubr.msk.bf16.vlgmr.msra.gmra.mrb[0].mxu0 %vm839_vm6, %v4785_v1  ;;  %894 = vmatprep.subr.bf16.mxu1 %v633_v4  ;;  %v1117_v4 = vld [vmem:[%s5977_s6] ss:$8 sm:$0xf] }
  0xb9   : > { %895 = vmatpush1.bf16.msra.mxu1 %v632_v5  ;;  %961 = vmatprep.mubr.bf16.mxu0 %v4510_v0  ;;  %v1118_v5 = vld [vmem:[%s5977_s6] ss:$8 sm:$0xf0] }
  0xba   : > { %v423_v6 = vpop.permute.xlu0 %422  ;;  %v486_v7 = vpop.permute.xlu1 %485 }
  0xbb   : > { %v436_v8 = vsel %vm430_vm0, %v423_v6, %v425_v61  ;;  %v435_v9 = vsel %vm430_vm0, %v421_v38, %v423_v6 }
  0xbc   : > { %929 = vmatprep.subr.bf16.mxu0 %v436_v8 }
  0xbd   : > { %930 = vmatpush1.bf16.msra.mxu0 %v435_v9 }
  0xbe   : > { %v679_v10 = vpop.permute.xlu0 %678  ;;  %v742_v13 = vpop.permute.xlu1 %741 }
  0xbf   : > { %v694_v14 = vsel %vm690_vm4, %v679_v10, %v4787_v3  ;;  %v693_v19 = vsel %vm690_vm4, %v677_v47, %v679_v10 }
  0xc0   : > { %896 = vmatprep.subr.bf16.mxu1 %v694_v14 }
  0xc1   : > { %897 = vmatpush1.bf16.msra.mxu1 %v693_v19 }
  0xc2   : > { %v484_v20 = vpop.permute.xlu0 %483  ;;  %v547_v21 = vpop.permute.xlu1 %546 }
  0xc3   : > { %v497_v22 = vsel %vm491_vm1, %v484_v20, %v486_v7  ;;  %v496_v23 = vsel %vm491_vm1, %v4762_v42, %v484_v20 }
  0xc4   : > { %931 = vmatprep.subr.bf16.mxu0 %v497_v22 }
  0xc5   : > { %932 = vmatpush1.bf16.msra.mxu0 %v496_v23 }
  0xc6   : > { %v740_v24 = vpop.permute.xlu0 %739  ;;  %v429_v25 = vpop.permute.xlu1 %428 }
  0xc7   : > { %v755_v26 = vsel %vm751_vm5, %v740_v24, %v742_v13  ;;  %v754_v27 = vsel %vm751_vm5, %v738_v60, %v740_v24 }
  0xc8   : > { %898 = vmatprep.subr.bf16.mxu1 %v755_v26 }
  0xc9   : > { %899 = vmatpush1.bf16.msra.mxu1 %v754_v27 }
  0xca   : > { %v545_v28 = vpop.permute.xlu0 %544  ;;  %v490_v29 = vpop.permute.xlu1 %489 }
  0xcb   : > { %v558_v30 = vsel %vm552_vm2, %v545_v28, %v547_v21  ;;  %v557_v31 = vsel %vm552_vm2, %v4764_v43, %v545_v28 }
  0xcc   : > { %4106 = vmatmul.mubr.msk.bf16.vlgmr.msra.gmra.mrb[0].mxu1 %vm839_vm6, %v4785_v1  ;;  %933 = vmatprep.subr.bf16.mxu0 %v558_v30 }
  0xcd   : > { %934 = vmatpush1.bf16.msra.mxu0 %v557_v31  ;;  %1004 = vmatprep.mubr.bf16.mxu1 %v4510_v0 }
  0xce   : > { %v427_v32 = vpop.permute.xlu0 %426  ;;  %935 = vmatprep.subr.bf16.mxu0 %v4670_v12  ;;  %v624_v33 = vpop.permute.xlu1 %623 }
  0xcf   : > { %v438_v34 = vsel %vm430_vm0, %v427_v32, %v429_v25  ;;  %v437_v35 = vsel %vm430_vm0, %v425_v61, %v427_v32 }
  0xd0   : > { %972 = vmatprep.subr.bf16.mxu1 %v438_v34 }
  0xd1   : > { %973 = vmatpush1.bf16.msra.mxu1 %v437_v35  ;;  %936 = vmatpush1.bf16.msra.mxu0 %v4664_v11 }
  0xd2   : > { %v488_v36 = vpop.permute.xlu0 %487  ;;  %v551_v37 = vpop.permute.xlu1 %550 }
  0xd3   : > { %v499_v38 = vsel %vm491_vm1, %v488_v36, %v490_v29  ;;  %v498_v39 = vsel %vm491_vm1, %v486_v7, %v488_v36 }
  0xd4   : > { %974 = vmatprep.subr.bf16.mxu1 %v499_v38 }
  0xd5   : > { %975 = vmatpush1.bf16.msra.mxu1 %v498_v39 }
  0xd6   : > { %v622_v40 = vpop.permute.xlu0 %621  ;;  %v685_v41 = vpop.permute.xlu1 %684 }
  0xd7   : > { %v635_v12 = vsel %vm629_vm3, %v622_v40, %v624_v33  ;;  %v634_v42 = vsel %vm629_vm3, %v4777_v58, %v622_v40 }
  0xd8   : > { %937 = vmatprep.subr.bf16.mxu0 %v635_v12  ;;  %v4886_v12 = vunpack.c.l.bf16 %v4510_v0 }
  0xd9   : > { %938 = vmatpush1.bf16.msra.mxu0 %v634_v42  ;;  %v4889_v42 = vunpack.c.h.bf16 %v4510_v0 }
  0xda   : > { %v549_v43 = vpop.permute.xlu0 %548  ;;  %v746_v44 = vpop.permute.xlu1 %745 }
  0xdb   : > { %v560_v11 = vsel %vm552_vm2, %v549_v43, %v551_v37  ;;  %v559_v45 = vsel %vm552_vm2, %v547_v21, %v549_v43 }
  0xdc   : > { %976 = vmatprep.subr.bf16.mxu1 %v560_v11 }
  0xdd   : > { %977 = vmatpush1.bf16.msra.mxu1 %v559_v45 }
  0xde   : > { %v683_v46 = vpop.permute.xlu0 %682  ;;  %978 = vmatprep.subr.bf16.mxu1 %v4694_v15  ;;  %v628_v49 = vpop.permute.xlu1 %627 }
  0xdf   : > { %v696_v47 = vsel %vm690_vm4, %v683_v46, %v685_v41  ;;  %v695_v48 = vsel %vm690_vm4, %v4787_v3, %v683_v46  ;;  %v4845_v3 = vshrl.u32 %v1121_v62, 7 }
  0xe0   : > { %939 = vmatprep.subr.bf16.mxu0 %v696_v47 }
  0xe1   : > { %940 = vmatpush1.bf16.msra.mxu0 %v695_v48  ;;  %979 = vmatpush1.bf16.msra.mxu1 %v4702_v16  ;;  %v4858_v8 = vsub.s32 0, %v4845_v3  ;;  %v4901_v48 = vsub.s32 2, %v4845_v3 }
  0xe2   : > { %v744_v50 = vpop.permute.xlu0 %743  ;;  %v689_v54 = vpop.permute.xlu1 %688 }
  0xe3   : > { %v757_v51 = vsel %vm751_vm5, %v744_v50, %v746_v44  ;;  %v756_v52 = vsel %vm751_vm5, %v742_v13, %v744_v50  ;;  %v4862_v13 = vsub.s32 1, %v4845_v3 }
  0xe4   : > { %941 = vmatprep.subr.bf16.mxu0 %v757_v51 }
  0xe5   : > { %942 = vmatpush1.bf16.msra.mxu0 %v756_v52  ;;  %v4907_v52 = vsub.s32 3, %v4845_v3 }
  0xe6   : > { %v626_v53 = vpop.permute.xlu0 %625  ;;  %v750_v58 = vpop.permute.xlu1 %749 }
  0xe7   : > { %v637_v15 = vsel %vm629_vm3, %v626_v53, %v628_v49  ;;  %v636_v55 = vsel %vm629_vm3, %v624_v33, %v626_v53 }
  0xe8   : > { %4107 = vmatmul.mubr.msk.bf16.vlgmr.msra.gmra.mrb[4].mxu0 %vm839_vm6, %v4785_v1  ;;  %980 = vmatprep.subr.bf16.mxu1 %v637_v15 }
  0xe9   : > { %981 = vmatpush1.bf16.msra.mxu1 %v636_v55  ;;  %1558 = vmatprep.mubr.bf16.mxu0 %v4510_v0 }
  0xea   : > { %v687_v16 = vpop.permute.xlu0 %686 }
  0xeb   : > { %v698_v56 = vsel %vm690_vm4, %v687_v16, %v689_v54  ;;  %v697_v57 = vsel %vm690_vm4, %v685_v41, %v687_v16 }
  0xec   : > { %982 = vmatprep.subr.bf16.mxu1 %v698_v56 }
  0xed   : > { %983 = vmatpush1.bf16.msra.mxu1 %v697_v57 }
  0xee   : > { %v748_v59 = vpop.permute.xlu0 %747 }
  0xef   : > { %v759_v60 = vsel %vm751_vm5, %v748_v59, %v750_v58  ;;  %v758_v61 = vsel %vm751_vm5, %v746_v44, %v748_v59 }
  0xf0   : > { %984 = vmatprep.subr.bf16.mxu1 %v759_v60 }
  0xf1   : > { %985 = vmatpush1.bf16.msra.mxu1 %v758_v61 }
  0xf4   : > { %4108 = vmatmul.mubr.msk.bf16.vlgmr.msra.gmra.mrb[4].mxu1 %vm839_vm6, %v4785_v1  ;;  %v4855_v1 = vor.u32 %v1118_v5, %v1117_v4 }
  0xf5   : > { %1601 = vmatprep.mubr.bf16.mxu1 %v4510_v0 }
  0xf6   : > { %v1124_v25 = vrot.slane %v4855_v1, %v4858_v8  ;;  %v1128_v29 = vrot.slane %v4855_v1, %v4862_v13  ;;  %v1132_v57 = vrot.slane %v4855_v1, %v4901_v48  ;;  %v1136_v61 = vrot.slane %v4855_v1, %v4907_v52 }
  0xf7   : > { %v4841_v63 = vpop.permute.xlu1 %1022 }
  0xfc   : > { %v4853_v7 = vpop.permute.xlu1 %1045 }
  0xff   : > { %v4843_v2 = vpop.permute.xlu0 %1017 }
 0x104   : > { %v4865_v20 = vpop.permute.xlu0 %1050 }
 0x18b   : > { %v877_v6 = vpop.f32.mrb[0].mxu0 }
 0x18c   : > { %v879_v9 = vpop.f32.mrb[1].mxu0  ;;  %v1025_v10 = vmul.f32 %v4843_v2, %v877_v6 }
 0x18d   : > { %v1026_v14 = vmul.f32 %v4843_v2, %v879_v9  ;;  %v881_v19 = vpop.f32.mrb[2].mxu0 }
 0x18e   : > { %v1033_v21 = vmul.f32 %v4841_v63, %v881_v19  ;;  %v883_v22 = vpop.f32.mrb[3].mxu0  ;;  %v1053_v23 = vadd.f32 %v4853_v7, %v1025_v10 }
 0x18f   : > { %v1034_v24 = vmul.f32 %v4841_v63, %v883_v22  ;;  %v1054_v26 = vadd.f32 %v4853_v7, %v1026_v14 }
 0x190   : > { %v1061_v27 = vadd.f32 %v4865_v20, %v1033_v21  ;;  %vm1069_vm7 = vcmp.gt.f32.partialorder %v1053_v23, 0.0  ;;  %v1085_v28 = vmul.f32 0.01, %v1053_v23 }
 0x191   : > { %v1062_v30 = vadd.f32 %v4865_v20, %v1034_v24  ;;  %vm1070_vm8 = vcmp.gt.f32.partialorder %v1054_v26, 0.0  ;;  %v1086_v31 = vmul.f32 0.01, %v1054_v26 }
 0x192   : > { %vm1077_vm9 = vcmp.gt.f32.partialorder %v1061_v27, 0.0  ;;  %v1093_v32 = vmul.f32 0.01, %v1061_v27  ;;  %v1101_v33 = vsel %vm1069_vm7, %v1053_v23, %v1085_v28 }
 0x193   : > { %v4877_v34 = vmul.f32 %v1124_v25, %v1101_v33  ;;  %vm1078_vm10 = vcmp.gt.f32.partialorder %v1062_v30, 0.0  ;;  %v1094_v35 = vmul.f32 0.01, %v1062_v30  ;;  %v1102_v36 = vsel %vm1070_vm8, %v1054_v26, %v1086_v31 }
 0x194   : > { %v1109_v37 = vsel %vm1077_vm9, %v1061_v27, %v1093_v32  ;;  %v4879_v38 = vmul.f32 %v1128_v29, %v1102_v36  ;;  %v4934_v27 = vsub.s32 4, %v4845_v3  ;;  %v4939_v31 = vsub.s32 5, %v4845_v3 }
 0x195   : > { %v4881_v39 = vmul.f32 %v1124_v25, %v1109_v37  ;;  %v1110_v40 = vsel %vm1078_vm10, %v1062_v30, %v1094_v35  ;;  %v4238_v43 = vpack.i.bf16 %v4877_v34, %v4886_v12 }
 0x196   : > { %v4883_v41 = vmul.f32 %v1128_v29, %v1110_v40  ;;  %v4243_v11 = vpack.i.bf16 %v4889_v42, %v4879_v38 }
 0x197   : > { %4239 = vrot.lane.b32.xlu1 %v4238_v43, %s4513_s17  ;;  %v1140_v43 = vrot.slane %v4855_v1, %v4934_v27 }
 0x198   : > { %v4248_v44 = vpack.i.bf16 %v4883_v41, %v4881_v39 }
 0x19a   : > { %4249 = vrot.lane.b32.xlu0 %v4248_v44, %s4513_s17 }
 0x19b   : > { %4244 = vrot.lane.b32.xlu1 %v4243_v11, %s4513_s17 }
 0x19f   : > { %v920_v45 = vpop.f32.mrb[0].mxu1 }
 0x1a0   : > { %v1027_v46 = vmul.f32 %v4843_v2, %v920_v45  ;;  %v922_v47 = vpop.f32.mrb[1].mxu1 }
 0x1a1   : > { %v1028_v49 = vmul.f32 %v4843_v2, %v922_v47  ;;  %v924_v50 = vpop.f32.mrb[2].mxu1 }
 0x1a2   : > { %v1055_v51 = vadd.f32 %v4853_v7, %v1027_v46  ;;  %v1035_v53 = vmul.f32 %v4841_v63, %v924_v50  ;;  %v926_v54 = vpop.f32.mrb[3].mxu1  ;;  %v1144_v46 = vrot.slane %v4855_v1, %v4939_v31 }
 0x1a3   : > { %v1056_v15 = vadd.f32 %v4853_v7, %v1028_v49  ;;  %v1036_v55 = vmul.f32 %v4841_v63, %v926_v54 }
 0x1a4   : > { %vm1071_vm11 = vcmp.gt.f32.partialorder %v1055_v51, 0.0  ;;  %v1087_v16 = vmul.f32 0.01, %v1055_v51  ;;  %v1063_v56 = vadd.f32 %v4865_v20, %v1035_v53 }
 0x1a5   : > { %vm1072_vm12 = vcmp.gt.f32.partialorder %v1056_v15, 0.0  ;;  %v1088_v58 = vmul.f32 0.01, %v1056_v15  ;;  %v1064_v59 = vadd.f32 %v4865_v20, %v1036_v55 }
 0x1a6   : > { %v1103_v60 = vsel %vm1071_vm11, %v1055_v51, %v1087_v16  ;;  %vm1079_vm13 = vcmp.gt.f32.partialorder %v1063_v56, 0.0  ;;  %v1095_v62 = vmul.f32 0.01, %v1063_v56  ;;  %vm1522_vm11 = vcmask 392192  }
 0x1a7   : > { %v1104_v4 = vsel %vm1072_vm12, %v1056_v15, %v1088_v58  ;;  %vm1080_vm14 = vcmp.gt.f32.partialorder %v1064_v59, 0.0  ;;  %v1096_v5 = vmul.f32 0.01, %v1064_v59  ;;  %v4918_v9 = vmul.f32 %v1132_v57, %v1103_v60 }
 0x1a8   : > { %v1111_v6 = vsel %vm1079_vm13, %v1063_v56, %v1095_v62  ;;  %v4922_v19 = vmul.f32 %v1136_v61, %v1104_v4  ;;  %v4960_v58 = vsub.s32 6, %v4845_v3 }
 0x1a9   : > { %v4920_v10 = vmul.f32 %v1132_v57, %v1111_v6  ;;  %v1112_v14 = vsel %vm1080_vm14, %v1064_v59, %v1096_v5 }
 0x1aa   : > { %v4924_v21 = vmul.f32 %v1136_v61, %v1112_v14  ;;  %v4253_v23 = vpack.i.bf16 %v4922_v19, %v4918_v9  ;;  %v4964_v61 = vsub.s32 7, %v4845_v3 }
 0x1ac   : > { %v4258_v22 = vpack.i.bf16 %v4924_v21, %v4920_v10  ;;  %4254 = vrot.lane.b32.xlu1 %v4253_v23, %s4513_s17 }
 0x1ae   : > { %4259 = vrot.lane.b32.xlu0 %v4258_v22, %s4513_s17 }
 0x1bb   : > { %v963_v24 = vpop.f32.mrb[4].mxu0 }
 0x1bc   : > { %v1029_v25 = vmul.f32 %v4843_v2, %v963_v24  ;;  %v965_v26 = vpop.f32.mrb[5].mxu0 }
 0x1bd   : > { %v1030_v28 = vmul.f32 %v4843_v2, %v965_v26  ;;  %v967_v29 = vpop.f32.mrb[6].mxu0  ;;  %v1148_v26 = vrot.slane %v4855_v1, %v4960_v58 }
 0x1be   : > { %v1057_v30 = vadd.f32 %v4853_v7, %v1029_v25  ;;  %v1037_v32 = vmul.f32 %v4841_v63, %v967_v29  ;;  %v969_v33 = vpop.f32.mrb[7].mxu0 }
 0x1bf   : > { %v1058_v35 = vadd.f32 %v4853_v7, %v1030_v28  ;;  %v1038_v36 = vmul.f32 %v4841_v63, %v969_v33 }
 0x1c0   : > { %vm1073_vm15 = vcmp.gt.f32.partialorder %v1057_v30, 0.0  ;;  %v1089_v37 = vmul.f32 0.01, %v1057_v30  ;;  %v1065_v40 = vadd.f32 %v4865_v20, %v1037_v32 }
 0x1c1   : > { %vm1074_vm3 = vcmp.gt.f32.partialorder %v1058_v35, 0.0  ;;  %v1090_v44 = vmul.f32 0.01, %v1058_v35  ;;  %v1066_v11 = vadd.f32 %v4865_v20, %v1038_v36 }
 0x1c2   : > { %v1105_v45 = vsel %vm1073_vm15, %v1057_v30, %v1089_v37  ;;  %vm1081_vm5 = vcmp.gt.f32.partialorder %v1065_v40, 0.0  ;;  %v1097_v47 = vmul.f32 0.01, %v1065_v40  ;;  %v1152_v30 = vrot.slane %v4855_v1, %v4964_v61 }
 0x1c3   : > { %v1106_v49 = vsel %vm1074_vm3, %v1058_v35, %v1090_v44  ;;  %vm1082_vm6 = vcmp.gt.f32.partialorder %v1066_v11, 0.0  ;;  %v1098_v50 = vmul.f32 0.01, %v1066_v11  ;;  %v4950_v53 = vmul.f32 %v1140_v43, %v1105_v45 }
 0x1c4   : > { %v1113_v51 = vsel %vm1081_vm5, %v1065_v40, %v1097_v47  ;;  %v4954_v55 = vmul.f32 %v1144_v46, %v1106_v49 }
 0x1c5   : > { %v4952_v54 = vmul.f32 %v1140_v43, %v1113_v51  ;;  %v1114_v15 = vsel %vm1082_vm6, %v1066_v11, %v1098_v50 }
 0x1c6   : > { %v4956_v16 = vmul.f32 %v1144_v46, %v1114_v15 }
 0x1c7   : > { %v1006_v56 = vpop.f32.mrb[4].mxu1  ;;  %v4263_v23 = vpack.i.bf16 %v4952_v54, %v4950_v53 }
 0x1c8   : > { %v1031_v57 = vmul.f32 %v4843_v2, %v1006_v56  ;;  %v1008_v59 = vpop.f32.mrb[5].mxu1  ;;  %v4268_v3 = vpack.i.bf16 %v4956_v16, %v4954_v55 }
 0x1c9   : > { %v1032_v60 = vmul.f32 %v4843_v2, %v1008_v59  ;;  %v1010_v62 = vpop.f32.mrb[6].mxu1  ;;  %4264 = vrot.lane.b32.xlu1 %v4263_v23, %s4513_s17 }
 0x1ca   : > { %v1059_v4 = vadd.f32 %v4853_v7, %v1031_v57  ;;  %v1039_v5 = vmul.f32 %v4841_v63, %v1010_v62  ;;  %v1012_v6 = vpop.f32.mrb[7].mxu1  ;;  %4269 = vrot.lane.b32.xlu0 %v4268_v3, %s4513_s17 }
 0x1cb   : > { %v1060_v14 = vadd.f32 %v4853_v7, %v1032_v60  ;;  %v1040_v22 = vmul.f32 %v4841_v63, %v1012_v6 }
 0x1cc   : > { %vm1075_vm7 = vcmp.gt.f32.partialorder %v1059_v4, 0.0  ;;  %v1091_v24 = vmul.f32 0.01, %v1059_v4  ;;  %v1067_v25 = vadd.f32 %v4865_v20, %v1039_v5 }
 0x1cd   : > { %vm1076_vm8 = vcmp.gt.f32.partialorder %v1060_v14, 0.0  ;;  %v1092_v28 = vmul.f32 0.01, %v1060_v14  ;;  %v1068_v29 = vadd.f32 %v4865_v20, %v1040_v22 }
 0x1ce   : > { %v1107_v7 = vsel %vm1075_vm7, %v1059_v4, %v1091_v24  ;;  %vm1083_vm9 = vcmp.gt.f32.partialorder %v1067_v25, 0.0  ;;  %v1099_v32 = vmul.f32 0.01, %v1067_v25 }
 0x1cf   : > { %v1108_v33 = vsel %vm1076_vm8, %v1060_v14, %v1092_v28  ;;  %vm1084_vm10 = vcmp.gt.f32.partialorder %v1068_v29, 0.0  ;;  %v1100_v35 = vmul.f32 0.01, %v1068_v29  ;;  %v4982_v37 = vmul.f32 %v1148_v26, %v1107_v7 }
 0x1d0   : > { %v1115_v36 = vsel %vm1083_vm9, %v1067_v25, %v1099_v32  ;;  %v4986_v20 = vmul.f32 %v1152_v30, %v1108_v33 }
 0x1d1   : > { %v4984_v40 = vmul.f32 %v1148_v26, %v1115_v36  ;;  %v1116_v43 = vsel %vm1084_vm10, %v1068_v29, %v1100_v35 }
 0x1d2   : > { %v4988_v44 = vmul.f32 %v1152_v30, %v1116_v43  ;;  %v4273_v11 = vpack.i.bf16 %v4986_v20, %v4982_v37 }
 0x1d4   : > { %v4278_v1 = vpack.i.bf16 %v4988_v44, %v4984_v40  ;;  %4274 = vrot.lane.b32.xlu1 %v4273_v11, %s4513_s17 }
 0x1d6   : > { %4279 = vrot.lane.b32.xlu0 %v4278_v1, %s4513_s17 }
 0x1d8   : > { %1373 = vrot.lane.b32.xlu1 %v4510_v0, %s4512_s12 }
 0x209   : > { %v4240_v45 = vpop.permute.xlu1 %4239 }
 0x20a   : > { %v4242_v46 = vunpack.i.h.bf16 %v4240_v45  ;;  %v4241_v47 = vunpack.i.l.bf16 %v4240_v45 }
 0x20c   : > { %v4250_v49 = vpop.permute.xlu0 %4249  ;;  %v1275_v15 = vsel %vm552_vm2, %v4241_v47, %v4242_v46 }
 0x20d   : > { %v4252_v50 = vunpack.i.h.bf16 %v4250_v49  ;;  %v4251_v51 = vunpack.i.l.bf16 %v4250_v49  ;;  %v4245_v56 = vpop.permute.xlu1 %4244  ;;  %v1307_v60 = vadd.f32 %v1275_v15, %v4877_v34 }
 0x20e   : > { %v4247_v57 = vunpack.i.h.bf16 %v4245_v56  ;;  %v4246_v59 = vunpack.i.l.bf16 %v4245_v56 }
 0x20f   : > { %v1284_v5 = vsel %vm552_vm2, %v4251_v51, %v4252_v50  ;;  %v1323_v22 = vmul.f32 0.5, %v1307_v60 }
 0x210   : > { %v1283_v62 = vsel %vm552_vm2, %v4247_v57, %v4251_v51  ;;  %v1276_v4 = vsel %vm552_vm2, %v4242_v46, %v4246_v59  ;;  %v1316_v24 = vadd.f32 %v1284_v5, %v4883_v41 }
 0x211   : > { %v1315_v6 = vadd.f32 %v1283_v62, %v4881_v39  ;;  %v1308_v14 = vadd.f32 %v1276_v4, %v4879_v38 }
 0x212   : > { %v1332_v34 = vmul.f32 0.5, %v1316_v24 }
 0x213   : > { %v1331_v23 = vmul.f32 0.5, %v1315_v6  ;;  %v1324_v3 = vmul.f32 0.5, %v1308_v14 }
 0x215   : > { %v5006_v25 = vpack.c.bf16 %v1331_v23, %v1323_v22  ;;  %v5012_v26 = vpack.c.bf16 %v1332_v34, %v1324_v3 }
 0x217   : > { %1449 = vrot.lane.b32.xlu0 %v5006_v25, %s4515_s19  ;;  %1375 = vrot.lane.b32.xlu1 %v5006_v25, %s4512_s12 }
 0x21b   : > { %1377 = vrot.lane.b32.xlu0 %v5012_v26, %s4512_s12 }
 0x21e   : > { %v4255_v39 = vpop.permute.xlu1 %4254 }
 0x21f   : > { %v4257_v41 = vunpack.i.h.bf16 %v4255_v39  ;;  %v4256_v7 = vunpack.i.l.bf16 %v4255_v39 }
 0x220   : > { %v4260_v38 = vpop.permute.xlu0 %4259 }
 0x221   : > { %v4262_v28 = vunpack.i.h.bf16 %v4260_v38  ;;  %v4261_v29 = vunpack.i.l.bf16 %v4260_v38  ;;  %v1277_v30 = vsel %vm552_vm2, %v4246_v59, %v4256_v7  ;;  %v1278_v33 = vsel %vm552_vm2, %v4256_v7, %v4257_v41 }
 0x222   : > { %v1309_v36 = vadd.f32 %v1277_v30, %v4918_v9  ;;  %v1310_v1 = vadd.f32 %v1278_v33, %v4922_v19 }
 0x223   : > { %v1285_v32 = vsel %vm552_vm2, %v4252_v50, %v4261_v29  ;;  %v1286_v35 = vsel %vm552_vm2, %v4261_v29, %v4262_v28 }
 0x224   : > { %v1317_v43 = vadd.f32 %v1285_v32, %v4920_v10  ;;  %v1318_v11 = vadd.f32 %v1286_v35, %v4924_v21  ;;  %v1325_v45 = vmul.f32 0.5, %v1309_v36  ;;  %v1326_v47 = vmul.f32 0.5, %v1310_v1 }
 0x226   : > { %v1333_v46 = vmul.f32 0.5, %v1317_v43  ;;  %v1334_v49 = vmul.f32 0.5, %v1318_v11 }
 0x228   : > { %v5024_v51 = vpack.c.bf16 %v1333_v46, %v1325_v45  ;;  %v5026_v15 = vpack.c.bf16 %v1334_v49, %v1326_v47 }
 0x22a   : > { %1379 = vrot.lane.b32.xlu0 %v5024_v51, %s4512_s12  ;;  %1381 = vrot.lane.b32.xlu1 %v5026_v15, %s4512_s12 }
 0x22e   : > { %1451 = vrot.lane.b32.xlu0 %v5012_v26, %s4515_s19  ;;  %1453 = vrot.lane.b32.xlu1 %v5024_v51, %s4515_s19 }
 0x232   : > { %1455 = vrot.lane.b32.xlu1 %v5026_v15, %s4515_s19 }
 0x23b   : > { %v4265_v9 = vpop.permute.xlu1 %4264 }
 0x23c   : > { %v4267_v10 = vunpack.i.h.bf16 %v4265_v9  ;;  %v4266_v19 = vunpack.i.l.bf16 %v4265_v9  ;;  %v4270_v21 = vpop.permute.xlu0 %4269 }
 0x23d   : > { %v4272_v50 = vunpack.i.h.bf16 %v4270_v21  ;;  %v4271_v56 = vunpack.i.l.bf16 %v4270_v21 }
 0x23e   : > { %v1279_v57 = vsel %vm552_vm2, %v4257_v41, %v4266_v19  ;;  %v1287_v59 = vsel %vm552_vm2, %v4262_v28, %v4267_v10 }
 0x23f   : > { %v1311_v60 = vadd.f32 %v1279_v57, %v4950_v53  ;;  %v1319_v62 = vadd.f32 %v1287_v59, %v4952_v54  ;;  %v1280_v4 = vsel %vm552_vm2, %v4266_v19, %v4271_v56  ;;  %v1288_v5 = vsel %vm552_vm2, %v4267_v10, %v4272_v50 }
 0x240   : > { %v1312_v6 = vadd.f32 %v1280_v4, %v4954_v55  ;;  %v1320_v14 = vadd.f32 %v1288_v5, %v4956_v16 }
 0x241   : > { %v1327_v22 = vmul.f32 0.5, %v1311_v60  ;;  %v1335_v23 = vmul.f32 0.5, %v1319_v62 }
 0x242   : > { %v1328_v3 = vmul.f32 0.5, %v1312_v6  ;;  %v1336_v34 = vmul.f32 0.5, %v1320_v14 }
 0x243   : > { %v5046_v24 = vpack.c.bf16 %v1335_v23, %v1327_v22 }
 0x244   : > { %v5052_v53 = vpack.c.bf16 %v1336_v34, %v1328_v3 }
 0x245   : > { %1457 = vrot.lane.b32.xlu0 %v5046_v24, %s4515_s19  ;;  %1383 = vrot.lane.b32.xlu1 %v5046_v24, %s4512_s12 }
 0x246   : > { %v4275_v38 = vpop.permute.xlu1 %4274 }
 0x247   : > { %v4277_v28 = vunpack.i.h.bf16 %v4275_v38  ;;  %v4276_v16 = vunpack.i.l.bf16 %v4275_v38 }
 0x248   : > { %v4280_v54 = vpop.permute.xlu0 %4279 }
 0x249   : > { %v4282_v39 = vunpack.i.h.bf16 %v4280_v54  ;;  %v4281_v55 = vunpack.i.l.bf16 %v4280_v54  ;;  %1385 = vrot.lane.b32.xlu0 %v5052_v53, %s4512_s12  ;;  %v1282_v29 = vsel %vm552_vm2, %v4276_v16, %v4277_v28  ;;  %v1281_v7 = vsel %vm552_vm2, %v4271_v56, %v4276_v16  ;;  %v4114_v16 = vld [vmem:[%s5977_s6 + $0x1] ss:$8 sm:$0xf] }
 0x24a   : > { %v1314_v32 = vadd.f32 %v1282_v29, %v4986_v20  ;;  %v1313_v35 = vadd.f32 %v1281_v7, %v4982_v37  ;;  %v4518_v20 = vmov 2   ;;  %v1374_v37 = vpop.permute.xlu1 %1373  ;;  %v4115_v29 = vld [vmem:[%s5977_s6 + $0x1] ss:$8 sm:$0xf0] }
 0x24b   : > { %v1290_v41 = vsel %vm552_vm2, %v4281_v55, %v4282_v39  ;;  %v1289_v30 = vsel %vm552_vm2, %v4272_v50, %v4281_v55  ;;  %4283 = vset.pattern.permute.xlu1 %v4518_v20  ;;  %4284 = vset.pattern.permute.xlu0 %v4518_v20 }
 0x24c   : > { %v1322_v33 = vadd.f32 %v1290_v41, %v4988_v44  ;;  %v1321_v36 = vadd.f32 %v1289_v30, %v4984_v40  ;;  %v1330_v43 = vmul.f32 0.5, %v1314_v32  ;;  %v1329_v11 = vmul.f32 0.5, %v1313_v35 }
 0x24e   : > { %v1338_v1 = vmul.f32 0.5, %v1322_v33  ;;  %v1337_v45 = vmul.f32 0.5, %v1321_v36 }
 0x250   : > { %v5064_v46 = vpack.c.bf16 %v1338_v1, %v1330_v43  ;;  %v5066_v47 = vpack.c.bf16 %v1337_v45, %v1329_v11  ;;  %v5129_v43 = vor.u32 %v4115_v29, %v4114_v16 }
 0x252   : > { %1389 = vrot.lane.b32.xlu0 %v5064_v46, %s4512_s12  ;;  %1387 = vrot.lane.b32.xlu1 %v5066_v47, %s4512_s12 }
 0x256   : > { %1461 = vrot.lane.b32.xlu0 %v5066_v47, %s4515_s19  ;;  %1459 = vrot.lane.b32.xlu1 %v5052_v53, %s4515_s19 }
 0x25a   : > { %1465 = vrot.lane.b32.xlu0 %v4510_v0, %s4515_s19  ;;  %1463 = vrot.lane.b32.xlu1 %v5064_v46, %s4515_s19  ;;  %s4533_s19 = smov 6  }
 0x25e   : > { %1718 = vperm.xlu1 %4283, %v4747_v18   ;;  %1723 = vperm.xlu0 %4284, %v4737_v17  }
 0x289   : > { %v1450_v40 = vpop.permute.xlu0 %1449  ;;  %v1376_v44 = vpop.permute.xlu1 %1375 }
 0x28a   : > { %v1391_v10 = vsel %vm491_vm1, %v1374_v37, %v1376_v44 }
 0x28d   : > { %v1378_v49 = vpop.permute.xlu0 %1377 }
 0x28e   : > { %v1392_v9 = vsel %vm491_vm1, %v1376_v44, %v1378_v49 }
 0x28f   : > { %1526 = vmatprep.subr.bf16.mxu0 %v1392_v9 }
 0x290   : > { %1527 = vmatpush1.bf16.msra.mxu0 %v1391_v10 }
 0x291   : > { %1528 = vmatprep.subr.bf16.mxu0 %v5012_v26 }
 0x294   : > { %1529 = vmatpush1.bf16.msra.mxu0 %v5006_v25  ;;  %v4427_v25 = vld [vmem:[%s5973_s2] sm:$0xff]  }
 0x29c   : > { %v1380_v19 = vpop.permute.xlu0 %1379  ;;  %v1382_v21 = vpop.permute.xlu1 %1381 }
 0x29d   : > { %v1394_v18 = vsel %vm491_vm1, %v1380_v19, %v1382_v21  ;;  %v1393_v17 = vsel %vm491_vm1, %v1378_v49, %v1380_v19  ;;  %v1802_v19 = vrot.slane %v5129_v43, %v4862_v13 }
 0x29e   : > { %1569 = vmatprep.subr.bf16.mxu1 %v1394_v18 }
 0x29f   : > { %1570 = vmatpush1.bf16.msra.mxu1 %v1393_v17 }
 0x2a0   : > { %v1452_v50 = vpop.permute.xlu0 %1451  ;;  %1571 = vmatprep.subr.bf16.mxu1 %v5026_v15  ;;  %v1454_v56 = vpop.permute.xlu1 %1453 }
 0x2a1   : > { %v1468_v57 = vsel %vm690_vm4, %v1452_v50, %v1454_v56  ;;  %v1467_v59 = vsel %vm690_vm4, %v1450_v40, %v1452_v50  ;;  %v1798_v40 = vrot.slane %v5129_v43, %v4858_v8 }
 0x2a2   : > { %1530 = vmatprep.subr.bf16.mxu0 %v1468_v57 }
 0x2a3   : > { %1531 = vmatpush1.bf16.msra.mxu0 %v1467_v59  ;;  %1572 = vmatpush1.bf16.msra.mxu1 %v5024_v51 }
 0x2a4   : > { %v1456_v26 = vpop.permute.xlu1 %1455 }
 0x2a5   : > { %v1469_v62 = vsel %vm690_vm4, %v1454_v56, %v1456_v26 }
 0x2a6   : > { %4110 = vmatmul.mubr.msk.bf16.vlgmr.msra.gmra.mrb[8].mxu0 %vm1522_vm11, %v4427_v25 }
 0x2a7   : > { %1644 = vmatprep.mubr.bf16.mxu0 %v4510_v0 }
 0x2b7   : > { %v1458_v15 = vpop.permute.xlu0 %1457  ;;  %v1384_v4 = vpop.permute.xlu1 %1383 }
 0x2b8   : > { %v1470_v60 = vsel %vm690_vm4, %v1456_v26, %v1458_v15  ;;  %v1395_v51 = vsel %vm491_vm1, %v1382_v21, %v1384_v4 }
 0x2b9   : > { %1573 = vmatprep.subr.bf16.mxu1 %v1470_v60 }
 0x2ba   : > { %1574 = vmatpush1.bf16.msra.mxu1 %v1469_v62 }
 0x2bb   : > { %v1386_v5 = vpop.permute.xlu0 %1385 }
 0x2bc   : > { %v1396_v6 = vsel %vm491_vm1, %v1384_v4, %v1386_v5 }
 0x2bd   : > { %4111 = vmatmul.mubr.msk.bf16.vlgmr.msra.gmra.mrb[8].mxu1 %vm1522_vm11, %v4427_v25  ;;  %1612 = vmatprep.subr.bf16.mxu0 %v1396_v6 }
 0x2be   : > { %1613 = vmatpush1.bf16.msra.mxu0 %v1395_v51  ;;  %1687 = vmatprep.mubr.bf16.mxu1 %v4510_v0 }
 0x2bf   : > { %1614 = vmatprep.subr.bf16.mxu0 %v5052_v53 }
 0x2c2   : > { %1615 = vmatpush1.bf16.msra.mxu0 %v5046_v24 }
 0x2c4   : > { %v1390_v14 = vpop.permute.xlu0 %1389  ;;  %v1388_v22 = vpop.permute.xlu1 %1387 }
 0x2c5   : > { %v1398_v23 = vsel %vm491_vm1, %v1388_v22, %v1390_v14  ;;  %v1397_v3 = vsel %vm491_vm1, %v1386_v5, %v1388_v22 }
 0x2c6   : > { %1655 = vmatprep.subr.bf16.mxu1 %v1398_v23 }
 0x2c7   : > { %1656 = vmatpush1.bf16.msra.mxu1 %v1397_v3 }
 0x2c8   : > { %v1462_v34 = vpop.permute.xlu0 %1461  ;;  %1657 = vmatprep.subr.bf16.mxu1 %v5064_v46  ;;  %v1460_v54 = vpop.permute.xlu1 %1459 }
 0x2c9   : > { %v1472_v38 = vsel %vm690_vm4, %v1460_v54, %v1462_v34  ;;  %v1471_v39 = vsel %vm690_vm4, %v1458_v15, %v1460_v54 }
 0x2ca   : > { %1616 = vmatprep.subr.bf16.mxu0 %v1472_v38 }
 0x2cb   : > { %1617 = vmatpush1.bf16.msra.mxu0 %v1471_v39  ;;  %1658 = vmatpush1.bf16.msra.mxu1 %v5066_v47  ;;  %v1806_v39 = vrot.slane %v5129_v43, %v4901_v48 }
 0x2cc   : > { %v1466_v24 = vpop.permute.xlu0 %1465  ;;  %v1464_v53 = vpop.permute.xlu1 %1463 }
 0x2cd   : > { %v1474_v55 = vsel %vm690_vm4, %v1464_v53, %v1466_v24  ;;  %v1473_v28 = vsel %vm690_vm4, %v1462_v34, %v1464_v53 }
 0x2ce   : > { %4112 = vmatmul.mubr.msk.bf16.vlgmr.msra.gmra.mrb[12].mxu0 %vm1522_vm11, %v4427_v25  ;;  %1659 = vmatprep.subr.bf16.mxu1 %v1474_v55 }
 0x2cf   : > { %1660 = vmatpush1.bf16.msra.mxu1 %v1473_v28  ;;  %2372 = vmatprep.mubr.bf16.mxu0 %v4510_v0  ;;  %v1810_v28 = vrot.slane %v5129_v43, %v4907_v52 }
 0x2d2   : > { %4113 = vmatmul.mubr.msk.bf16.vlgmr.msra.gmra.mrb[12].mxu1 %vm1522_vm11, %v4427_v25 }
 0x2d3   : > { %2415 = vmatprep.mubr.bf16.mxu1 %v4510_v0 }
 0x2dd   : > { %v5123_v7 = vpop.permute.xlu1 %1718  ;;  %v5127_v36 = vpop.permute.xlu0 %1723 }
 0x379   : > { %v1560_v41 = vpop.f32.mrb[8].mxu0 }
 0x37a   : > { %v1698_v30 = vmul.f32 %v1560_v41, %v4843_v2  ;;  %v1562_v32 = vpop.f32.mrb[9].mxu0 }
 0x37b   : > { %v1699_v33 = vmul.f32 %v1562_v32, %v4843_v2  ;;  %v1564_v35 = vpop.f32.mrb[10].mxu0 }
 0x37c   : > { %v1706_v1 = vmul.f32 %v1564_v35, %v4841_v63  ;;  %v1566_v11 = vpop.f32.mrb[11].mxu0  ;;  %v1726_v45 = vadd.f32 %v5123_v7, %v1698_v30 }
 0x37d   : > { %v1707_v46 = vmul.f32 %v1566_v11, %v4841_v63  ;;  %v1727_v47 = vadd.f32 %v5123_v7, %v1699_v33 }
 0x37e   : > { %v1734_v20 = vadd.f32 %v5127_v36, %v1706_v1  ;;  %vm1742_vm4 = vcmp.gt.f32.partialorder %v1726_v45, 0.0  ;;  %v1758_v37 = vmul.f32 0.01, %v1726_v45 }
 0x37f   : > { %v1735_v44 = vadd.f32 %v5127_v36, %v1707_v46  ;;  %vm1743_vm12 = vcmp.gt.f32.partialorder %v1727_v47, 0.0  ;;  %v1759_v49 = vmul.f32 0.01, %v1727_v47 }
 0x380   : > { %vm1750_vm13 = vcmp.gt.f32.partialorder %v1734_v20, 0.0  ;;  %v1766_v9 = vmul.f32 0.01, %v1734_v20  ;;  %v1774_v10 = vsel %vm1742_vm4, %v1726_v45, %v1758_v37 }
 0x381   : > { %vm1751_vm14 = vcmp.gt.f32.partialorder %v1735_v44, 0.0  ;;  %v1767_v21 = vmul.f32 0.01, %v1735_v44  ;;  %v1775_v18 = vsel %vm1743_vm12, %v1727_v47, %v1759_v49  ;;  %v5141_v50 = vmul.f32 %v1798_v40, %v1774_v10 }
 0x382   : > { %v1782_v17 = vsel %vm1750_vm13, %v1734_v20, %v1766_v9  ;;  %v5145_v59 = vmul.f32 %v1802_v19, %v1775_v18  ;;  %v1818_v18 = vrot.slane %v5129_v43, %v4939_v31 }
 0x383   : > { %v5143_v56 = vmul.f32 %v1798_v40, %v1782_v17  ;;  %v1783_v57 = vsel %vm1751_vm14, %v1735_v44, %v1767_v21  ;;  %v4285_v26 = vpack.i.bf16 %v5141_v50, %v4886_v12 }
 0x384   : > { %v5147_v25 = vmul.f32 %v1802_v19, %v1783_v57  ;;  %v4290_v60 = vpack.i.bf16 %v4889_v42, %v5145_v59  ;;  %v1814_v19 = vrot.slane %v5129_v43, %v4934_v27 }
 0x385   : > { %4286 = vrot.lane.b32.xlu1 %v4285_v26, %s4512_s12 }
 0x386   : > { %v4295_v15 = vpack.i.bf16 %v5147_v25, %v5143_v56 }
 0x388   : > { %4296 = vrot.lane.b32.xlu0 %v4295_v15, %s4512_s12 }
 0x389   : > { %4291 = vrot.lane.b32.xlu1 %v4290_v60, %s4512_s12 }
 0x390   : > { %v1603_v62 = vpop.f32.mrb[8].mxu1 }
 0x391   : > { %v1700_v4 = vmul.f32 %v1603_v62, %v4843_v2  ;;  %v1605_v5 = vpop.f32.mrb[9].mxu1 }
 0x392   : > { %v1701_v6 = vmul.f32 %v1605_v5, %v4843_v2  ;;  %v1607_v51 = vpop.f32.mrb[10].mxu1 }
 0x393   : > { %v1728_v14 = vadd.f32 %v5123_v7, %v1700_v4  ;;  %v1708_v22 = vmul.f32 %v1607_v51, %v4841_v63  ;;  %v1609_v23 = vpop.f32.mrb[11].mxu1 }
 0x394   : > { %v1729_v3 = vadd.f32 %v5123_v7, %v1701_v6  ;;  %v1709_v34 = vmul.f32 %v1609_v23, %v4841_v63 }
 0x395   : > { %vm1744_vm15 = vcmp.gt.f32.partialorder %v1728_v14, 0.0  ;;  %v1760_v54 = vmul.f32 0.01, %v1728_v14  ;;  %v1736_v38 = vadd.f32 %v5127_v36, %v1708_v22 }
 0x396   : > { %vm1745_vm3 = vcmp.gt.f32.partialorder %v1729_v3, 0.0  ;;  %v1761_v24 = vmul.f32 0.01, %v1729_v3  ;;  %v1737_v53 = vadd.f32 %v5127_v36, %v1709_v34 }
 0x397   : > { %v1776_v55 = vsel %vm1744_vm15, %v1728_v14, %v1760_v54  ;;  %vm1752_vm5 = vcmp.gt.f32.partialorder %v1736_v38, 0.0  ;;  %v1768_v16 = vmul.f32 0.01, %v1736_v38  ;;  %vm2065_vm15 = vcmask 64512  }
 0x398   : > { %v1777_v29 = vsel %vm1745_vm3, %v1729_v3, %v1761_v24  ;;  %vm1753_vm6 = vcmp.gt.f32.partialorder %v1737_v53, 0.0  ;;  %v1769_v41 = vmul.f32 0.01, %v1737_v53  ;;  %v5170_v32 = vmul.f32 %v1806_v39, %v1776_v55 }
 0x399   : > { %v1784_v30 = vsel %vm1752_vm5, %v1736_v38, %v1768_v16  ;;  %v5174_v1 = vmul.f32 %v1810_v28, %v1777_v29  ;;  %vm2126_vm3 = vcmask 31744   ;;  %vm2203_vm5 = vcmask 1014784  }
 0x39a   : > { %v5172_v33 = vmul.f32 %v1806_v39, %v1784_v30  ;;  %v1785_v35 = vsel %vm1753_vm6, %v1737_v53, %v1769_v41  ;;  %vm2264_vm6 = vcmask 982016  }
 0x39b   : > { %v5176_v11 = vmul.f32 %v1810_v28, %v1785_v35  ;;  %v4300_v47 = vpack.i.bf16 %v5174_v1, %v5170_v32 }
 0x39d   : > { %v4305_v46 = vpack.i.bf16 %v5176_v11, %v5172_v33  ;;  %4301 = vrot.lane.b32.xlu1 %v4300_v47, %s4512_s12 }
 0x39f   : > { %4306 = vrot.lane.b32.xlu0 %v4305_v46, %s4512_s12  ;;  %v1822_v46 = vrot.slane %v5129_v43, %v4960_v58 }
 0x3a1   : > { %v1646_v45 = vpop.f32.mrb[12].mxu0 }
 0x3a2   : > { %v1702_v20 = vmul.f32 %v1646_v45, %v4843_v2  ;;  %v1648_v37 = vpop.f32.mrb[13].mxu0 }
 0x3a3   : > { %v1703_v40 = vmul.f32 %v1648_v37, %v4843_v2  ;;  %v1650_v44 = vpop.f32.mrb[14].mxu0 }
 0x3a4   : > { %v1730_v49 = vadd.f32 %v5123_v7, %v1702_v20  ;;  %v1710_v9 = vmul.f32 %v1650_v44, %v4841_v63  ;;  %v1652_v10 = vpop.f32.mrb[15].mxu0 }
 0x3a5   : > { %v1731_v21 = vadd.f32 %v5123_v7, %v1703_v40  ;;  %v1711_v17 = vmul.f32 %v1652_v10, %v4841_v63  ;;  %v1689_v57 = vpop.f32.mrb[12].mxu1 }
 0x3a6   : > { %vm1746_vm7 = vcmp.gt.f32.partialorder %v1730_v49, 0.0  ;;  %v1762_v26 = vmul.f32 0.01, %v1730_v49  ;;  %v1738_v15 = vadd.f32 %v5127_v36, %v1710_v9  ;;  %v1704_v60 = vmul.f32 %v1689_v57, %v4843_v2  ;;  %v1691_v62 = vpop.f32.mrb[13].mxu1 }
 0x3a7   : > { %vm1747_vm8 = vcmp.gt.f32.partialorder %v1731_v21, 0.0  ;;  %v1763_v4 = vmul.f32 0.01, %v1731_v21  ;;  %v1739_v5 = vadd.f32 %v5127_v36, %v1711_v17  ;;  %v1705_v6 = vmul.f32 %v1691_v62, %v4843_v2  ;;  %v1693_v51 = vpop.f32.mrb[14].mxu1 }
 0x3a8   : > { %v1778_v14 = vsel %vm1746_vm7, %v1730_v49, %v1762_v26  ;;  %vm1754_vm9 = vcmp.gt.f32.partialorder %v1738_v15, 0.0  ;;  %v1770_v22 = vmul.f32 0.01, %v1738_v15  ;;  %v1732_v23 = vadd.f32 %v5123_v7, %v1704_v60  ;;  %v1695_v3 = vpop.f32.mrb[15].mxu1 }
 0x3a9   : > { %v1779_v34 = vsel %vm1747_vm8, %v1731_v21, %v1763_v4  ;;  %vm1755_vm10 = vcmp.gt.f32.partialorder %v1739_v5, 0.0  ;;  %v1771_v54 = vmul.f32 0.01, %v1739_v5  ;;  %v5199_v38 = vmul.f32 %v1814_v19, %v1778_v14 }
 0x3aa   : > { %v1786_v39 = vsel %vm1754_vm9, %v1738_v15, %v1770_v22  ;;  %v1764_v24 = vmul.f32 0.01, %v1732_v23  ;;  %v1733_v28 = vadd.f32 %v5123_v7, %v1705_v6  ;;  %v1712_v16 = vmul.f32 %v1693_v51, %v4841_v63 }
 0x3ab   : > { %v5201_v53 = vmul.f32 %v1814_v19, %v1786_v39  ;;  %v1787_v55 = vsel %vm1755_vm10, %v1739_v5, %v1771_v54  ;;  %v5205_v29 = vmul.f32 %v1818_v18, %v1779_v34  ;;  %vm1748_vm4 = vcmp.gt.f32.partialorder %v1732_v23, 0.0 }
 0x3ac   : > { %v5207_v41 = vmul.f32 %v1818_v18, %v1787_v55  ;;  %v1713_v30 = vmul.f32 %v1695_v3, %v4841_v63  ;;  %vm1749_vm12 = vcmp.gt.f32.partialorder %v1733_v28, 0.0  ;;  %v1765_v35 = vmul.f32 0.01, %v1733_v28 }
 0x3ad   : > { %v1740_v45 = vadd.f32 %v5127_v36, %v1712_v16  ;;  %v1780_v20 = vsel %vm1748_vm4, %v1732_v23, %v1764_v24  ;;  %v1826_v7 = vrot.slane %v5129_v43, %v4964_v61  ;;  %vm2336_vm7 = vcmask 654336  }
 0x3ae   : > { %v1741_v47 = vadd.f32 %v5127_v36, %v1713_v30  ;;  %v1781_v40 = vsel %vm1749_vm12, %v1733_v28, %v1765_v35  ;;  %v5216_v9 = vmul.f32 %v1822_v46, %v1780_v20  ;;  %v4310_v36 = vpack.i.bf16 %v5201_v53, %v5199_v38 }
 0x3af   : > { %vm1756_vm13 = vcmp.gt.f32.partialorder %v1740_v45, 0.0  ;;  %v1772_v37 = vmul.f32 0.01, %v1740_v45  ;;  %v5220_v21 = vmul.f32 %v1826_v7, %v1781_v40  ;;  %v4315_v43 = vpack.i.bf16 %v5207_v41, %v5205_v29 }
 0x3b0   : > { %vm1757_vm14 = vcmp.gt.f32.partialorder %v1741_v47, 0.0  ;;  %v1773_v44 = vmul.f32 0.01, %v1741_v47  ;;  %4311 = vrot.lane.b32.xlu1 %v4310_v36, %s4512_s12 }
 0x3b1   : > { %v1788_v49 = vsel %vm1756_vm13, %v1740_v45, %v1772_v37  ;;  %4316 = vrot.lane.b32.xlu0 %v4315_v43, %s4512_s12  ;;  %v4320_v57 = vpack.i.bf16 %v5220_v21, %v5216_v9 }
 0x3b2   : > { %v5218_v10 = vmul.f32 %v1822_v46, %v1788_v49  ;;  %v1789_v19 = vsel %vm1757_vm14, %v1741_v47, %v1773_v44 }
 0x3b3   : > { %v5222_v18 = vmul.f32 %v1826_v7, %v1789_v19 }
 0x3b4   : > { %4321 = vrot.lane.b32.xlu1 %v4320_v57, %s4512_s12 }
 0x3b5   : > { %v4325_v17 = vpack.i.bf16 %v5222_v18, %v5218_v10 }
 0x3b7   : > { %4326 = vrot.lane.b32.xlu0 %v4325_v17, %s4512_s12 }
 0x3b8   : > { %2047 = vrot.lane.b32.xlu1 %v4510_v0, %s4520_s22 }
 0x3bb   : > { %2108 = vrot.lane.b32.xlu0 %v4510_v0, %s4519_s21 }
 0x3f7   : > { %v4287_v26 = vpop.permute.xlu1 %4286 }
 0x3f8   : > { %v4289_v15 = vunpack.i.h.bf16 %v4287_v26  ;;  %v4288_v60 = vunpack.i.l.bf16 %v4287_v26 }
 0x3fa   : > { %v4297_v62 = vpop.permute.xlu0 %4296  ;;  %v1949_v4 = vsel %vm491_vm1, %v4288_v60, %v4289_v15 }
 0x3fb   : > { %v4292_v5 = vpop.permute.xlu1 %4291  ;;  %v4298_v6 = vunpack.i.l.bf16 %v4297_v62  ;;  %v1981_v22 = vadd.f32 %v1949_v4, %v5141_v50  ;;  %v4299_v23 = vunpack.i.h.bf16 %v4297_v62 }
 0x3fc   : > { %v4294_v51 = vunpack.i.h.bf16 %v4292_v5  ;;  %v4293_v14 = vunpack.i.l.bf16 %v4292_v5 }
 0x3fd   : > { %v1997_v39 = vmul.f32 0.5, %v1981_v22  ;;  %v1958_v55 = vsel %vm491_vm1, %v4298_v6, %v4299_v23 }
 0x3fe   : > { %v1957_v3 = vsel %vm491_vm1, %v4294_v51, %v4298_v6  ;;  %v1950_v54 = vsel %vm491_vm1, %v4289_v15, %v4293_v14  ;;  %v1990_v30 = vadd.f32 %v1958_v55, %v5147_v25 }
 0x3ff   : > { %v1989_v34 = vadd.f32 %v1957_v3, %v5143_v56  ;;  %v1982_v28 = vadd.f32 %v1950_v54, %v5145_v59 }
 0x400   : > { %v2006_v56 = vmul.f32 0.5, %v1990_v30 }
 0x401   : > { %v2005_v24 = vmul.f32 0.5, %v1989_v34  ;;  %v1998_v50 = vmul.f32 0.5, %v1982_v28 }
 0x403   : > { %v5247_v16 = vpack.c.bf16 %v2005_v24, %v1997_v39  ;;  %v5258_v59 = vpack.c.bf16 %v2006_v56, %v1998_v50 }
 0x405   : > { %2110 = vrot.lane.b32.xlu0 %v5247_v16, %s4519_s21  ;;  %2049 = vrot.lane.b32.xlu1 %v5247_v16, %s4520_s22 }
 0x409   : > { %2246 = vrot.lane.b32.xlu0 %v5247_v16, %s4521_s23  ;;  %2185 = vrot.lane.b32.xlu1 %v5247_v16, %s4522_s24 }
 0x40d   : > { %2051 = vrot.lane.b32.xlu0 %v5258_v59, %s4520_s22  ;;  %2112 = vrot.lane.b32.xlu1 %v5258_v59, %s4519_s21 }
 0x40f   : > { %v4302_v35 = vpop.permute.xlu1 %4301 }
 0x410   : > { %v4304_v47 = vunpack.i.h.bf16 %v4302_v35  ;;  %v4303_v20 = vunpack.i.l.bf16 %v4302_v35 }
 0x411   : > { %v4307_v25 = vpop.permute.xlu0 %4306  ;;  %2248 = vrot.lane.b32.xlu0 %v5258_v59, %s4521_s23  ;;  %2187 = vrot.lane.b32.xlu1 %v5258_v59, %s4522_s24 }
 0x412   : > { %v4309_v45 = vunpack.i.h.bf16 %v4307_v25  ;;  %v4308_v46 = vunpack.i.l.bf16 %v4307_v25  ;;  %v1951_v37 = vsel %vm491_vm1, %v4293_v14, %v4303_v20  ;;  %v1952_v19 = vsel %vm491_vm1, %v4303_v20, %v4304_v47 }
 0x413   : > { %v1983_v44 = vadd.f32 %v1951_v37, %v5170_v32  ;;  %v1984_v57 = vadd.f32 %v1952_v19, %v5174_v1 }
 0x414   : > { %v1959_v7 = vsel %vm491_vm1, %v4299_v23, %v4308_v46  ;;  %v1960_v49 = vsel %vm491_vm1, %v4308_v46, %v4309_v45 }
 0x415   : > { %v1991_v40 = vadd.f32 %v1959_v7, %v5172_v33  ;;  %v1999_v43 = vmul.f32 0.5, %v1983_v44  ;;  %v1992_v17 = vadd.f32 %v1960_v49, %v5176_v11  ;;  %v2000_v32 = vmul.f32 0.5, %v1984_v57 }
 0x417   : > { %v2007_v36 = vmul.f32 0.5, %v1991_v40  ;;  %v2008_v33 = vmul.f32 0.5, %v1992_v17 }
 0x419   : > { %v5276_v26 = vpack.c.bf16 %v2007_v36, %v1999_v43  ;;  %v5286_v15 = vpack.c.bf16 %v2008_v33, %v2000_v32  ;;  %v5359_v36 = vld [vmem:[%s5976_s5 + $0x8] sm:$0xff]  ;;  %v5364_v43 = vld [vmem:[%s5976_s5] sm:$0xff] }
 0x41b   : > { %2053 = vrot.lane.b32.xlu0 %v5276_v26, %s4520_s22  ;;  %2114 = vrot.lane.b32.xlu1 %v5276_v26, %s4519_s21 }
 0x41f   : > { %2189 = vrot.lane.b32.xlu0 %v5276_v26, %s4522_s24  ;;  %2250 = vrot.lane.b32.xlu1 %v5276_v26, %s4521_s23 }
 0x422   : > { %v4312_v11 = vpop.permute.xlu1 %4311 }
 0x423   : > { %v4317_v1 = vpop.permute.xlu0 %4316  ;;  %2116 = vrot.lane.b32.xlu0 %v5286_v15, %s4519_s21  ;;  %2055 = vrot.lane.b32.xlu1 %v5286_v15, %s4520_s22  ;;  %v4314_v60 = vunpack.i.h.bf16 %v4312_v11  ;;  %v4313_v62 = vunpack.i.l.bf16 %v4312_v11 }
 0x424   : > { %v4319_v4 = vunpack.i.h.bf16 %v4317_v1  ;;  %v4318_v5 = vunpack.i.l.bf16 %v4317_v1 }
 0x425   : > { %v1961_v6 = vsel %vm491_vm1, %v4309_v45, %v4314_v60  ;;  %v1953_v51 = vsel %vm491_vm1, %v4304_v47, %v4313_v62 }
 0x426   : > { %v1954_v14 = vsel %vm491_vm1, %v4313_v62, %v4318_v5  ;;  %v1962_v22 = vsel %vm491_vm1, %v4314_v60, %v4319_v4  ;;  %v1993_v23 = vadd.f32 %v1961_v6, %v5201_v53  ;;  %v1985_v3 = vadd.f32 %v1953_v51, %v5199_v38  ;;  %v4322_v28 = vpop.permute.xlu1 %4321 }
 0x427   : > { %v1986_v34 = vadd.f32 %v1954_v14, %v5205_v29  ;;  %v1994_v54 = vadd.f32 %v1962_v22, %v5207_v41  ;;  %2191 = vrot.lane.b32.xlu0 %v5286_v15, %s4522_s24  ;;  %2252 = vrot.lane.b32.xlu1 %v5286_v15, %s4521_s23  ;;  %v4323_v50 = vunpack.i.l.bf16 %v4322_v28  ;;  %v4324_v41 = vunpack.i.h.bf16 %v4322_v28 }
 0x428   : > { %v2009_v39 = vmul.f32 0.5, %v1993_v23  ;;  %v2001_v24 = vmul.f32 0.5, %v1985_v3 }
 0x429   : > { %v4327_v55 = vpop.permute.xlu0 %4326  ;;  %v2002_v53 = vmul.f32 0.5, %v1986_v34  ;;  %v2010_v38 = vmul.f32 0.5, %v1994_v54  ;;  %v1955_v35 = vsel %vm491_vm1, %v4318_v5, %v4323_v50  ;;  %v1956_v7 = vsel %vm491_vm1, %v4323_v50, %v4324_v41 }
 0x42a   : > { %v4328_v30 = vunpack.i.l.bf16 %v4327_v55  ;;  %v5304_v56 = vpack.c.bf16 %v2009_v39, %v2001_v24  ;;  %v4329_v25 = vunpack.i.h.bf16 %v4327_v55  ;;  %v1987_v47 = vadd.f32 %v1955_v35, %v5216_v9  ;;  %v2048_v57 = vpop.permute.xlu1 %2047 }
 0x42b   : > { %v5312_v45 = vpack.c.bf16 %v2010_v38, %v2002_v53  ;;  %v1988_v44 = vadd.f32 %v1956_v7, %v5220_v21  ;;  %v4523_v21 = vmov 3   ;;  %v5383_v53 = vld [vmem:[%s5974_s3] sm:$0xff]  }
 0x42c   : > { %v1963_v29 = vsel %vm491_vm1, %v4319_v4, %v4328_v30  ;;  %2254 = vrot.lane.b32.xlu0 %v5304_v56, %s4521_s23  ;;  %2193 = vrot.lane.b32.xlu1 %v5304_v56, %s4522_s24  ;;  %v1964_v20 = vsel %vm491_vm1, %v4328_v30, %v4329_v25  ;;  %v2003_v49 = vmul.f32 0.5, %v1987_v47 }
 0x42d   : > { %v1995_v46 = vadd.f32 %v1963_v29, %v5218_v10  ;;  %v1996_v37 = vadd.f32 %v1964_v20, %v5222_v18  ;;  %v2004_v10 = vmul.f32 0.5, %v1988_v44  ;;  %4330 = vset.pattern.permute.xlu1 %v4523_v21  ;;  %4331 = vset.pattern.permute.xlu0 %v4523_v21  ;;  %v2109_v17 = vpop.permute.xlu0 %2108 }
 0x42f   : > { %v2011_v40 = vmul.f32 0.5, %v1995_v46  ;;  %v2012_v9 = vmul.f32 0.5, %v1996_v37 }
 0x430   : > { %2059 = vrot.lane.b32.xlu0 %v5312_v45, %s4520_s22  ;;  %2057 = vrot.lane.b32.xlu1 %v5304_v56, %s4520_s22 }
 0x431   : > { %v5328_v19 = vpack.c.bf16 %v2011_v40, %v2003_v49  ;;  %v5334_v18 = vpack.c.bf16 %v2012_v9, %v2004_v10 }
 0x434   : > { %2120 = vrot.lane.b32.xlu0 %v5312_v45, %s4519_s21  ;;  %2118 = vrot.lane.b32.xlu1 %v5304_v56, %s4519_s21 }
 0x438   : > { %2197 = vrot.lane.b32.xlu0 %v5328_v19, %s4522_s24  ;;  %2195 = vrot.lane.b32.xlu1 %v5312_v45, %s4522_s24 }
 0x43c   : > { %2063 = vrot.lane.b32.xlu0 %v5334_v18, %s4520_s22  ;;  %2061 = vrot.lane.b32.xlu1 %v5328_v19, %s4520_s22 }
 0x440   : > { %2124 = vrot.lane.b32.xlu0 %v5334_v18, %s4519_s21  ;;  %2122 = vrot.lane.b32.xlu1 %v5328_v19, %s4519_s21 }
 0x444   : > { %2201 = vrot.lane.b32.xlu0 %v4510_v0, %s4522_s24  ;;  %2256 = vrot.lane.b32.xlu1 %v5312_v45, %s4521_s23 }
 0x448   : > { %2258 = vrot.lane.b32.xlu0 %v5328_v19, %s4521_s23  ;;  %2199 = vrot.lane.b32.xlu1 %v5334_v18, %s4522_s24 }
 0x44c   : > { %2262 = vrot.lane.b32.xlu0 %v4510_v0, %s4521_s23  ;;  %2260 = vrot.lane.b32.xlu1 %v5334_v18, %s4521_s23 }
 0x450   : > { %2537 = vperm.xlu0 %4331, %v5359_v36   ;;  %2532 = vperm.xlu1 %4330, %v5364_v43  }
 0x477   : > { %v2111_v33 = vpop.permute.xlu0 %2110  ;;  %v2050_v32 = vpop.permute.xlu1 %2049 }
 0x478   : > { %v2066_v5 = vsel %vm2065_vm15, %v2048_v57, %v2050_v32  ;;  %v2127_v51 = vsel %vm2126_vm3, %v2109_v17, %v2111_v33 }
 0x47b   : > { %v2247_v11 = vpop.permute.xlu0 %2246  ;;  %v2186_v1 = vpop.permute.xlu1 %2185 }
 0x47f   : > { %v2052_v60 = vpop.permute.xlu0 %2051  ;;  %v2113_v62 = vpop.permute.xlu1 %2112 }
 0x480   : > { %v2067_v4 = vsel %vm2065_vm15, %v2050_v32, %v2052_v60  ;;  %v2128_v6 = vsel %vm2126_vm3, %v2111_v33, %v2113_v62 }
 0x481   : > { %2340 = vmatprep.subr.bf16.mxu0 %v2067_v4 }
 0x482   : > { %2341 = vmatpush1.bf16.msra.mxu0 %v2066_v5 }
 0x483   : > { %2342 = vmatprep.subr.bf16.mxu0 %v2128_v6  ;;  %v2249_v14 = vpop.permute.xlu0 %2248  ;;  %v2188_v22 = vpop.permute.xlu1 %2187 }
 0x484   : > { %v2204_v24 = vsel %vm2203_vm5, %v2186_v1, %v2188_v22 }
 0x486   : > { %2343 = vmatpush1.bf16.msra.mxu0 %v2127_v51 }
 0x487   : > { %2344 = vmatprep.subr.bf16.mxu0 %v5258_v59 }
 0x48a   : > { %2345 = vmatpush1.bf16.msra.mxu0 %v5247_v16  ;;  %v2265_v16 = vsel %vm2264_vm6, %v2247_v11, %v2249_v14 }
 0x48d   : > { %v2054_v23 = vpop.permute.xlu0 %2053  ;;  %v2115_v3 = vpop.permute.xlu1 %2114 }
 0x48e   : > { %v2068_v50 = vsel %vm2065_vm15, %v2052_v60, %v2054_v23  ;;  %v2129_v41 = vsel %vm2126_vm3, %v2113_v62, %v2115_v3 }
 0x491   : > { %v2190_v34 = vpop.permute.xlu0 %2189  ;;  %v2251_v54 = vpop.permute.xlu1 %2250 }
 0x492   : > { %v2205_v39 = vsel %vm2203_vm5, %v2188_v22, %v2190_v34  ;;  %v2266_v55 = vsel %vm2264_vm6, %v2249_v14, %v2251_v54 }
 0x493   : > { %2346 = vmatprep.subr.bf16.mxu0 %v2205_v39 }
 0x494   : > { %2347 = vmatpush1.bf16.msra.mxu0 %v2204_v24 }
 0x495   : > { %v2117_v28 = vpop.permute.xlu0 %2116  ;;  %2348 = vmatprep.subr.bf16.mxu0 %v2266_v55  ;;  %v2056_v30 = vpop.permute.xlu1 %2055  ;;  %v4121_v55 = vld [vmem:[%s5977_s6 + $0x2] ss:$8 sm:$0xf] }
 0x496   : > { %v2069_v59 = vsel %vm2065_vm15, %v2054_v23, %v2056_v30  ;;  %v2130_v38 = vsel %vm2126_vm3, %v2115_v3, %v2117_v28 }
 0x497   : > { %2383 = vmatprep.subr.bf16.mxu1 %v2069_v59 }
 0x498   : > { %2349 = vmatpush1.bf16.msra.mxu0 %v2265_v16  ;;  %2384 = vmatpush1.bf16.msra.mxu1 %v2068_v50 }
 0x499   : > { %v2192_v25 = vpop.permute.xlu0 %2191  ;;  %2385 = vmatprep.subr.bf16.mxu1 %v2130_v38  ;;  %v2253_v29 = vpop.permute.xlu1 %2252 }
 0x49a   : > { %v2206_v20 = vsel %vm2203_vm5, %v2190_v34, %v2192_v25 }
 0x49b   : > { %4117 = vmatmul.mubr.msk.bf16.vlgmr.msra.gmra.mrb[16].mxu0 %vm2336_vm7, %v5383_v53 }
 0x49c   : > { %2386 = vmatpush1.bf16.msra.mxu1 %v2129_v41  ;;  %2458 = vmatprep.mubr.bf16.mxu0 %v4510_v0 }
 0x49d   : > { %2387 = vmatprep.subr.bf16.mxu1 %v5286_v15  ;;  %v2267_v15 = vsel %vm2264_vm6, %v2251_v54, %v2253_v29 }
 0x49e   : > { %v2255_v35 = vpop.permute.xlu0 %2254  ;;  %v2194_v46 = vpop.permute.xlu1 %2193 }
 0x49f   : > { %v2207_v47 = vsel %vm2203_vm5, %v2192_v25, %v2194_v46  ;;  %v2268_v40 = vsel %vm2264_vm6, %v2253_v29, %v2255_v35 }
 0x4a0   : > { %2388 = vmatpush1.bf16.msra.mxu1 %v5276_v26 }
 0x4a1   : > { %2389 = vmatprep.subr.bf16.mxu1 %v2207_v47 }
 0x4a2   : > { %v2060_v7 = vpop.permute.xlu0 %2059  ;;  %v2058_v37 = vpop.permute.xlu1 %2057 }
 0x4a3   : > { %v2070_v44 = vsel %vm2065_vm15, %v2056_v30, %v2058_v37  ;;  %v2071_v49 = vsel %vm2065_vm15, %v2058_v37, %v2060_v7 }
 0x4a4   : > { %2390 = vmatpush1.bf16.msra.mxu1 %v2206_v20  ;;  %2426 = vmatprep.subr.bf16.mxu0 %v2071_v49 }
 0x4a5   : > { %2391 = vmatprep.subr.bf16.mxu1 %v2268_v40  ;;  %2427 = vmatpush1.bf16.msra.mxu0 %v2070_v44 }
 0x4a6   : > { %v2121_v26 = vpop.permute.xlu0 %2120  ;;  %v2119_v9 = vpop.permute.xlu1 %2118 }
 0x4a7   : > { %v2131_v10 = vsel %vm2126_vm3, %v2117_v28, %v2119_v9  ;;  %v2132_v21 = vsel %vm2126_vm3, %v2119_v9, %v2121_v26  ;;  %v4122_v28 = vld [vmem:[%s5977_s6 + $0x2] ss:$8 sm:$0xf0] }
 0x4a8   : > { %2392 = vmatpush1.bf16.msra.mxu1 %v2267_v15  ;;  %2428 = vmatprep.subr.bf16.mxu0 %v2132_v21  ;;  %v5437_v29 = vor.u32 %v4122_v28, %v4121_v55 }
 0x4a9   : > { %2429 = vmatpush1.bf16.msra.mxu0 %v2131_v10 }
 0x4aa   : > { %v2198_v17 = vpop.permute.xlu0 %2197  ;;  %2430 = vmatprep.subr.bf16.mxu0 %v5312_v45  ;;  %v2196_v57 = vpop.permute.xlu1 %2195  ;;  %v2612_v40 = vrot.slane %v5437_v29, %v4858_v8  ;;  %v2616_v9 = vrot.slane %v5437_v29, %v4862_v13  ;;  %v2624_v28 = vrot.slane %v5437_v29, %v4907_v52 }
 0x4ab   : > { %4118 = vmatmul.mubr.msk.bf16.vlgmr.msra.gmra.mrb[16].mxu1 %vm2336_vm7, %v5383_v53  ;;  %v2209_v32 = vsel %vm2203_vm5, %v2196_v57, %v2198_v17  ;;  %v2208_v62 = vsel %vm2203_vm5, %v2194_v46, %v2196_v57 }
 0x4ac   : > { %2501 = vmatprep.mubr.bf16.mxu1 %v4510_v0 }
 0x4ad   : > { %2431 = vmatpush1.bf16.msra.mxu0 %v5304_v56 }
 0x4ae   : > { %v2064_v33 = vpop.permute.xlu0 %2063  ;;  %2432 = vmatprep.subr.bf16.mxu0 %v2209_v32  ;;  %v2062_v11 = vpop.permute.xlu1 %2061 }
 0x4af   : > { %v2072_v1 = vsel %vm2065_vm15, %v2060_v7, %v2062_v11  ;;  %v2073_v60 = vsel %vm2065_vm15, %v2062_v11, %v2064_v33 }
 0x4b0   : > { %2469 = vmatprep.subr.bf16.mxu1 %v2073_v60 }
 0x4b1   : > { %2433 = vmatpush1.bf16.msra.mxu0 %v2208_v62  ;;  %2470 = vmatpush1.bf16.msra.mxu1 %v2072_v1 }
 0x4b2   : > { %v2125_v45 = vpop.permute.xlu0 %2124  ;;  %v2123_v4 = vpop.permute.xlu1 %2122 }
 0x4b3   : > { %v2133_v5 = vsel %vm2126_vm3, %v2121_v26, %v2123_v4  ;;  %v2134_v56 = vsel %vm2126_vm3, %v2123_v4, %v2125_v45 }
 0x4b4   : > { %2471 = vmatprep.subr.bf16.mxu1 %v2134_v56 }
 0x4b5   : > { %2472 = vmatpush1.bf16.msra.mxu1 %v2133_v5 }
 0x4b6   : > { %v2202_v6 = vpop.permute.xlu0 %2201  ;;  %2473 = vmatprep.subr.bf16.mxu1 %v5334_v18  ;;  %v2257_v51 = vpop.permute.xlu1 %2256 }
 0x4b7   : > { %v2269_v3 = vsel %vm2264_vm6, %v2255_v35, %v2257_v51 }
 0x4b9   : > { %2474 = vmatpush1.bf16.msra.mxu1 %v5328_v19 }
 0x4ba   : > { %v2259_v14 = vpop.permute.xlu0 %2258  ;;  %v2200_v22 = vpop.permute.xlu1 %2199 }
 0x4bb   : > { %v2270_v23 = vsel %vm2264_vm6, %v2257_v51, %v2259_v14  ;;  %v2210_v34 = vsel %vm2203_vm5, %v2198_v17, %v2200_v22  ;;  %v2211_v54 = vsel %vm2203_vm5, %v2200_v22, %v2202_v6 }
 0x4bc   : > { %2434 = vmatprep.subr.bf16.mxu0 %v2270_v23  ;;  %2475 = vmatprep.subr.bf16.mxu1 %v2211_v54 }
 0x4bd   : > { %2435 = vmatpush1.bf16.msra.mxu0 %v2269_v3  ;;  %2476 = vmatpush1.bf16.msra.mxu1 %v2210_v34 }
 0x4be   : > { %v2263_v39 = vpop.permute.xlu0 %2262  ;;  %v2261_v24 = vpop.permute.xlu1 %2260 }
 0x4bf   : > { %v2271_v18 = vsel %vm2264_vm6, %v2259_v14, %v2261_v24  ;;  %v2272_v19 = vsel %vm2264_vm6, %v2261_v24, %v2263_v39  ;;  %v2620_v24 = vrot.slane %v5437_v29, %v4901_v48 }
 0x4c0   : > { %4119 = vmatmul.mubr.msk.bf16.vlgmr.msra.gmra.mrb[20].mxu0 %vm2336_vm7, %v5383_v53  ;;  %2477 = vmatprep.subr.bf16.mxu1 %v2272_v19 }
 0x4c1   : > { %3045 = vmatprep.mubr.bf16.mxu0 %v4510_v0  ;;  %2478 = vmatpush1.bf16.msra.mxu1 %v2271_v18 }
 0x4c4   : > { %4120 = vmatmul.mubr.msk.bf16.vlgmr.msra.gmra.mrb[20].mxu1 %vm2336_vm7, %v5383_v53 }
 0x4c5   : > { %3088 = vmatprep.mubr.bf16.mxu1 %v4510_v0 }
 0x4cf   : > { %v5431_v59 = vpop.permute.xlu1 %2532  ;;  %v5435_v53 = vpop.permute.xlu0 %2537 }
 0x56e   : > { %v2374_v30 = vpop.f32.mrb[16].mxu0 }
 0x56f   : > { %v2512_v16 = vmul.f32 %v2374_v30, %v4843_v2  ;;  %v2376_v50 = vpop.f32.mrb[17].mxu0 }
 0x570   : > { %v2513_v38 = vmul.f32 %v2376_v50, %v4843_v2  ;;  %v2378_v25 = vpop.f32.mrb[18].mxu0 }
 0x571   : > { %v2520_v41 = vmul.f32 %v2378_v25, %v4841_v63  ;;  %v2380_v35 = vpop.f32.mrb[19].mxu0  ;;  %v2540_v46 = vadd.f32 %v5431_v59, %v2512_v16 }
 0x572   : > { %v2521_v47 = vmul.f32 %v2380_v35, %v4841_v63  ;;  %v2541_v20 = vadd.f32 %v5431_v59, %v2513_v38 }
 0x573   : > { %v2548_v7 = vadd.f32 %v5435_v53, %v2520_v41  ;;  %vm2556_vm8 = vcmp.gt.f32.partialorder %v2540_v46, 0.0  ;;  %v2572_v37 = vmul.f32 0.01, %v2540_v46 }
 0x574   : > { %v2549_v44 = vadd.f32 %v5435_v53, %v2521_v47  ;;  %vm2557_vm9 = vcmp.gt.f32.partialorder %v2541_v20, 0.0  ;;  %v2573_v49 = vmul.f32 0.01, %v2541_v20 }
 0x575   : > { %vm2564_vm10 = vcmp.gt.f32.partialorder %v2548_v7, 0.0  ;;  %v2580_v15 = vmul.f32 0.01, %v2548_v7  ;;  %v2588_v26 = vsel %vm2556_vm8, %v2540_v46, %v2572_v37 }
 0x576   : > { %vm2565_vm4 = vcmp.gt.f32.partialorder %v2549_v44, 0.0  ;;  %v2581_v10 = vmul.f32 0.01, %v2549_v44  ;;  %v2589_v21 = vsel %vm2557_vm9, %v2541_v20, %v2573_v49  ;;  %v5449_v57 = vmul.f32 %v2612_v40, %v2588_v26 }
 0x577   : > { %v2596_v17 = vsel %vm2564_vm10, %v2548_v7, %v2580_v15  ;;  %v5453_v11 = vmul.f32 %v2616_v9, %v2589_v21  ;;  %v2628_v21 = vrot.slane %v5437_v29, %v4934_v27 }
 0x578   : > { %v5451_v33 = vmul.f32 %v2612_v40, %v2596_v17  ;;  %v2597_v32 = vsel %vm2565_vm4, %v2549_v44, %v2581_v10  ;;  %v4332_v62 = vpack.i.bf16 %v5449_v57, %v4886_v12 }
 0x579   : > { %v5455_v1 = vmul.f32 %v2616_v9, %v2597_v32  ;;  %v4337_v34 = vpack.i.bf16 %v4889_v42, %v5453_v11 }
 0x57a   : > { %4333 = vrot.lane.b32.xlu1 %v4332_v62, %s4519_s21  ;;  %v2632_v62 = vrot.slane %v5437_v29, %v4939_v31 }
 0x57b   : > { %v4342_v5 = vpack.i.bf16 %v5455_v1, %v5451_v33 }
 0x57d   : > { %4343 = vrot.lane.b32.xlu0 %v4342_v5, %s4519_s21 }
 0x57e   : > { %v2417_v60 = vpop.f32.mrb[16].mxu1  ;;  %4338 = vrot.lane.b32.xlu1 %v4337_v34, %s4519_s21 }
 0x57f   : > { %v2514_v45 = vmul.f32 %v2417_v60, %v4843_v2  ;;  %v2419_v4 = vpop.f32.mrb[17].mxu1 }
 0x580   : > { %v2515_v56 = vmul.f32 %v2419_v4, %v4843_v2  ;;  %v2421_v6 = vpop.f32.mrb[18].mxu1 }
 0x581   : > { %v2542_v51 = vadd.f32 %v5431_v59, %v2514_v45  ;;  %v2522_v14 = vmul.f32 %v2421_v6, %v4841_v63  ;;  %v2423_v22 = vpop.f32.mrb[19].mxu1 }
 0x582   : > { %v2543_v23 = vadd.f32 %v5431_v59, %v2515_v56  ;;  %v2523_v3 = vmul.f32 %v2423_v22, %v4841_v63 }
 0x583   : > { %vm2558_vm12 = vcmp.gt.f32.partialorder %v2542_v51, 0.0  ;;  %v2574_v54 = vmul.f32 0.01, %v2542_v51  ;;  %v2550_v39 = vadd.f32 %v5435_v53, %v2522_v14 }
 0x584   : > { %vm2559_vm13 = vcmp.gt.f32.partialorder %v2543_v23, 0.0  ;;  %v2575_v18 = vmul.f32 0.01, %v2543_v23  ;;  %v2551_v19 = vadd.f32 %v5435_v53, %v2523_v3 }
 0x585   : > { %v2590_v55 = vsel %vm2558_vm12, %v2542_v51, %v2574_v54  ;;  %vm2566_vm14 = vcmp.gt.f32.partialorder %v2550_v39, 0.0  ;;  %v2582_v30 = vmul.f32 0.01, %v2550_v39 }
 0x586   : > { %v2591_v16 = vsel %vm2559_vm13, %v2543_v23, %v2575_v18  ;;  %vm2567_vm5 = vcmp.gt.f32.partialorder %v2551_v19, 0.0  ;;  %v2583_v50 = vmul.f32 0.01, %v2551_v19  ;;  %v5478_v25 = vmul.f32 %v2620_v24, %v2590_v55 }
 0x587   : > { %v2598_v38 = vsel %vm2566_vm14, %v2550_v39, %v2582_v30  ;;  %v5482_v46 = vmul.f32 %v2624_v28, %v2591_v16 }
 0x588   : > { %v5480_v41 = vmul.f32 %v2620_v24, %v2598_v38  ;;  %v2599_v35 = vsel %vm2567_vm5, %v2551_v19, %v2583_v50 }
 0x589   : > { %v5484_v47 = vmul.f32 %v2624_v28, %v2599_v35  ;;  %v4347_v7 = vpack.i.bf16 %v5482_v46, %v5478_v25 }
 0x58b   : > { %v4352_v20 = vpack.i.bf16 %v5484_v47, %v5480_v41  ;;  %4348 = vrot.lane.b32.xlu1 %v4347_v7, %s4519_s21 }
 0x58d   : > { %4353 = vrot.lane.b32.xlu0 %v4352_v20, %s4519_s21 }
 0x593   : > { %v2460_v37 = vpop.f32.mrb[20].mxu0 }
 0x594   : > { %v2516_v40 = vmul.f32 %v2460_v37, %v4843_v2  ;;  %v2462_v44 = vpop.f32.mrb[21].mxu0 }
 0x595   : > { %v2517_v49 = vmul.f32 %v2462_v44, %v4843_v2  ;;  %v2464_v15 = vpop.f32.mrb[22].mxu0 }
 0x596   : > { %v2544_v26 = vadd.f32 %v5431_v59, %v2516_v40  ;;  %v2524_v9 = vmul.f32 %v2464_v15, %v4841_v63  ;;  %v2466_v10 = vpop.f32.mrb[23].mxu0 }
 0x597   : > { %v2545_v17 = vadd.f32 %v5431_v59, %v2517_v49  ;;  %v2525_v32 = vmul.f32 %v2466_v10, %v4841_v63  ;;  %v2503_v4 = vpop.f32.mrb[20].mxu1  ;;  %v2640_v49 = vrot.slane %v5437_v29, %v4964_v61 }
 0x598   : > { %vm2560_vm7 = vcmp.gt.f32.partialorder %v2544_v26, 0.0  ;;  %v2576_v60 = vmul.f32 0.01, %v2544_v26  ;;  %v2552_v45 = vadd.f32 %v5435_v53, %v2524_v9  ;;  %v2518_v6 = vmul.f32 %v2503_v4, %v4843_v2  ;;  %v2505_v51 = vpop.f32.mrb[21].mxu1 }
 0x599   : > { %vm2561_vm8 = vcmp.gt.f32.partialorder %v2545_v17, 0.0  ;;  %v2577_v5 = vmul.f32 0.01, %v2545_v17  ;;  %v2553_v56 = vadd.f32 %v5435_v53, %v2525_v32  ;;  %v2519_v23 = vmul.f32 %v2505_v51, %v4843_v2  ;;  %v2507_v3 = vpop.f32.mrb[22].mxu1 }
 0x59a   : > { %v2592_v14 = vsel %vm2560_vm7, %v2544_v26, %v2576_v60  ;;  %vm2568_vm9 = vcmp.gt.f32.partialorder %v2552_v45, 0.0  ;;  %v2584_v22 = vmul.f32 0.01, %v2552_v45  ;;  %v2509_v24 = vpop.f32.mrb[23].mxu1  ;;  %v2546_v55 = vadd.f32 %v5431_v59, %v2518_v6 }
 0x59b   : > { %v5506_v34 = vmul.f32 %v2628_v21, %v2592_v14  ;;  %v2593_v54 = vsel %vm2561_vm8, %v2545_v17, %v2577_v5  ;;  %vm2569_vm10 = vcmp.gt.f32.partialorder %v2553_v56, 0.0  ;;  %v2585_v39 = vmul.f32 0.01, %v2553_v56 }
 0x59c   : > { %v5508_v18 = vmul.f32 %v2632_v62, %v2593_v54  ;;  %v2600_v19 = vsel %vm2568_vm9, %v2552_v45, %v2584_v22  ;;  %v2547_v28 = vadd.f32 %v5431_v59, %v2519_v23  ;;  %v2526_v50 = vmul.f32 %v2507_v3, %v4841_v63 }
 0x59d   : > { %v5512_v30 = vmul.f32 %v2628_v21, %v2600_v19  ;;  %v2601_v16 = vsel %vm2569_vm10, %v2553_v56, %v2585_v39  ;;  %v2527_v38 = vmul.f32 %v2509_v24, %v4841_v63  ;;  %vm2562_vm4 = vcmp.gt.f32.partialorder %v2546_v55, 0.0 }
 0x59e   : > { %v5516_v35 = vmul.f32 %v2632_v62, %v2601_v16  ;;  %v2578_v20 = vmul.f32 0.01, %v2546_v55  ;;  %vm2563_vm12 = vcmp.gt.f32.partialorder %v2547_v28, 0.0  ;;  %v2579_v7 = vmul.f32 0.01, %v2547_v28 }
 0x59f   : > { %v2554_v37 = vadd.f32 %v5435_v53, %v2526_v50  ;;  %v2555_v40 = vadd.f32 %v5435_v53, %v2527_v38  ;;  %v2636_v59 = vrot.slane %v5437_v29, %v4960_v58  ;;  %v4357_v62 = vpack.i.bf16 %v5512_v30, %v5506_v34 }
 0x5a0   : > { %v2594_v44 = vsel %vm2562_vm4, %v2546_v55, %v2578_v20  ;;  %v2595_v26 = vsel %vm2563_vm12, %v2547_v28, %v2579_v7  ;;  %v4362_v29 = vpack.i.bf16 %v5516_v35, %v5508_v18 }
 0x5a1   : > { %vm2570_vm13 = vcmp.gt.f32.partialorder %v2554_v37, 0.0  ;;  %v2586_v15 = vmul.f32 0.01, %v2554_v37  ;;  %vm2571_vm14 = vcmp.gt.f32.partialorder %v2555_v40, 0.0  ;;  %v2587_v9 = vmul.f32 0.01, %v2555_v40  ;;  %4358 = vrot.lane.b32.xlu1 %v4357_v62, %s4519_s21 }
 0x5a2   : > { %v5524_v21 = vmul.f32 %v2636_v59, %v2594_v44  ;;  %v5528_v60 = vmul.f32 %v2640_v49, %v2595_v26  ;;  %4363 = vrot.lane.b32.xlu0 %v4362_v29, %s4519_s21 }
 0x5a3   : > { %v2602_v10 = vsel %vm2570_vm13, %v2554_v37, %v2586_v15  ;;  %v2603_v32 = vsel %vm2571_vm14, %v2555_v40, %v2587_v9 }
 0x5a4   : > { %v5526_v17 = vmul.f32 %v2636_v59, %v2602_v10  ;;  %v5530_v53 = vmul.f32 %v2640_v49, %v2603_v32  ;;  %v4367_v4 = vpack.i.bf16 %v5528_v60, %v5524_v21 }
 0x5a6   : > { %v4372_v45 = vpack.i.bf16 %v5530_v53, %v5526_v17  ;;  %4368 = vrot.lane.b32.xlu1 %v4367_v4, %s4519_s21 }
 0x5a8   : > { %4373 = vrot.lane.b32.xlu0 %v4372_v45, %s4519_s21 }
 0x5aa   : > { %2861 = vrot.lane.b32.xlu1 %v4510_v0, %s4520_s22 }
 0x5ec   : > { %v4334_v5 = vpop.permute.xlu1 %4333 }
 0x5ed   : > { %v4336_v56 = vunpack.i.h.bf16 %v4334_v5  ;;  %v4335_v6 = vunpack.i.l.bf16 %v4334_v5 }
 0x5ef   : > { %v4344_v51 = vpop.permute.xlu0 %4343  ;;  %v2763_v14 = vsel %vm2126_vm3, %v4335_v6, %v4336_v56 }
 0x5f0   : > { %v4346_v22 = vunpack.i.h.bf16 %v4344_v51  ;;  %v4345_v23 = vunpack.i.l.bf16 %v4344_v51  ;;  %v4339_v3 = vpop.permute.xlu1 %4338  ;;  %v2795_v24 = vadd.f32 %v2763_v14, %v5449_v57 }
 0x5f1   : > { %v4341_v54 = vunpack.i.h.bf16 %v4339_v3  ;;  %v4340_v39 = vunpack.i.l.bf16 %v4339_v3 }
 0x5f2   : > { %v2772_v19 = vsel %vm2126_vm3, %v4345_v23, %v4346_v22  ;;  %v2811_v38 = vmul.f32 0.5, %v2795_v24 }
 0x5f3   : > { %v2771_v55 = vsel %vm2126_vm3, %v4341_v54, %v4345_v23  ;;  %v2764_v28 = vsel %vm2126_vm3, %v4336_v56, %v4340_v39  ;;  %v2804_v20 = vadd.f32 %v2772_v19, %v5455_v1 }
 0x5f4   : > { %v2803_v16 = vadd.f32 %v2771_v55, %v5451_v33  ;;  %v2796_v50 = vadd.f32 %v2764_v28, %v5453_v11 }
 0x5f5   : > { %v2820_v59 = vmul.f32 0.5, %v2804_v20 }
 0x5f6   : > { %v2819_v7 = vmul.f32 0.5, %v2803_v16  ;;  %v2812_v37 = vmul.f32 0.5, %v2796_v50 }
 0x5f8   : > { %v5554_v40 = vpack.c.bf16 %v2819_v7, %v2811_v38  ;;  %v5560_v57 = vpack.c.bf16 %v2820_v59, %v2812_v37 }
 0x5fa   : > { %2937 = vrot.lane.b32.xlu0 %v5554_v40, %s4521_s23  ;;  %2863 = vrot.lane.b32.xlu1 %v5554_v40, %s4520_s22 }
 0x5fd   : > { %v4349_v33 = vpop.permute.xlu1 %4348 }
 0x5fe   : > { %v4351_v15 = vunpack.i.h.bf16 %v4349_v33  ;;  %v4350_v26 = vunpack.i.l.bf16 %v4349_v33  ;;  %2865 = vrot.lane.b32.xlu0 %v5560_v57, %s4520_s22 }
 0x5ff   : > { %v4354_v44 = vpop.permute.xlu0 %4353 }
 0x600   : > { %v4356_v49 = vunpack.i.h.bf16 %v4354_v44  ;;  %v4355_v11 = vunpack.i.l.bf16 %v4354_v44  ;;  %v2765_v10 = vsel %vm2126_vm3, %v4340_v39, %v4350_v26  ;;  %v2766_v32 = vsel %vm2126_vm3, %v4350_v26, %v4351_v15 }
 0x601   : > { %v2797_v45 = vadd.f32 %v2765_v10, %v5478_v25  ;;  %v2798_v4 = vadd.f32 %v2766_v32, %v5482_v46 }
 0x602   : > { %v2773_v1 = vsel %vm2126_vm3, %v4346_v22, %v4355_v11  ;;  %v2774_v9 = vsel %vm2126_vm3, %v4355_v11, %v4356_v49  ;;  %2939 = vrot.lane.b32.xlu0 %v5560_v57, %s4521_s23 }
 0x603   : > { %v2805_v62 = vadd.f32 %v2773_v1, %v5480_v41  ;;  %v2806_v29 = vadd.f32 %v2774_v9, %v5484_v47  ;;  %v2813_v56 = vmul.f32 0.5, %v2797_v45  ;;  %v2814_v51 = vmul.f32 0.5, %v2798_v4 }
 0x605   : > { %v2821_v5 = vmul.f32 0.5, %v2805_v62  ;;  %v2822_v6 = vmul.f32 0.5, %v2806_v29 }
 0x607   : > { %v5574_v14 = vpack.c.bf16 %v2821_v5, %v2813_v56  ;;  %v5580_v41 = vpack.c.bf16 %v2822_v6, %v2814_v51 }
 0x609   : > { %2867 = vrot.lane.b32.xlu0 %v5574_v14, %s4520_s22  ;;  %2941 = vrot.lane.b32.xlu1 %v5574_v14, %s4521_s23 }
 0x60d   : > { %2869 = vrot.lane.b32.xlu1 %v5580_v41, %s4520_s22 }
 0x611   : > { %2943 = vrot.lane.b32.xlu1 %v5580_v41, %s4521_s23 }
 0x613   : > { %v4359_v25 = vpop.permute.xlu1 %4358 }
 0x614   : > { %v4364_v46 = vpop.permute.xlu0 %4363  ;;  %v4361_v47 = vunpack.i.h.bf16 %v4359_v25  ;;  %v4360_v22 = vunpack.i.l.bf16 %v4359_v25 }
 0x615   : > { %v4366_v23 = vunpack.i.h.bf16 %v4364_v46  ;;  %v4365_v3 = vunpack.i.l.bf16 %v4364_v46 }
 0x616   : > { %v2775_v54 = vsel %vm2126_vm3, %v4356_v49, %v4361_v47  ;;  %v2767_v39 = vsel %vm2126_vm3, %v4351_v15, %v4360_v22 }
 0x617   : > { %v2768_v24 = vsel %vm2126_vm3, %v4360_v22, %v4365_v3  ;;  %v2776_v19 = vsel %vm2126_vm3, %v4361_v47, %v4366_v23  ;;  %v2807_v55 = vadd.f32 %v2775_v54, %v5512_v30  ;;  %v2799_v28 = vadd.f32 %v2767_v39, %v5506_v34 }
 0x618   : > { %v2800_v16 = vadd.f32 %v2768_v24, %v5508_v18  ;;  %v2808_v50 = vadd.f32 %v2776_v19, %v5516_v35  ;;  %v4369_v44 = vpop.permute.xlu1 %4368 }
 0x619   : > { %v2823_v38 = vmul.f32 0.5, %v2807_v55  ;;  %v2815_v20 = vmul.f32 0.5, %v2799_v28  ;;  %v4371_v11 = vunpack.i.h.bf16 %v4369_v44  ;;  %v4370_v15 = vunpack.i.l.bf16 %v4369_v44 }
 0x61a   : > { %v2816_v7 = vmul.f32 0.5, %v2800_v16  ;;  %v2824_v37 = vmul.f32 0.5, %v2808_v50  ;;  %v4374_v59 = vpop.permute.xlu0 %4373 }
 0x61b   : > { %v4376_v33 = vunpack.i.h.bf16 %v4374_v59  ;;  %v4375_v49 = vunpack.i.l.bf16 %v4374_v59  ;;  %v5594_v26 = vpack.c.bf16 %v2823_v38, %v2815_v20  ;;  %v2769_v18 = vsel %vm2126_vm3, %v4365_v3, %v4370_v15 }
 0x61c   : > { %v2770_v35 = vsel %vm2126_vm3, %v4370_v15, %v4371_v11  ;;  %v2801_v10 = vadd.f32 %v2769_v18, %v5524_v21  ;;  %v5608_v62 = vpack.c.bf16 %v2824_v37, %v2816_v7 }
 0x61d   : > { %v2777_v30 = vsel %vm2126_vm3, %v4366_v23, %v4375_v49  ;;  %v2778_v34 = vsel %vm2126_vm3, %v4375_v49, %v4376_v33  ;;  %v2802_v32 = vadd.f32 %v2770_v35, %v5528_v60  ;;  %2945 = vrot.lane.b32.xlu0 %v5594_v26, %s4521_s23  ;;  %2871 = vrot.lane.b32.xlu1 %v5594_v26, %s4520_s22  ;;  %v4524_v60 = vmov 4   ;;  %v4429_v23 = vld [vmem:[%s5975_s4] sm:$0xff]  }
 0x61e   : > { %v2809_v1 = vadd.f32 %v2777_v30, %v5526_v17  ;;  %v2810_v9 = vadd.f32 %v2778_v34, %v5530_v53  ;;  %v2817_v4 = vmul.f32 0.5, %v2801_v10  ;;  %4377 = vset.pattern.permute.xlu1 %v4524_v60  ;;  %4378 = vset.pattern.permute.xlu0 %v4524_v60  ;;  %v2862_v53 = vpop.permute.xlu1 %2861  ;;  %v4129_v30 = vld [vmem:[%s5977_s6 + $0x3] ss:$8 sm:$0xf0] }
 0x61f   : > { %v2818_v5 = vmul.f32 0.5, %v2802_v32 }
 0x620   : > { %v2825_v29 = vmul.f32 0.5, %v2809_v1  ;;  %v2826_v45 = vmul.f32 0.5, %v2810_v9 }
 0x621   : > { %2873 = vrot.lane.b32.xlu0 %v5608_v62, %s4520_s22 }
 0x622   : > { %v5612_v17 = vpack.c.bf16 %v2825_v29, %v2817_v4  ;;  %v5616_v21 = vpack.c.bf16 %v2826_v45, %v2818_v5 }
 0x624   : > { %2875 = vrot.lane.b32.xlu1 %v5612_v17, %s4520_s22 }
 0x625   : > { %2877 = vrot.lane.b32.xlu0 %v5616_v21, %s4520_s22 }
 0x628   : > { %2947 = vrot.lane.b32.xlu1 %v5608_v62, %s4521_s23 }
 0x629   : > { %2949 = vrot.lane.b32.xlu0 %v5612_v17, %s4521_s23 }
 0x62c   : > { %2951 = vrot.lane.b32.xlu1 %v5616_v21, %s4521_s23 }
 0x62d   : > { %2953 = vrot.lane.b32.xlu0 %v4510_v0, %s4521_s23 }
 0x630   : > { %3205 = vperm.xlu1 %4377, %v5364_v43  }
 0x631   : > { %3210 = vperm.xlu0 %4378, %v5359_v36  }
 0x634   : > { %4425 = vset.pattern.permute.xlu1 %v4510_v0 }
 0x635   : > { %4424 = vset.pattern.permute.xlu0 %v4510_v0 }
 0x66c   : > { %v2938_v56 = vpop.permute.xlu0 %2937  ;;  %v2864_v6 = vpop.permute.xlu1 %2863 }
 0x66d   : > { %v2879_v46 = vsel %vm2065_vm15, %v2862_v53, %v2864_v6 }
 0x670   : > { %v2866_v51 = vpop.permute.xlu0 %2865 }
 0x671   : > { %v2880_v25 = vsel %vm2065_vm15, %v2864_v6, %v2866_v51 }
 0x672   : > { %3013 = vmatprep.subr.bf16.mxu0 %v2880_v25 }
 0x673   : > { %3014 = vmatpush1.bf16.msra.mxu0 %v2879_v46 }
 0x674   : > { %3015 = vmatprep.subr.bf16.mxu0 %v5560_v57  ;;  %v2940_v47 = vpop.permute.xlu0 %2939 }
 0x675   : > { %v2955_v22 = vsel %vm2264_vm6, %v2938_v56, %v2940_v47 }
 0x677   : > { %3016 = vmatpush1.bf16.msra.mxu0 %v5554_v40 }
 0x67b   : > { %v2942_v36 = vpop.permute.xlu1 %2941  ;;  %v2868_v3 = vpop.permute.xlu0 %2867 }
 0x67c   : > { %v2956_v43 = vsel %vm2264_vm6, %v2940_v47, %v2942_v36  ;;  %v2881_v57 = vsel %vm2065_vm15, %v2866_v51, %v2868_v3 }
 0x67d   : > { %3017 = vmatprep.subr.bf16.mxu0 %v2956_v43 }
 0x67e   : > { %3018 = vmatpush1.bf16.msra.mxu0 %v2955_v22 }
 0x67f   : > { %v2870_v54 = vpop.permute.xlu1 %2869 }
 0x680   : > { %v2882_v39 = vsel %vm2065_vm15, %v2868_v3, %v2870_v54 }
 0x681   : > { %4124 = vmatmul.mubr.msk.bf16.vlgmr.msra.gmra.mrb[24].mxu0 %vm1522_vm11, %v4429_v23  ;;  %3056 = vmatprep.subr.bf16.mxu1 %v2882_v39 }
 0x682   : > { %3057 = vmatpush1.bf16.msra.mxu1 %v2881_v57  ;;  %3131 = vmatprep.mubr.bf16.mxu0 %v4510_v0 }
 0x683   : > { %3058 = vmatprep.subr.bf16.mxu1 %v5580_v41  ;;  %v2944_v40 = vpop.permute.xlu1 %2943 }
 0x684   : > { %v2957_v28 = vsel %vm2264_vm6, %v2942_v36, %v2944_v40 }
 0x686   : > { %3059 = vmatpush1.bf16.msra.mxu1 %v5574_v14 }
 0x68f   : > { %v2946_v24 = vpop.permute.xlu0 %2945  ;;  %v2872_v19 = vpop.permute.xlu1 %2871 }
 0x690   : > { %v2958_v55 = vsel %vm2264_vm6, %v2944_v40, %v2946_v24  ;;  %v2883_v38 = vsel %vm2065_vm15, %v2870_v54, %v2872_v19 }
 0x691   : > { %3060 = vmatprep.subr.bf16.mxu1 %v2958_v55 }
 0x692   : > { %3061 = vmatpush1.bf16.msra.mxu1 %v2957_v28 }
 0x693   : > { %v2874_v16 = vpop.permute.xlu0 %2873 }
 0x694   : > { %v2884_v50 = vsel %vm2065_vm15, %v2872_v19, %v2874_v16 }
 0x695   : > { %4125 = vmatmul.mubr.msk.bf16.vlgmr.msra.gmra.mrb[24].mxu1 %vm1522_vm11, %v4429_v23  ;;  %3099 = vmatprep.subr.bf16.mxu0 %v2884_v50 }
 0x696   : > { %v2876_v20 = vpop.permute.xlu1 %2875  ;;  %3100 = vmatpush1.bf16.msra.mxu0 %v2883_v38  ;;  %3174 = vmatprep.mubr.bf16.mxu1 %v4510_v0 }
 0x697   : > { %v2878_v14 = vpop.permute.xlu0 %2877  ;;  %3101 = vmatprep.subr.bf16.mxu0 %v5608_v62  ;;  %v2885_v7 = vsel %vm2065_vm15, %v2874_v16, %v2876_v20 }
 0x698   : > { %v2886_v41 = vsel %vm2065_vm15, %v2876_v20, %v2878_v14 }
 0x699   : > { %3142 = vmatprep.subr.bf16.mxu1 %v2886_v41 }
 0x69a   : > { %v2948_v37 = vpop.permute.xlu1 %2947  ;;  %3102 = vmatpush1.bf16.msra.mxu0 %v5594_v26  ;;  %3143 = vmatpush1.bf16.msra.mxu1 %v2885_v7  ;;  %v4128_v26 = vld [vmem:[%s5977_s6 + $0x3] ss:$8 sm:$0xf] }
 0x69b   : > { %v2950_v59 = vpop.permute.xlu0 %2949  ;;  %3144 = vmatprep.subr.bf16.mxu1 %v5616_v21  ;;  %v2959_v33 = vsel %vm2264_vm6, %v2946_v24, %v2948_v37  ;;  %v5677_v62 = vor.u32 %v4129_v30, %v4128_v26 }
 0x69c   : > { %v2960_v44 = vsel %vm2264_vm6, %v2948_v37, %v2950_v59 }
 0x69d   : > { %3103 = vmatprep.subr.bf16.mxu0 %v2960_v44  ;;  %v3285_v6 = vrot.slane %v5677_v62, %v4858_v8  ;;  %v3289_v46 = vrot.slane %v5677_v62, %v4862_v13  ;;  %v3293_v7 = vrot.slane %v5677_v62, %v4901_v48 }
 0x69e   : > { %v2952_v0 = vpop.permute.xlu1 %2951  ;;  %3104 = vmatpush1.bf16.msra.mxu0 %v2959_v33  ;;  %3145 = vmatpush1.bf16.msra.mxu1 %v5612_v17  ;;  %v3297_v33 = vrot.slane %v5677_v62, %v4907_v52  ;;  %v3301_v52 = vrot.slane %v5677_v62, %v4934_v27 }
 0x69f   : > { %v2954_v49 = vpop.permute.xlu0 %2953  ;;  %v2961_v15 = vsel %vm2264_vm6, %v2950_v59, %v2952_v0 }
 0x6a0   : > { %v2962_v11 = vsel %vm2264_vm6, %v2952_v0, %v2954_v49 }
 0x6a1   : > { %4126 = vmatmul.mubr.msk.bf16.vlgmr.msra.gmra.mrb[28].mxu0 %vm1522_vm11, %v4429_v23  ;;  %3146 = vmatprep.subr.bf16.mxu1 %v2962_v11 }
 0x6a2   : > { %3147 = vmatpush1.bf16.msra.mxu1 %v2961_v15 }
 0x6a5   : > { %4127 = vmatmul.mubr.msk.bf16.vlgmr.msra.gmra.mrb[28].mxu1 %vm1522_vm11, %v4429_v23 }
 0x6af   : > { %v5671_v18 = vpop.permute.xlu1 %3205 }
 0x6b0   : > { %v5675_v32 = vpop.permute.xlu0 %3210 }
 0x754   : > { %v3047_v34 = vpop.f32.mrb[24].mxu0 }
 0x755   : > { %v3185_v35 = vmul.f32 %v3047_v34, %v4843_v2  ;;  %v3049_v1 = vpop.f32.mrb[25].mxu0 }
 0x756   : > { %v3186_v9 = vmul.f32 %v3049_v1, %v4843_v2  ;;  %v3051_v10 = vpop.f32.mrb[26].mxu0 }
 0x757   : > { %v3193_v29 = vmul.f32 %v3051_v10, %v4841_v63  ;;  %v3053_v45 = vpop.f32.mrb[27].mxu0  ;;  %v3213_v4 = vadd.f32 %v5671_v18, %v3185_v35 }
 0x758   : > { %v3194_v5 = vmul.f32 %v3053_v45, %v4841_v63  ;;  %v3214_v17 = vadd.f32 %v5671_v18, %v3186_v9 }
 0x759   : > { %v3221_v21 = vadd.f32 %v5675_v32, %v3193_v29  ;;  %vm3229_vm11 = vcmp.gt.f32.partialorder %v3213_v4, 0.0  ;;  %v3245_v60 = vmul.f32 0.01, %v3213_v4 }
 0x75a   : > { %v3222_v53 = vadd.f32 %v5675_v32, %v3194_v5  ;;  %vm3230_vm6 = vcmp.gt.f32.partialorder %v3214_v17, 0.0  ;;  %v3246_v56 = vmul.f32 0.01, %v3214_v17  ;;  %v3305_v5 = vrot.slane %v5677_v62, %v4939_v31 }
 0x75b   : > { %vm3237_vm5 = vcmp.gt.f32.partialorder %v3221_v21, 0.0  ;;  %v3253_v51 = vmul.f32 0.01, %v3221_v21  ;;  %v3261_v25 = vsel %vm3229_vm11, %v3213_v4, %v3245_v60 }
 0x75c   : > { %vm3238_vm7 = vcmp.gt.f32.partialorder %v3222_v53, 0.0  ;;  %v3254_v47 = vmul.f32 0.01, %v3222_v53  ;;  %v3262_v36 = vsel %vm3230_vm6, %v3214_v17, %v3246_v56  ;;  %v5689_v23 = vmul.f32 %v3285_v6, %v3261_v25 }
 0x75d   : > { %v3269_v43 = vsel %vm3237_vm5, %v3221_v21, %v3253_v51  ;;  %v5693_v54 = vmul.f32 %v3289_v46, %v3262_v36 }
 0x75e   : > { %v3270_v22 = vsel %vm3238_vm7, %v3222_v53, %v3254_v47  ;;  %v5691_v3 = vmul.f32 %v3285_v6, %v3269_v43 }
 0x75f   : > { %v5695_v39 = vmul.f32 %v3289_v46, %v3270_v22  ;;  %v4379_v8 = vpack.i.bf16 %v5693_v54, %v5689_v23 }
 0x761   : > { %4380 = vrot.lane.b32.xlu1 %v4379_v8, %s4520_s22  ;;  %v4384_v13 = vpack.i.bf16 %v5695_v39, %v5691_v3 }
 0x765   : > { %4385 = vrot.lane.b32.xlu1 %v4384_v13, %s4520_s22 }
 0x768   : > { %v3090_v57 = vpop.f32.mrb[24].mxu1 }
 0x769   : > { %v3187_v40 = vmul.f32 %v3090_v57, %v4843_v2  ;;  %v3092_v24 = vpop.f32.mrb[25].mxu1 }
 0x76a   : > { %v3188_v19 = vmul.f32 %v3092_v24, %v4843_v2  ;;  %v3094_v55 = vpop.f32.mrb[26].mxu1 }
 0x76b   : > { %v3215_v28 = vadd.f32 %v5671_v18, %v3187_v40  ;;  %v3195_v16 = vmul.f32 %v3094_v55, %v4841_v63  ;;  %v3096_v50 = vpop.f32.mrb[27].mxu1 }
 0x76c   : > { %v3216_v38 = vadd.f32 %v5671_v18, %v3188_v19  ;;  %v3196_v20 = vmul.f32 %v3096_v50, %v4841_v63 }
 0x76d   : > { %vm3231_vm8 = vcmp.gt.f32.partialorder %v3215_v28, 0.0  ;;  %v3247_v14 = vmul.f32 0.01, %v3215_v28  ;;  %v3223_v41 = vadd.f32 %v5675_v32, %v3195_v16 }
 0x76e   : > { %vm3232_vm9 = vcmp.gt.f32.partialorder %v3216_v38, 0.0  ;;  %v3248_v37 = vmul.f32 0.01, %v3216_v38  ;;  %v3224_v59 = vadd.f32 %v5675_v32, %v3196_v20 }
 0x76f   : > { %v3263_v44 = vsel %vm3231_vm8, %v3215_v28, %v3247_v14  ;;  %vm3239_vm10 = vcmp.gt.f32.partialorder %v3223_v41, 0.0  ;;  %v3255_v0 = vmul.f32 0.01, %v3223_v41 }
 0x770   : > { %v3264_v49 = vsel %vm3232_vm9, %v3216_v38, %v3248_v37  ;;  %vm3240_vm4 = vcmp.gt.f32.partialorder %v3224_v59, 0.0  ;;  %v3256_v11 = vmul.f32 0.01, %v3224_v59  ;;  %v5715_v26 = vmul.f32 %v3293_v7, %v3263_v44 }
 0x771   : > { %v3271_v15 = vsel %vm3239_vm10, %v3223_v41, %v3255_v0  ;;  %v5719_v48 = vmul.f32 %v3297_v33, %v3264_v49  ;;  %v3313_v0 = vrot.slane %v5677_v62, %v4964_v61  ;;  %vm3750_vm9 = vcmask 261120  }
 0x772   : > { %v5717_v30 = vmul.f32 %v3293_v7, %v3271_v15  ;;  %v3272_v34 = vsel %vm3240_vm4, %v3224_v59, %v3256_v11  ;;  %v3309_v59 = vrot.slane %v5677_v62, %v4960_v58  ;;  %vm3555_vm10 = vcmask 39936  }
 0x773   : > { %v5721_v35 = vmul.f32 %v3297_v33, %v3272_v34  ;;  %vm3558_vm4 = vcmask 48128  }
 0x774   : > { %v3133_v1 = vpop.f32.mrb[28].mxu0  ;;  %v4389_v6 = vpack.i.bf16 %v5717_v30, %v5715_v26 }
 0x775   : > { %v3189_v9 = vmul.f32 %v3133_v1, %v4843_v2  ;;  %v3135_v10 = vpop.f32.mrb[29].mxu0  ;;  %v4394_v7 = vpack.i.bf16 %v5721_v35, %v5719_v48 }
 0x776   : > { %v3190_v29 = vmul.f32 %v3135_v10, %v4843_v2  ;;  %v3137_v45 = vpop.f32.mrb[30].mxu0  ;;  %4390 = vrot.lane.b32.xlu0 %v4389_v6, %s4520_s22 }
 0x777   : > { %v3217_v4 = vadd.f32 %v5671_v18, %v3189_v9  ;;  %v3197_v17 = vmul.f32 %v3137_v45, %v4841_v63  ;;  %v3139_v21 = vpop.f32.mrb[31].mxu0  ;;  %4395 = vrot.lane.b32.xlu1 %v4394_v7, %s4520_s22 }
 0x778   : > { %v3218_v60 = vadd.f32 %v5671_v18, %v3190_v29  ;;  %v3198_v53 = vmul.f32 %v3139_v21, %v4841_v63  ;;  %v3176_v56 = vpop.f32.mrb[28].mxu1 }
 0x779   : > { %vm3233_vm12 = vcmp.gt.f32.partialorder %v3217_v4, 0.0  ;;  %v3249_v27 = vmul.f32 0.01, %v3217_v4  ;;  %v3225_v51 = vadd.f32 %v5675_v32, %v3197_v17  ;;  %v3191_v25 = vmul.f32 %v3176_v56, %v4843_v2  ;;  %v3178_v46 = vpop.f32.mrb[29].mxu1 }
 0x77a   : > { %vm3234_vm13 = vcmp.gt.f32.partialorder %v3218_v60, 0.0  ;;  %v3250_v31 = vmul.f32 0.01, %v3218_v60  ;;  %v3226_v47 = vadd.f32 %v5675_v32, %v3198_v53  ;;  %v3192_v36 = vmul.f32 %v3178_v46, %v4843_v2  ;;  %v3180_v43 = vpop.f32.mrb[30].mxu1 }
 0x77b   : > { %v3265_v22 = vsel %vm3233_vm12, %v3217_v4, %v3249_v27  ;;  %vm3241_vm14 = vcmp.gt.f32.partialorder %v3225_v51, 0.0  ;;  %v3257_v8 = vmul.f32 0.01, %v3225_v51  ;;  %v3219_v13 = vadd.f32 %v5671_v18, %v3191_v25  ;;  %v3182_v57 = vpop.f32.mrb[31].mxu1 }
 0x77c   : > { %v3266_v40 = vsel %vm3234_vm13, %v3218_v60, %v3250_v31  ;;  %vm3242_vm11 = vcmp.gt.f32.partialorder %v3226_v47, 0.0  ;;  %v3258_v24 = vmul.f32 0.01, %v3226_v47  ;;  %v5741_v19 = vmul.f32 %v3301_v52, %v3265_v22 }
 0x77d   : > { %v5743_v55 = vmul.f32 %v3305_v5, %v3266_v40  ;;  %v3273_v28 = vsel %vm3241_vm14, %v3225_v51, %v3257_v8  ;;  %v3251_v16 = vmul.f32 0.01, %v3219_v13  ;;  %v3220_v38 = vadd.f32 %v5671_v18, %v3192_v36 }
 0x77e   : > { %v5745_v50 = vmul.f32 %v3301_v52, %v3273_v28  ;;  %v3274_v2 = vsel %vm3242_vm11, %v3226_v47, %v3258_v24  ;;  %v3199_v20 = vmul.f32 %v3180_v43, %v4841_v63  ;;  %vm3235_vm6 = vcmp.gt.f32.partialorder %v3219_v13, 0.0 }
 0x77f   : > { %v5749_v14 = vmul.f32 %v3305_v5, %v3274_v2  ;;  %v3200_v41 = vmul.f32 %v3182_v57, %v4841_v63  ;;  %vm3236_vm5 = vcmp.gt.f32.partialorder %v3220_v38, 0.0  ;;  %v3252_v37 = vmul.f32 0.01, %v3220_v38 }
 0x780   : > { %v3227_v44 = vadd.f32 %v5675_v32, %v3199_v20  ;;  %v3267_v18 = vsel %vm3235_vm6, %v3219_v13, %v3251_v16  ;;  %v4399_v15 = vpack.i.bf16 %v5745_v50, %v5741_v19  ;;  %v4404_v9 = vpack.i.bf16 %v5743_v55, %v4886_v12 }
 0x781   : > { %v3228_v33 = vadd.f32 %v5675_v32, %v3200_v41  ;;  %v3268_v49 = vsel %vm3236_vm5, %v3220_v38, %v3252_v37  ;;  %v5763_v58 = vmul.f32 %v3309_v59, %v3267_v18  ;;  %v4409_v10 = vpack.i.bf16 %v5749_v14, %v4889_v42 }
 0x782   : > { %vm3243_vm7 = vcmp.gt.f32.partialorder %v3227_v44, 0.0  ;;  %v3259_v63 = vmul.f32 0.01, %v3227_v44  ;;  %4400 = vrot.lane.b32.xlu0 %v4399_v15, %s4520_s22  ;;  %v5770_v61 = vmul.f32 %v3313_v0, %v3268_v49  ;;  %4405 = vrot.lane.b32.xlu1 %v4404_v9, %s4520_s22  ;;  %vm3561_vm12 = vcmask 56320  }
 0x783   : > { %vm3244_vm8 = vcmp.gt.f32.partialorder %v3228_v33, 0.0  ;;  %v3260_v11 = vmul.f32 0.01, %v3228_v33 }
 0x784   : > { %v3275_v34 = vsel %vm3243_vm7, %v3227_v44, %v3259_v63 }
 0x785   : > { %v5765_v1 = vmul.f32 %v3309_v59, %v3275_v34  ;;  %v3276_v32 = vsel %vm3244_vm8, %v3228_v33, %v3260_v11 }
 0x786   : > { %v5772_v62 = vmul.f32 %v3313_v0, %v3276_v32  ;;  %4410 = vrot.lane.b32.xlu0 %v4409_v10, %s4520_s22 }
 0x787   : > { %v4414_v52 = vpack.i.bf16 %v5765_v1, %v5763_v58 }
 0x788   : > { %v4419_v29 = vpack.i.bf16 %v5772_v62, %v5770_v61 }
 0x789   : > { %4415 = vrot.lane.b32.xlu1 %v4414_v52, %s4520_s22 }
 0x78a   : > { %4420 = vrot.lane.b32.xlu0 %v4419_v29, %s4520_s22  ;;  %s4525_s22 = smov 113  }
 0x7d3   : > { %v4381_v12 = vpop.permute.xlu1 %4380 }
 0x7d4   : > { %v4383_v45 = vunpack.i.h.bf16 %v4381_v12  ;;  %v4382_v4 = vunpack.i.l.bf16 %v4381_v12 }
 0x7d6   : > { %v3437_v5 = vsel %vm2065_vm15, %v4382_v4, %v4383_v45 }
 0x7d7   : > { %v4386_v17 = vpop.permute.xlu1 %4385  ;;  %v3469_v60 = vadd.f32 %v3437_v5, %v5693_v54 }
 0x7d8   : > { %v4388_v21 = vunpack.i.h.bf16 %v4386_v17  ;;  %v4387_v42 = vunpack.i.l.bf16 %v4386_v17 }
 0x7d9   : > { %v3485_v6 = vmul.f32 0.5, %v3469_v60 }
 0x7da   : > { %v3445_v53 = vsel %vm2065_vm15, %v4387_v42, %v4388_v21 }
 0x7db   : > { %v3477_v56 = vadd.f32 %v3445_v53, %v5695_v39 }
 0x7dd   : > { %v3493_v27 = vmul.f32 0.5, %v3477_v56 }
 0x7df   : > { %v3501_v51 = vpack.c.bf16 %v3493_v27, %v3485_v6 }
 0x7e1   : > { %3525 = vrot.lane.b32.xlu1 %v3501_v51, %s4513_s17  ;;  %s4526_s17 = smov 114  }
 0x7e5   : > { %3568 = vrot.lane.b32.xlu1 %v3501_v51, %s4525_s22 }
 0x7e8   : > { %v4391_v25 = vpop.permute.xlu0 %4390 }
 0x7e9   : > { %v4393_v46 = vunpack.i.h.bf16 %v4391_v25  ;;  %v4392_v31 = vunpack.i.l.bf16 %v4391_v25  ;;  %v4396_v8 = vpop.permute.xlu1 %4395 }
 0x7ea   : > { %v4398_v13 = vunpack.i.h.bf16 %v4396_v8  ;;  %v4397_v57 = vunpack.i.l.bf16 %v4396_v8  ;;  %v3614_v8 = vld [vmem:[%s5979_s8] sm:$0xff] }
 0x7eb   : > { %v3438_v47 = vsel %vm2065_vm15, %v4383_v45, %v4392_v31  ;;  %v3446_v36 = vsel %vm2065_vm15, %v4388_v21, %v4393_v46 }
 0x7ec   : > { %v3470_v54 = vadd.f32 %v3438_v47, %v5715_v26  ;;  %v3478_v43 = vadd.f32 %v3446_v36, %v5717_v30  ;;  %v3447_v24 = vsel %vm2065_vm15, %v4393_v46, %v4398_v13  ;;  %v3439_v28 = vsel %vm2065_vm15, %v4392_v31, %v4397_v57 }
 0x7ed   : > { %v3479_v16 = vadd.f32 %v3447_v24, %v5721_v35  ;;  %v3471_v2 = vadd.f32 %v3439_v28, %v5719_v48  ;;  %v3619_v24 = vld [vmem:[%s5979_s8 + $0x28] sm:$0xff]  ;;  %v3620_v28 = vld [vmem:[%s5979_s8 + $0x30] sm:$0xff] }
 0x7ee   : > { %v3486_v22 = vmul.f32 0.5, %v3470_v54  ;;  %v3494_v39 = vmul.f32 0.5, %v3478_v43 }
 0x7ef   : > { %v3495_v26 = vmul.f32 0.5, %v3479_v16  ;;  %v3487_v20 = vmul.f32 0.5, %v3471_v2  ;;  %v3621_v16 = vld [vmem:[%s5979_s8 + $0x38] sm:$0xff]  ;;  %v3622_v2 = vld [vmem:[%s5979_s8 + $0x40] sm:$0xff] }
 0x7f0   : > { %v3502_v40 = vpack.c.bf16 %v3494_v39, %v3486_v22  ;;  %v4430_v39 = vld [vmem:[%s5978_s7] sm:$0xff]  }
 0x7f1   : > { %v3503_v44 = vpack.c.bf16 %v3495_v26, %v3487_v20  ;;  %4180 = vmatprep.mubr.msk.bf16.mxu0 %vm3750_vm9, %v4430_v39  ;;  %v3624_v26 = vld [vmem:[%s5979_s8 + $0x50] sm:$0xff]  ;;  %v3625_v20 = vld [vmem:[%s5979_s8 + $0x58] sm:$0xff] }
 0x7f2   : > { %3570 = vrot.lane.b32.xlu1 %v3502_v40, %s4526_s17 }
 0x7f4   : > { %v4401_v38 = vpop.permute.xlu0 %4400  ;;  %v4406_v41 = vpop.permute.xlu1 %4405 }
 0x7f5   : > { %v4402_v30 = vunpack.i.l.bf16 %v4401_v38  ;;  %v4408_v7 = vunpack.i.h.bf16 %v4406_v41  ;;  %v4407_v37 = vunpack.i.l.bf16 %v4406_v41  ;;  %v4403_v59 = vunpack.i.h.bf16 %v4401_v38  ;;  %v3623_v38 = vld [vmem:[%s5979_s8 + $0x48] sm:$0xff] }
 0x7f6   : > { %3531 = vrot.lane.b32.xlu1 %v3503_v44, %s4511_s11  ;;  %s4527_s11 = smov 115   ;;  %v3627_v41 = vld [vmem:[%s5979_s8 + $0x68] sm:$0xff] }
 0x7f7   : > { %v3441_v18 = vsel %vm2065_vm15, %v4402_v30, %v4408_v7  ;;  %v3436_v0 = vsel %vm2065_vm15, %v4407_v37, %v4382_v4  ;;  %v3440_v10 = vsel %vm2065_vm15, %v4397_v57, %v4402_v30  ;;  %v3448_v52 = vsel %vm2065_vm15, %v4398_v13, %v4403_v59  ;;  %v3616_v13 = vld [vmem:[%s5979_s8 + $0x10] sm:$0xff]  ;;  %v3617_v57 = vld [vmem:[%s5979_s8 + $0x18] sm:$0xff]  ;;  %v3626_v30 = vld [vmem:[%s5979_s8 + $0x60] sm:$0xff] }
 0x7f8   : > { %v4411_v33 = vpop.permute.xlu0 %4410  ;;  %v3473_v48 = vadd.f32 %v3441_v18, %v5743_v55  ;;  %v3468_v35 = vadd.f32 %v3436_v0, %v5689_v23  ;;  %v3629_v37 = vld [vmem:[%s5979_s8 + $0x78] sm:$0xff] }
 0x7f9   : > { %v4413_v49 = vunpack.i.h.bf16 %v4411_v33  ;;  %v4412_v63 = vunpack.i.l.bf16 %v4411_v33 }
 0x7fa   : > { %3572 = vrot.lane.b32.xlu1 %v3503_v44, %s4527_s11  ;;  %v3489_v17 = vmul.f32 0.5, %v3473_v48  ;;  %v3484_v21 = vmul.f32 0.5, %v3468_v35  ;;  %s4165_s11 = sshll.u32 %s5982_s10, 7 }
 0x7fb   : > { %v3444_v11 = vsel %vm2065_vm15, %v4412_v63, %v4387_v42  ;;  %v3449_v15 = vsel %vm2065_vm15, %v4403_v59, %v4413_v49  ;;  %v4416_v9 = vpop.permute.xlu1 %4415 }
 0x7fc   : > { %v3476_v34 = vadd.f32 %v3444_v11, %v5691_v3  ;;  %v3481_v32 = vadd.f32 %v3449_v15, %v5749_v14  ;;  %v4418_v29 = vunpack.i.h.bf16 %v4416_v9  ;;  %v4417_v12 = vunpack.i.l.bf16 %v4416_v9  ;;  %v4421_v45 = vpop.permute.xlu0 %4420 }
 0x7fd   : > { %v4423_v23 = vunpack.i.h.bf16 %v4421_v45  ;;  %v4422_v5 = vunpack.i.l.bf16 %v4421_v45  ;;  %v3472_v3 = vadd.f32 %v3440_v10, %v5741_v19  ;;  %v3480_v14 = vadd.f32 %v3448_v52, %v5745_v50 }
 0x7fe   : > { %v3492_v4 = vmul.f32 0.5, %v3476_v34  ;;  %v3497_v55 = vmul.f32 0.5, %v3481_v32  ;;  %v3450_v46 = vsel %vm2065_vm15, %v4413_v49, %v4418_v29  ;;  %v3442_v31 = vsel %vm2065_vm15, %v4408_v7, %v4417_v12  ;;  %v3628_v7 = vld [vmem:[%s5979_s8 + $0x70] sm:$0xff] }
 0x7ff   : > { %v3443_v42 = vsel %vm2065_vm15, %v4417_v12, %v4422_v5  ;;  %v3451_v60 = vsel %vm2065_vm15, %v4418_v29, %v4423_v23  ;;  %v3488_v51 = vmul.f32 0.5, %v3472_v3  ;;  %v3496_v19 = vmul.f32 0.5, %v3480_v14 }
 0x800   : > { %v3475_v53 = vadd.f32 %v3443_v42, %v5770_v61  ;;  %v3483_v56 = vadd.f32 %v3451_v60, %v5772_v62  ;;  %v3505_v6 = vpack.c.bf16 %v3497_v55, %v3489_v17  ;;  %v5814_v27 = vpack.c.bf16 %v3492_v4, %v3484_v21 }
 0x801   : > { %v3482_v61 = vadd.f32 %v3450_v46, %v5765_v1  ;;  %v3474_v62 = vadd.f32 %v3442_v31, %v5763_v58  ;;  %v3504_v36 = vpack.c.bf16 %v3496_v19, %v3488_v51  ;;  %v4431_v58 = vld [vmem:[%s5978_s7 + $0x20] sm:$0xff]   ;;  %v3615_v1 = vld [vmem:[%s5979_s8 + $0x8] sm:$0xff]  ;;  %v4436_v51 = vld [vmem:[%s5978_s7 + $0x18] sm:$0xff]  }
 0x802   : > { %3537 = vrot.lane.b32.xlu1 %v3505_v6, %s4528_s27  ;;  %3566 = vrot.lane.b32.xlu0 %v5814_v27, %s4529_s28  ;;  %v3491_v25 = vmul.f32 0.5, %v3475_v53  ;;  %v3499_v50 = vmul.f32 0.5, %v3483_v56  ;;  %v4432_v53 = vld [vmem:[%s5978_s7 + $0x8] sm:$0xff]   ;;  %v4437_v19 = vld [vmem:[%s5978_s7 + $0x38] sm:$0xff]  }
 0x803   : > { %v3498_v54 = vmul.f32 0.5, %v3482_v61  ;;  %v3490_v43 = vmul.f32 0.5, %v3474_v62  ;;  %4188 = vmatprep.mubr.msk.bf16.mxu1 %vm3750_vm9, %v4431_v58  ;;  %v4433_v56 = vld [vmem:[%s5978_s7 + $0x28] sm:$0xff]  }
 0x804   : > { %v3507_v47 = vpack.c.bf16 %v3499_v50, %v3491_v25 }
 0x805   : > { %v3506_v22 = vpack.c.bf16 %v3498_v54, %v3490_v43 }
 0x806   : > { %3576 = vrot.lane.b32.xlu1 %v3505_v6, %s4530_s29  ;;  %3528 = vrot.lane.b32.xlu0 %v3502_v40, %s4512_s12  ;;  %v3618_v40 = vld [vmem:[%s5979_s8 + $0x20] sm:$0xff]  ;;  %v4434_v6 = vld [vmem:[%s5978_s7 + $0x10] sm:$0xff]   ;;  %s5934_s29 = scalar_lea.vmem %s5980_s9, %s4165_s11 }
 0x80a   : > { %3580 = vrot.lane.b32.xlu1 %v3507_v47, %s4531_s13  ;;  %3534 = vrot.lane.b32.xlu0 %v3504_v36, %s4519_s21  ;;  %s4534_s21 = smov 7  }
 0x80e   : > { %3574 = vrot.lane.b32.xlu0 %v3504_v36, %s4532_s14  ;;  %3637 = vperm.xlu1 %4425, %v3615_v1  }
 0x812   : > { %3540 = vrot.lane.b32.xlu0 %v3506_v22, %s4533_s19  ;;  %3642 = vperm.xlu1 %4425, %v3616_v13  }
 0x816   : > { %3543 = vrot.lane.b32.xlu0 %v3507_v47, %s4534_s21  ;;  %3652 = vperm.xlu1 %4425, %v3618_v40  }
 0x81a   : > { %3578 = vrot.lane.b32.xlu0 %v3506_v22, %s4535_s20  ;;  %3662 = vperm.xlu1 %4425, %v3620_v28  }
 0x81e   : > { %3632 = vperm.xlu0 %4424, %v3614_v8   ;;  %3672 = vperm.xlu1 %4425, %v3622_v2  }
 0x822   : > { %3647 = vperm.xlu0 %4424, %v3617_v57   ;;  %3682 = vperm.xlu1 %4425, %v3624_v26  }
 0x826   : > { %3657 = vperm.xlu0 %4424, %v3619_v24   ;;  %3692 = vperm.xlu1 %4425, %v3626_v30  }
 0x82a   : > { %3667 = vperm.xlu0 %4424, %v3621_v16   ;;  %3702 = vperm.xlu1 %4425, %v3628_v7  }
 0x82e   : > { %3677 = vperm.xlu0 %4424, %v3623_v38  }
 0x832   : > { %3687 = vperm.xlu0 %4424, %v3625_v20  }
 0x836   : > { %3697 = vperm.xlu0 %4424, %v3627_v41  }
 0x83a   : > { %3707 = vperm.xlu0 %4424, %v3629_v37  }
 0x853   : > { %v3526_v59 = vpop.permute.xlu1 %3525 }
 0x854   : > { %v3547_v35 = vsel %vm552_vm2, %v5814_v27, %v3526_v59  ;;  %v4435_v27 = vld [vmem:[%s5978_s7 + $0x30] sm:$0xff]  }
 0x857   : > { %v3569_v44 = vpop.permute.xlu1 %3568 }
 0x864   : > { %v3571_v33 = vpop.permute.xlu1 %3570 }
 0x868   : > { %v3532_v0 = vpop.permute.xlu1 %3531 }
 0x86c   : > { %v3573_v48 = vpop.permute.xlu1 %3572 }
 0x874   : > { %v3567_v18 = vpop.permute.xlu0 %3566  ;;  %v3538_v34 = vpop.permute.xlu1 %3537 }
 0x875   : > { %v3584_v32 = vsel %vm552_vm2, %v3567_v18, %v3569_v44 }
 0x876   : > { %v3586_v29 = vsel %vm491_vm1, %v3584_v32, %v3571_v33 }
 0x877   : > { %v3588_v4 = vsel %vm430_vm0, %v3586_v29, %v3573_v48 }
 0x878   : > { %v3529_v49 = vpop.permute.xlu0 %3528  ;;  %v3577_v12 = vpop.permute.xlu1 %3576 }
 0x879   : > { %v3549_v11 = vsel %vm491_vm1, %v3547_v35, %v3529_v49 }
 0x87a   : > { %v3552_v9 = vsel %vm430_vm0, %v3549_v11, %v3532_v0 }
 0x87c   : > { %v3535_v63 = vpop.permute.xlu0 %3534  ;;  %v3581_v14 = vpop.permute.xlu1 %3580 }
 0x87d   : > { %v3554_v10 = vsel %vm2126_vm3, %v3552_v9, %v3535_v63 }
 0x87e   : > { %v3557_v45 = vsel %vm3555_vm10, %v3554_v10, %v3538_v34 }
 0x880   : > { %v3575_v15 = vpop.permute.xlu0 %3574 }
 0x881   : > { %v3590_v5 = vsel %vm2126_vm3, %v3588_v4, %v3575_v15 }
 0x882   : > { %v3592_v21 = vsel %vm3555_vm10, %v3590_v5, %v3577_v12 }
 0x884   : > { %v3541_v52 = vpop.permute.xlu0 %3540 }
 0x885   : > { %v3560_v55 = vsel %vm3558_vm4, %v3557_v45, %v3541_v52 }
 0x888   : > { %v3544_v23 = vpop.permute.xlu0 %3543 }
 0x889   : > { %v3563_v17 = vsel %vm3561_vm12, %v3560_v55, %v3544_v23 }
 0x88a   : > { %4176 = vmatprep.subr.bf16.mxu0 %v3563_v17  ;;  %4196 = vmatprep.subr.bf16.mxu1 %v3563_v17 }
 0x88b   : > { %4177 = vmatpush3.bf16.msra.mxu0 %v3563_v17  ;;  %4198 = vmatpush3.bf16.msra.mxu1 %v3563_v17 }
 0x88c   : > { %v3579_v3 = vpop.permute.xlu0 %3578 }
 0x88d   : > { %v3594_v42 = vsel %vm3558_vm4, %v3592_v21, %v3579_v3  ;;  %v3638_v25 = vpop.permute.xlu1 %3637 }
 0x88e   : > { %v3596_v60 = vsel %vm3561_vm12, %v3594_v42, %v3581_v14 }
 0x88f   : > { %4178 = vmatprep.subr.bf16.mxu0 %v3596_v60  ;;  %4197 = vmatprep.subr.bf16.mxu1 %v3596_v60 }
 0x890   : > { %4179 = vmatpush3.bf16.msra.mxu0 %v3596_v60  ;;  %4199 = vmatpush3.bf16.msra.mxu1 %v3596_v60 }
 0x891   : > { %v3643_v50 = vpop.permute.xlu1 %3642 }
 0x893   : > { %4181 = vmatmul.mubr.msk.bf16.vlgmr.msra.gmra.mrb[32].mxu0 %vm3750_vm9, %v4432_v53  ;;  %4189 = vmatmul.mubr.msk.bf16.vlgmr.msra.gmra.mrb[32].mxu1 %vm3750_vm9, %v4433_v56 }
 0x894   : > { %4184 = vmatprep.mubr.msk.bf16.mxu0 %vm3750_vm9, %v4434_v6  ;;  %4192 = vmatprep.mubr.msk.bf16.mxu1 %vm3750_vm9, %v4435_v27 }
 0x895   : > { %v5918_v31 = vpop.permute.xlu1 %3652 }
 0x899   : > { %v3663_v62 = vpop.permute.xlu1 %3662 }
 0x89b   : > { %4185 = vmatmul.mubr.msk.bf16.gmra.mrb[36].mxu0 %vm3750_vm9, %v4436_v51  ;;  %4193 = vmatmul.mubr.msk.bf16.gmra.mrb[36].mxu1 %vm3750_vm9, %v4437_v19 }
 0x89d   : > { %v3633_v46 = vpop.permute.xlu0 %3632  ;;  %v3673_v36 = vpop.permute.xlu1 %3672 }
 0x8a1   : > { %v3648_v61 = vpop.permute.xlu0 %3647  ;;  %v3683_v43 = vpop.permute.xlu1 %3682 }
 0x8a5   : > { %v5920_v47 = vpop.permute.xlu0 %3657  ;;  %v5924_v39 = vpop.permute.xlu1 %3692 }
 0x8a9   : > { %v5922_v54 = vpop.permute.xlu0 %3667  ;;  %v3703_v35 = vpop.permute.xlu1 %3702 }
 0x8ad   : > { %v3678_v22 = vpop.permute.xlu0 %3677 }
 0x8b1   : > { %v3688_v20 = vpop.permute.xlu0 %3687 }
 0x8b5   : > { %v3698_v60 = vpop.permute.xlu0 %3697 }
 0x966   : > { %v4182_v58 = vpop.f32.mrb[32].mxu0  ;;  %v4190_v1 = vpop.f32.mrb[32].mxu1 }
 0x967   : > { %v3818_v8 = vadd.f32 %v4182_v58, %v3643_v50  ;;  %v3850_v13 = vadd.f32 %v4190_v1, %v3683_v43  ;;  %v3809_v57 = vpop.f32.mrb[33].mxu0  ;;  %v3841_v40 = vpop.f32.mrb[33].mxu1 }
 0x968   : > { %v3810_v24 = vadd.f32 %v3809_v57, %v3633_v46  ;;  %v3842_v28 = vadd.f32 %v3841_v40, %v3673_v36  ;;  %v4183_v16 = vpop.f32.mrb[34].mxu0  ;;  %v4191_v2 = vpop.f32.mrb[34].mxu1 }
 0x969   : > { %vm3874_vm0 = vcmp.gt.f32.partialorder %v3818_v8, 0.0  ;;  %v3890_v38 = vmul.f32 0.01, %v3818_v8  ;;  %vm3882_vm1 = vcmp.gt.f32.partialorder %v3850_v13, 0.0  ;;  %v3898_v26 = vmul.f32 0.01, %v3850_v13  ;;  %v3708_v57 = vpop.permute.xlu0 %3707 }
 0x96a   : > { %vm3872_vm2 = vcmp.gt.f32.partialorder %v3810_v24, 0.0  ;;  %v3888_v30 = vmul.f32 0.01, %v3810_v24  ;;  %vm3880_vm3 = vcmp.gt.f32.partialorder %v3842_v28, 0.0  ;;  %v3896_v41 = vmul.f32 0.01, %v3842_v28 }
 0x96b   : > { %v3906_v7 = vsel %vm3874_vm0, %v3818_v8, %v3890_v38  ;;  %v3914_v37 = vsel %vm3882_vm1, %v3850_v13, %v3898_v26  ;;  %v3821_v59 = vadd.f32 %v4183_v16, %v3648_v61  ;;  %v3853_v44 = vadd.f32 %v4191_v2, %v3688_v20  ;;  %v3812_v33 = vpop.f32.mrb[35].mxu0  ;;  %v3844_v18 = vpop.f32.mrb[35].mxu1 }
 0x96c   : > { %v4148_v0 = vmul.f32 -1.442695, %v3906_v7  ;;  %v4156_v49 = vmul.f32 -1.442695, %v3914_v37  ;;  %v3904_v63 = vsel %vm3872_vm2, %v3810_v24, %v3888_v30  ;;  %v3912_v48 = vsel %vm3880_vm3, %v3842_v28, %v3896_v41 }
 0x96d   : > { %v4146_v11 = vmul.f32 -1.442695, %v3904_v63  ;;  %v4154_v15 = vmul.f32 -1.442695, %v3912_v48  ;;  %vm3875_vm13 = vcmp.gt.f32.partialorder %v3821_v59, 0.0  ;;  %vm3883_vm14 = vcmp.gt.f32.partialorder %v3853_v44, 0.0 }
 0x96e   : > { %4438 = vpow2.f32 %v4148_v0  ;;  %v3891_v34 = vmul.f32 0.01, %v3821_v59  ;;  %v3899_v32 = vmul.f32 0.01, %v3853_v44  ;;  %v3813_v9 = vadd.f32 %v3812_v33, %v3638_v25  ;;  %v4186_v10 = vpop.f32.mrb[36].mxu0  ;;  %v4194_v52 = vpop.f32.mrb[36].mxu1 }
 0x96f   : > { %4440 = vpow2.f32 %v4156_v49  ;;  %v3845_v29 = vadd.f32 %v3844_v18, %v3678_v22  ;;  %v3834_v12 = vadd.f32 %v4186_v10, %v3663_v62  ;;  %v3866_v45 = vadd.f32 %v4194_v52, %v3703_v35  ;;  %v3825_v4 = vpop.f32.mrb[37].mxu0  ;;  %v3857_v55 = vpop.f32.mrb[37].mxu1 }
 0x970   : > { %4442 = vpow2.f32 %v4146_v11  ;;  %v3907_v23 = vsel %vm3875_vm13, %v3821_v59, %v3891_v34  ;;  %v3915_v5 = vsel %vm3883_vm14, %v3853_v44, %v3899_v32  ;;  %vm3873_vm11 = vcmp.gt.f32.partialorder %v3813_v9, 0.0  ;;  %v4187_v17 = vpop.f32.mrb[38].mxu0  ;;  %v4195_v21 = vpop.f32.mrb[38].mxu1 }
 0x971   : > { %4444 = vpow2.f32 %v4154_v15  ;;  %v4149_v3 = vmul.f32 -1.442695, %v3907_v23  ;;  %v4157_v14 = vmul.f32 -1.442695, %v3915_v5  ;;  %v3889_v42 = vmul.f32 0.01, %v3813_v9 }
 0x972   : > { %vm3881_vm6 = vcmp.gt.f32.partialorder %v3845_v29, 0.0  ;;  %v3897_v53 = vmul.f32 0.01, %v3845_v29  ;;  %vm3878_vm5 = vcmp.gt.f32.partialorder %v3834_v12, 0.0  ;;  %v3894_v56 = vmul.f32 0.01, %v3834_v12 }
 0x973   : > { %4446 = vpow2.f32 %v4149_v3  ;;  %v3905_v6 = vsel %vm3873_vm11, %v3813_v9, %v3889_v42  ;;  %vm3886_vm7 = vcmp.gt.f32.partialorder %v3866_v45, 0.0  ;;  %v3902_v27 = vmul.f32 0.01, %v3866_v45  ;;  %v3828_v51 = vpop.f32.mrb[39].mxu0  ;;  %v3860_v19 = vpop.f32.mrb[39].mxu1 }
 0x974   : > { %4448 = vpow2.f32 %v4157_v14  ;;  %v4147_v25 = vmul.f32 -1.442695, %v3905_v6  ;;  %v3913_v50 = vsel %vm3881_vm6, %v3845_v29, %v3897_v53  ;;  %v3910_v46 = vsel %vm3878_vm5, %v3834_v12, %v3894_v56 }
 0x975   : > { %v4155_v61 = vmul.f32 -1.442695, %v3913_v50  ;;  %v4152_v62 = vmul.f32 -1.442695, %v3910_v46  ;;  %v3918_v36 = vsel %vm3886_vm7, %v3866_v45, %v3902_v27  ;;  %v3826_v43 = vadd.f32 %v3825_v4, %v5918_v31 }
 0x976   : > { %4450 = vpow2.f32 %v4147_v25  ;;  %v4160_v22 = vmul.f32 -1.442695, %v3918_v36  ;;  %v3858_v58 = vadd.f32 %v3857_v55, %v5924_v39  ;;  %v3837_v1 = vadd.f32 %v4187_v17, %v5922_v54 }
 0x977   : > { %4452 = vpow2.f32 %v4155_v61  ;;  %vm3876_vm8 = vcmp.gt.f32.partialorder %v3826_v43, 0.0  ;;  %v3892_v8 = vmul.f32 0.01, %v3826_v43  ;;  %v3869_v2 = vadd.f32 %v4195_v21, %v3708_v57 }
 0x978   : > { %v4439_v13 = vpop.eup %4438  ;;  %4454 = vpow2.f32 %v4152_v62  ;;  %vm3884_vm9 = vcmp.gt.f32.partialorder %v3858_v58, 0.0  ;;  %v3900_v40 = vmul.f32 0.01, %v3858_v58  ;;  %v3895_v26 = vmul.f32 0.01, %v3837_v1 }
 0x979   : > { %v4441_v24 = vpop.eup %4440  ;;  %v3970_v28 = vadd.f32 1.0, %v4439_v13  ;;  %4456 = vpow2.f32 %v4160_v22  ;;  %v3908_v16 = vsel %vm3876_vm8, %v3826_v43, %v3892_v8  ;;  %vm3879_vm10 = vcmp.gt.f32.partialorder %v3837_v1, 0.0 }
 0x97a   : > { %v4443_v31 = vpop.eup %4442  ;;  %v3978_v38 = vadd.f32 1.0, %v4441_v24  ;;  %v4150_v54 = vmul.f32 -1.442695, %v3908_v16  ;;  %v3916_v30 = vsel %vm3884_vm9, %v3858_v58, %v3900_v40  ;;  %v3903_v37 = vmul.f32 0.01, %v3869_v2 }
 0x97b   : > { %v4445_v20 = vpop.eup %4444  ;;  %4458 = vrcp.f32 %v3970_v28  ;;  %v3968_v39 = vadd.f32 1.0, %v4443_v31  ;;  %v3829_v59 = vadd.f32 %v3828_v51, %v5920_v47  ;;  %v3861_v44 = vadd.f32 %v3860_v19, %v3698_v60 }
 0x97c   : > { %4460 = vrcp.f32 %v3978_v38  ;;  %v3976_v41 = vadd.f32 1.0, %v4445_v20  ;;  %v4158_v0 = vmul.f32 -1.442695, %v3916_v30  ;;  %vm3887_vm4 = vcmp.gt.f32.partialorder %v3869_v2, 0.0 }
 0x97d   : > { %v4447_v7 = vpop.eup %4446  ;;  %4462 = vrcp.f32 %v3968_v39  ;;  %v3911_v63 = vsel %vm3879_vm10, %v3837_v1, %v3895_v26  ;;  %vm3877_vm12 = vcmp.gt.f32.partialorder %v3829_v59, 0.0  ;;  %v3893_v35 = vmul.f32 0.01, %v3829_v59 }
 0x97e   : > { %v4449_v33 = vpop.eup %4448  ;;  %4464 = vrcp.f32 %v3976_v41  ;;  %v3971_v18 = vadd.f32 1.0, %v4447_v7  ;;  %vm3885_vm0 = vcmp.gt.f32.partialorder %v3861_v44, 0.0  ;;  %v3901_v11 = vmul.f32 0.01, %v3861_v44 }
 0x97f   : > { %v3979_v49 = vadd.f32 1.0, %v4449_v33  ;;  %4466 = vpow2.f32 %v4150_v54  ;;  %v3919_v47 = vsel %vm3887_vm4, %v3869_v2, %v3903_v37  ;;  %v3909_v10 = vsel %vm3877_vm12, %v3829_v59, %v3893_v35 }
 0x980   : > { %v4451_v48 = vpop.eup %4450  ;;  %4468 = vrcp.f32 %v3971_v18  ;;  %v4153_v12 = vmul.f32 -1.442695, %v3911_v63  ;;  %v3917_v45 = vsel %vm3885_vm0, %v3861_v44, %v3901_v11  ;;  %v4161_v55 = vmul.f32 -1.442695, %v3919_v47 }
 0x981   : > { %v4453_v15 = vpop.eup %4452  ;;  %4470 = vrcp.f32 %v3979_v49  ;;  %v3969_v34 = vadd.f32 1.0, %v4451_v48  ;;  %v4151_v5 = vmul.f32 -1.442695, %v3909_v10  ;;  %v4159_v21 = vmul.f32 -1.442695, %v3917_v45 }
 0x982   : > { %v4455_v32 = vpop.eup %4454  ;;  %v3977_v9 = vadd.f32 1.0, %v4453_v15  ;;  %4472 = vpow2.f32 %v4158_v0 }
 0x983   : > { %v4457_v52 = vpop.eup %4456  ;;  %4474 = vrcp.f32 %v3969_v34  ;;  %v3974_v29 = vadd.f32 1.0, %v4455_v32 }
 0x984   : > { %4476 = vrcp.f32 %v3977_v9  ;;  %v3982_v4 = vadd.f32 1.0, %v4457_v52 }
 0x985   : > { %v4459_v23 = vpop.eup %4458  ;;  %4478 = vrcp.f32 %v3974_v29 }
 0x986   : > { %v4461_v17 = vpop.eup %4460  ;;  %4018 = vst.msk [vmem:[%s5934_s29 + $0x10] sm:$0xff] %vm2065_vm15, %v4459_v23  ;;  %4480 = vrcp.f32 %v3982_v4 }
 0x987   : > { %v4463_v3 = vpop.eup %4462  ;;  %4026 = vst.msk [vmem:[%s5934_s29 + $0x50] sm:$0xff] %vm2065_vm15, %v4461_v17  ;;  %4482 = vpow2.f32 %v4153_v12 }
 0x988   : > { %v4465_v14 = vpop.eup %4464  ;;  %4016 = vst.msk [vmem:[%s5934_s29] sm:$0xff] %vm2065_vm15, %v4463_v3  ;;  %4484 = vpow2.f32 %v4161_v55 }
 0x989   : > { %v4467_v42 = vpop.eup %4466  ;;  %4024 = vst.msk [vmem:[%s5934_s29 + $0x40] sm:$0xff] %vm2065_vm15, %v4465_v14  ;;  %4486 = vpow2.f32 %v4151_v5 }
 0x98a   : > { %v4469_v60 = vpop.eup %4468  ;;  %v3972_v53 = vadd.f32 1.0, %v4467_v42  ;;  %4488 = vpow2.f32 %v4159_v21 }
 0x98b   : > { %v4471_v56 = vpop.eup %4470  ;;  %4019 = vst.msk [vmem:[%s5934_s29 + $0x18] sm:$0xff] %vm2065_vm15, %v4469_v60 }
 0x98c   : > { %v4473_v6 = vpop.eup %4472  ;;  %4027 = vst.msk [vmem:[%s5934_s29 + $0x58] sm:$0xff] %vm2065_vm15, %v4471_v56  ;;  %4490 = vrcp.f32 %v3972_v53 }
 0x98d   : > { %v4475_v27 = vpop.eup %4474  ;;  %v3980_v51 = vadd.f32 1.0, %v4473_v6 }
 0x98e   : > { %v4477_v19 = vpop.eup %4476  ;;  %4017 = vst.msk [vmem:[%s5934_s29 + $0x8] sm:$0xff] %vm2065_vm15, %v4475_v27 }
 0x98f   : > { %v4479_v25 = vpop.eup %4478  ;;  %4025 = vst.msk [vmem:[%s5934_s29 + $0x48] sm:$0xff] %vm2065_vm15, %v4477_v19  ;;  %4492 = vrcp.f32 %v3980_v51 }
 0x990   : > { %v4481_v50 = vpop.eup %4480  ;;  %4022 = vst.msk [vmem:[%s5934_s29 + $0x30] sm:$0xff] %vm2065_vm15, %v4479_v25 }
 0x991   : > { %v4483_v46 = vpop.eup %4482  ;;  %4030 = vst.msk [vmem:[%s5934_s29 + $0x70] sm:$0xff] %vm2065_vm15, %v4481_v50 }
 0x992   : > { %v4485_v61 = vpop.eup %4484  ;;  %v3975_v62 = vadd.f32 1.0, %v4483_v46 }
 0x993   : > { %v4487_v36 = vpop.eup %4486  ;;  %v3983_v43 = vadd.f32 1.0, %v4485_v61 }
 0x994   : > { %v4489_v22 = vpop.eup %4488  ;;  %4494 = vrcp.f32 %v3975_v62  ;;  %v3973_v58 = vadd.f32 1.0, %v4487_v36 }
 0x995   : > { %4496 = vrcp.f32 %v3983_v43  ;;  %v3981_v1 = vadd.f32 1.0, %v4489_v22 }
 0x996   : > { %v4491_v8 = vpop.eup %4490  ;;  %4498 = vrcp.f32 %v3973_v58 }
 0x997   : > { %4020 = vst.msk [vmem:[%s5934_s29 + $0x20] sm:$0xff] %vm2065_vm15, %v4491_v8  ;;  %4500 = vrcp.f32 %v3981_v1 }
 0x999   : > { %v4493_v13 = vpop.eup %4492 }
 0x99a   : > { %4028 = vst.msk [vmem:[%s5934_s29 + $0x60] sm:$0xff] %vm2065_vm15, %v4493_v13 }
 0x99e   : > { %v4495_v57 = vpop.eup %4494 }
 0x99f   : > { %v4497_v40 = vpop.eup %4496  ;;  %4023 = vst.msk [vmem:[%s5934_s29 + $0x38] sm:$0xff] %vm2065_vm15, %v4495_v57 }
 0x9a0   : > { %v4499_v24 = vpop.eup %4498  ;;  %4031 = vst.msk [vmem:[%s5934_s29 + $0x78] sm:$0xff] %vm2065_vm15, %v4497_v40 }
 0x9a1   : > { %v4501_v28 = vpop.eup %4500  ;;  %4021 = vst.msk [vmem:[%s5934_s29 + $0x28] sm:$0xff] %vm2065_vm15, %v4499_v24 }
 0x9a2   : > { %4029 = vst.msk [vmem:[%s5934_s29 + $0x68] sm:$0xff] %vm2065_vm15, %v4501_v28 }
 0x9a3 PF: > { %s19_s30 = sadd.s32 1, %s4508_s30  }
 0x9a4   : > { %p16_p4 = scmp.ge.s32.totalorder %s19_s30, 4  }
 0x9a6   :  { %18 = sbr.rel (!%p16_p4) target bundleno = 1 (0x1), region = 89 }

</bundles_post_ra>
